<compile_context>
chip_gen: v7x
topology: tpu7x:2x2x1
jax: 0.10.0
libtpu: 0.0.40
codegen_flags: <defaults>
</compile_context>

<pallas_src>
import functools
import math

import jax
import jax.numpy as jnp
import numpy as np
from jax.experimental import pallas as pl
from jax.experimental.pallas import tpu as pltpu

N_ENC = 64       # n_encoding_dims
MAX_POS = 100    # positional_encoding_max_value
ACT_PAD = 128    # one-hot actions zero-padded to a full lane tile


def _full_spec(shape):
    # Single-block spec: the whole (small) array lives in VMEM.
    return pl.BlockSpec(shape, lambda *_: (0,) * len(shape))


# ------------------------------ fused kernel ---------------------------------

def _posenc(pos, tbl):
    """Sinusoidal positional encoding, fully in VMEM, one sin per element.

    pos: (N, 2) f32.  tbl: (3, 2*N_ENC) precomputed column tables
    [inv_freq; phase(0 or pi/2); coord_select(0/1)].  Returns (N, 2*N_ENC) f32
    matching the PyTorch table: [interleaved sin/cos of coord0 | coord1].
    """
    inv_freq = tbl[0:1, :]
    phase = tbl[1:2, :]
    sel = tbl[2:3, :]
    p = pos[:, 0:1] * (1.0 - sel) + pos[:, 1:2] * sel
    return jnp.sin(p * inv_freq + phase)   # sin(x + pi/2) == cos(x)


def _fused_forward_kernel(pos_a_ref, pos_t_ref, act_ref, adj_a_ref, adj_t_ref,
                          tbl_ref, w_a_ref, w_t_ref, b_ref,
                          out_a_ref, out_t_ref, *, meta):
    """Whole forward pass in one kernel; activations never leave VMEM.

    Weight slabs are row-stacked per destination node type:
      w_a_ref: [ wl_a(L0) ; folded wrl_a(L0) ; ... ; head_a ]   (rows, c_pad)
      w_t_ref: [ wl_t(L0) ; folded wrl_t(L0) ; ... ; head_t ]
      b_ref:   per-layer folded biases (agent, task, ...) then head biases.
    All slices below are static Python-int slices (free VMEM views).
    """
    channels = meta["channels"]
    head_dim = meta["head_dim"]
    n_layers = len(channels)

    tbl = tbl_ref[...]
    # Concat offset is 2*N_ENC = 128 -> lane-aligned; actions pre-padded to 128.
    x_a = jnp.concatenate([_posenc(pos_a_ref[...], tbl), act_ref[...]], axis=1)
    x_t = _posenc(pos_t_ref[...], tbl)

    adj_a = adj_a_ref[...]   # (n_agent, n_task), row-normalized ('mean' aggr)
    adj_t = adj_t_ref[...]   # (n_task, n_agent)

    off_a = 0
    off_t = 0
    b_row = 0
    for i, c in enumerate(channels):
        d_a = x_a.shape[1]
        d_t = x_t.shape[1]
        # static slab slices (sublane-aligned offsets: 128/256/32 multiples)
        wl_a = w_a_ref[off_a:off_a + d_t, 0:c]; off_a += d_t
        wrl_a = w_a_ref[off_a:off_a + d_a, 0:c]; off_a += d_a
        wl_t = w_t_ref[off_t:off_t + d_a, 0:c]; off_t += d_a
        wrl_t = w_t_ref[off_t:off_t + d_t, 0:c]; off_t += d_t
        b_a = b_ref[b_row:b_row + 1, 0:c]; b_row += 1
        b_t = b_ref[b_row:b_row + 1, 0:c]; b_row += 1

        # SAGEConv mean aggregation for both destination types (MXU).
        agg_a = jnp.dot(adj_a, x_t, preferred_element_type=jnp.float32)
        agg_t = jnp.dot(adj_t, x_a, preferred_element_type=jnp.float32)
        # lin_l on aggregate + folded (lin_r + skip gnn.Linear) on destination.
        h_a = (jnp.dot(agg_a, wl_a, preferred_element_type=jnp.float32)
               + jnp.dot(x_a, wrl_a, preferred_element_type=jnp.float32) + b_a)
        h_t = (jnp.dot(agg_t, wl_t, preferred_element_type=jnp.float32)
               + jnp.dot(x_t, wrl_t, preferred_element_type=jnp.float32) + b_t)
        if i != n_layers - 1:
            h_a = jnp.maximum(h_a, 0.0)
            h_t = jnp.maximum(h_t, 0.0)
        x_a, x_t = h_a, h_t

    # Heads -> two separate lane-masked (tiny) output slabs.
    wh_a = w_a_ref[off_a:off_a + x_a.shape[1], 0:head_dim]
    wh_t = w_t_ref[off_t:off_t + x_t.shape[1], 0:head_dim]
    bh_a = b_ref[b_row:b_row + 1, 0:head_dim]; b_row += 1
    bh_t = b_ref[b_row:b_row + 1, 0:head_dim]
    out_a_ref[...] = jnp.dot(x_a, wh_a, preferred_element_type=jnp.float32) + bh_a
    out_t_ref[...] = jnp.dot(x_t, wh_t, preferred_element_type=jnp.float32) + bh_t


# ------------------------------ glue / params -------------------------------

def dense_mean_adj(edge_index, n_dst, n_src):
    """edge_index: (2, E) with row0=src, row1=dst (PyG convention).

    One-hot matmul instead of scatter-add (faster under XLA on TPU at these
    sizes, identical integer counts -> identical mean normalization).
    """
    src, dst = edge_index[0], edge_index[1]
    oh_dst = jax.nn.one_hot(dst, n_dst, dtype=jnp.float32)   # (E, n_dst)
    oh_src = jax.nn.one_hot(src, n_src, dtype=jnp.float32)   # (E, n_src)
    a = oh_dst.T @ oh_src
    deg = jnp.clip(jnp.sum(a, axis=1, keepdims=True), 1.0, None)
    return a / deg


def _glorot(key, shape):
    return (jax.random.normal(key, shape, jnp.float32) /
            jnp.sqrt(jnp.float32(shape[0])))


def init_params(key, channel_counts, head_dim, d_agent_in, d_task_in):
    params = {"layers": [], "head": {}}
    d = {"agent": d_agent_in, "task": d_task_in}
    for c in channel_counts:
        layer = {}
        for dst, src in (("agent", "task"), ("task", "agent")):
            key, k1, k2, k3, k4, k5 = jax.random.split(key, 6)
            layer[dst] = {
                "wl": _glorot(k1, (d[src], c)),    # SAGEConv.lin_l (aggregated src)
                "wr": _glorot(k2, (d[dst], c)),    # SAGEConv.lin_r (root / dst)
                "wlin": _glorot(k3, (d[dst], c)),  # gnn.Linear skip connection
                "b_conv": 0.01 * jax.random.normal(k4, (c,), jnp.float32),
                "b_lin": 0.01 * jax.random.normal(k5, (c,), jnp.float32),
            }
        params["layers"].append(layer)
        d = {"agent": c, "task": c}
    for t in ("agent", "task"):
        key, k1, k2 = jax.random.split(key, 3)
        params["head"][t] = {
            "w": _glorot(k1, (d[t], head_dim)),
            "b": 0.01 * jax.random.normal(k2, (head_dim,), jnp.float32),
        }
    return params


def _posenc_tables():
    """Host-side precompute of the per-column posenc tables (done once)."""
    col = np.arange(2 * N_ENC)
    r = col % N_ENC
    inv_freq = np.exp((r // 2) * (-2.0 * math.log(10000.0) / N_ENC))
    phase = np.where(r % 2 == 0, 0.0, np.pi / 2.0)   # sin columns / cos columns
    sel = (col >= N_ENC).astype(np.float64)          # which coordinate
    return jnp.asarray(np.stack([inv_freq, phase, sel]), dtype=jnp.float32)


def pack_params(params, n_actions, act_pad=ACT_PAD):
    """One-time parameter prep: fold lin_r+skip and biases, zero-pad the
    action rows to `act_pad`, row-stack everything into three slabs."""
    channels = [layer["agent"]["wl"].shape[1] for layer in params["layers"]]
    head_dim = params["head"]["agent"]["w"].shape[1]
    c_pad = max(channels + [head_dim])
    d_posenc = 2 * N_ENC

    def pad_to(w, rows, cols):
        return jnp.pad(w, ((0, rows - w.shape[0]), (0, cols - w.shape[1])))

    w_a_blocks, w_t_blocks, b_rows = [], [], []
    d_a, d_t = d_posenc + act_pad, d_posenc
    for layer, c in zip(params["layers"], channels):
        la, lt = layer["agent"], layer["task"]
        w_a_blocks.append(pad_to(la["wl"], d_t, c_pad))
        w_a_blocks.append(pad_to(la["wr"] + la["wlin"], d_a, c_pad))
        b_rows.append(pad_to((la["b_conv"] + la["b_lin"]).reshape(1, -1), 1, c_pad))
        w_t_blocks.append(pad_to(lt["wl"], d_a, c_pad))
        w_t_blocks.append(pad_to(lt["wr"] + lt["wlin"], d_t, c_pad))
        b_rows.append(pad_to((lt["b_conv"] + lt["b_lin"]).reshape(1, -1), 1, c_pad))
        d_a = d_t = c
    w_a_blocks.append(pad_to(params["head"]["agent"]["w"], d_a, c_pad))
    w_t_blocks.append(pad_to(params["head"]["task"]["w"], d_t, c_pad))
    b_rows.append(pad_to(params["head"]["agent"]["b"].reshape(1, -1), 1, c_pad))
    b_rows.append(pad_to(params["head"]["task"]["b"].reshape(1, -1), 1, c_pad))

    slabs = {
        "w_agent": jnp.concatenate(w_a_blocks, axis=0),
        "w_task": jnp.concatenate(w_t_blocks, axis=0),
        "bias": jnp.concatenate(b_rows, axis=0),
        "posenc_tbl": _posenc_tables(),
    }
    meta = {"channels": channels, "head_dim": head_dim,
            "c_pad": c_pad, "act_pad": act_pad}
    return slabs, meta


# -------------------------------- forward -----------------------------------

def make_forward(meta):
    kernel = functools.partial(_fused_forward_kernel, meta=meta)
    channels, head_dim, act_pad = meta["channels"], meta["head_dim"], meta["act_pad"]

    @jax.jit
    def forward(slabs, pos_agent, pos_task, actions, edge_agent_to_task,
                edge_task_to_agent):
        n_agent, n_task = pos_agent.shape[0], pos_task.shape[0]

        # Adjacency build fuses under jit; cache per episode if graph is static.
        adj_a = dense_mean_adj(edge_task_to_agent, n_agent, n_task)
        adj_t = dense_mean_adj(edge_agent_to_task, n_task, n_agent)
        actions_p = jnp.pad(actions.astype(jnp.float32),
                            ((0, 0), (0, act_pad - actions.shape[1])))

        inputs = [
            pos_agent.astype(jnp.float32),
            pos_task.astype(jnp.float32),
            actions_p,
            adj_a,
            adj_t,
            slabs["posenc_tbl"],
            slabs["w_agent"],
            slabs["w_task"],
            slabs["bias"],
        ]

        # Advisory cost estimate (tiny kernel; helps XLA scheduling).
        d_a, d_t = 2 * N_ENC + act_pad, 2 * N_ENC
        flops = 0
        for c in channels:
            flops += 2 * n_agent * n_task * (d_t + d_a)                 # aggregation
            flops += 2 * (n_agent + n_task) * (d_t + d_a) * c           # weights
            d_a = d_t = c
        flops += 2 * (n_agent + n_task) * channels[-1] * head_dim
        cost = pl.CostEstimate(
            flops=int(flops),
            transcendentals=int((n_agent + n_task) * 2 * N_ENC),
            bytes_accessed=int(sum(int(a.size) * 4 for a in inputs)
                               + (n_agent + n_task) * head_dim * 4))

        out_a, out_t = pl.pallas_call(
            kernel,
            out_shape=(jax.ShapeDtypeStruct((n_agent, head_dim), jnp.float32),
                       jax.ShapeDtypeStruct((n_task, head_dim), jnp.float32)),
            grid=(1,),
            in_specs=[_full_spec(a.shape) for a in inputs],
            out_specs=(_full_spec((n_agent, head_dim)),
                       _full_spec((n_task, head_dim))),
            compiler_params=pltpu.CompilerParams(
                dimension_semantics=("arbitrary",)),
            cost_estimate=cost,
        )(*inputs)
        return {"agent": out_a, "task": out_t}

    return forward


# ---------------------------- pure-JAX reference ----------------------------

def _posenc_ref(pos):
    pos = pos.astype(jnp.float32)
    i = jnp.arange(0, N_ENC, 2, dtype=jnp.float32)
    div = jnp.exp(i * (-jnp.log(10000.0) / N_ENC))

    def enc(p):
        ang = p[:, None] * div[None, :]
        pe = jnp.zeros((p.shape[0], N_ENC), jnp.float32)
        pe = pe.at[:, 0::2].set(jnp.sin(ang))
        pe = pe.at[:, 1::2].set(jnp.cos(ang))
        return pe

    return jnp.concatenate([enc(pos[:, 0]), enc(pos[:, 1])], axis=-1)


def forward_ref(params, x_dict, actions, edge_index_dict):
    x = {k: _posenc_ref(v) for k, v in x_dict.items()}
    x["agent"] = jnp.concatenate([x["agent"], actions.astype(jnp.float32)], axis=-1)
    n_agent, n_task = x["agent"].shape[0], x["task"].shape[0]
    adj = {
        "agent": dense_mean_adj(edge_index_dict[("task", "to", "agent")], n_agent, n_task),
        "task": dense_mean_adj(edge_index_dict[("agent", "to", "task")], n_task, n_agent),
    }
    src_of = {"agent": "task", "task": "agent"}
    n_layers = len(params["layers"])
    for i, layer in enumerate(params["layers"]):
        new = {}
        for t in ("agent", "task"):
            lp = layer[t]
            h = ((adj[t] @ x[src_of[t]]) @ lp["wl"] + x[t] @ lp["wr"] + lp["b_conv"]
                 + x[t] @ lp["wlin"] + lp["b_lin"])
            if i != n_layers - 1:
                h = jnp.maximum(h, 0.0)
            new[t] = h
        x = new
    return {t: x[t] @ params["head"][t]["w"] + params["head"][t]["b"]
            for t in ("agent", "task")}


# ---------------------------------- main -------------------------------------

if __name__ == "__main__":
    # Full f32 precision for the XLA reference matmuls (tighter comparison).
    jax.config.update("jax_default_matmul_precision", "highest")

    key = jax.random.PRNGKey(0)
    n_agent, n_task, n_actions = 8, 16, 4
    channel_counts, head_dim = [32, 32], 4

    k_pa, k_pt, k_act, k_e1, k_e2, k_p = jax.random.split(key, 6)
    x_dict = {
        "agent": jax.random.randint(k_pa, (n_agent, 2), 0, MAX_POS).astype(jnp.float32),
        "task": jax.random.randint(k_pt, (n_task, 2), 0, MAX_POS).astype(jnp.float32),
    }
    actions = jax.nn.one_hot(
        jax.random.randint(k_act, (n_agent,), 0, n_actions), n_actions,
        dtype=jnp.float32)

    n_edges = 24
    e_at = jnp.stack([jax.random.randint(k_e1, (n_edges,), 0, n_agent),
                      jax.random.randint(jax.random.fold_in(k_e1, 1),
                                         (n_edges,), 0, n_task)])
    e_ta = jnp.stack([jax.random.randint(k_e2, (n_edges,), 0, n_task),
                      jax.random.randint(jax.random.fold_in(k_e2, 1),
                                         (n_edges,), 0, n_agent)])
    edge_index_dict = {("agent", "to", "task"): e_at,
                       ("task", "to", "agent"): e_ta}

    d_agent_in = 2 * N_ENC + n_actions   # positional embedding + one-hot actions
    d_task_in = 2 * N_ENC
    params = init_params(k_p, channel_counts, head_dim, d_agent_in, d_task_in)

    # One-time parameter folding / packing, then a jitted forward.
    slabs, meta = pack_params(params, n_actions)
    forward = make_forward(meta)

    out = forward(slabs, x_dict["agent"], x_dict["task"], actions,
                  edge_index_dict[("agent", "to", "task")],
                  edge_index_dict[("task", "to", "agent")])
    out = jax.block_until_ready(out)

    ref = forward_ref(params, x_dict, actions, edge_index_dict)
    assert out["agent"].shape == (n_agent, head_dim)
    assert out["task"].shape == (n_task, head_dim)
    for t in ("agent", "task"):
        np.testing.assert_allclose(np.asarray(out[t]), np.asarray(ref[t]),
                                   rtol=2e-3, atol=2e-3)
    print("KERNEL_OK")
</pallas_src>

<mosaic_0001>
module attributes {stable_mosaic.version = 11 : i64} {
  func.func @_fused_forward_kernel(%arg0: i32, %arg1: memref<8x2xf32, #tpu.memory_space<vmem>>, %arg2: memref<16x2xf32, #tpu.memory_space<vmem>>, %arg3: memref<8x128xf32, #tpu.memory_space<vmem>>, %arg4: memref<8x16xf32, #tpu.memory_space<vmem>>, %arg5: memref<16x8xf32, #tpu.memory_space<vmem>>, %arg6: memref<3x128xf32, #tpu.memory_space<vmem>>, %arg7: memref<480x32xf32, #tpu.memory_space<vmem>>, %arg8: memref<480x32xf32, #tpu.memory_space<vmem>>, %arg9: memref<6x32xf32, #tpu.memory_space<vmem>>, %arg10: memref<8x4xf32, #tpu.memory_space<vmem>>, %arg11: memref<16x4xf32, #tpu.memory_space<vmem>>) attributes {dimension_semantics = [#tpu.dimension_semantics<arbitrary>], iteration_bounds = array<i64: 1>, scalar_prefetch = 0 : i64, scratch_operands = 0 : i64, tpu.core_type = #tpu.core_type<tc>, window_params = [{pipeline_mode = #tpu.pipeline_mode<synchronous>, transform_indices = @transform_0, window_bounds = array<i64: 8, 2>}, {pipeline_mode = #tpu.pipeline_mode<synchronous>, transform_indices = @transform_1, window_bounds = array<i64: 16, 2>}, {pipeline_mode = #tpu.pipeline_mode<synchronous>, transform_indices = @transform_2, window_bounds = array<i64: 8, 128>}, {pipeline_mode = #tpu.pipeline_mode<synchronous>, transform_indices = @transform_3, window_bounds = array<i64: 8, 16>}, {pipeline_mode = #tpu.pipeline_mode<synchronous>, transform_indices = @transform_4, window_bounds = array<i64: 16, 8>}, {pipeline_mode = #tpu.pipeline_mode<synchronous>, transform_indices = @transform_5, window_bounds = array<i64: 3, 128>}, {pipeline_mode = #tpu.pipeline_mode<synchronous>, transform_indices = @transform_6, window_bounds = array<i64: 480, 32>}, {pipeline_mode = #tpu.pipeline_mode<synchronous>, transform_indices = @transform_7, window_bounds = array<i64: 480, 32>}, {pipeline_mode = #tpu.pipeline_mode<synchronous>, transform_indices = @transform_8, window_bounds = array<i64: 6, 32>}, {pipeline_mode = #tpu.pipeline_mode<synchronous>, transform_indices = @transform_9, window_bounds = array<i64: 8, 4>}, {pipeline_mode = #tpu.pipeline_mode<synchronous>, transform_indices = @transform_10, window_bounds = array<i64: 16, 4>}]} {
    %c0 = arith.constant 0 : index
    %c0_0 = arith.constant 0 : index
    %0 = vector.load %arg6[%c0, %c0_0] : memref<3x128xf32, #tpu.memory_space<vmem>>, vector<3x128xf32>
    %c0_1 = arith.constant 0 : index
    %c0_2 = arith.constant 0 : index
    %1 = vector.load %arg1[%c0_1, %c0_2] : memref<8x2xf32, #tpu.memory_space<vmem>>, vector<8x2xf32>
    %2 = vector.extract_strided_slice %0 {offsets = [0, 0], sizes = [1, 128], strides = [1, 1]} : vector<3x128xf32> to vector<1x128xf32>
    %3 = vector.extract_strided_slice %0 {offsets = [1, 0], sizes = [1, 128], strides = [1, 1]} : vector<3x128xf32> to vector<1x128xf32>
    %4 = vector.extract_strided_slice %0 {offsets = [2, 0], sizes = [1, 128], strides = [1, 1]} : vector<3x128xf32> to vector<1x128xf32>
    %5 = vector.extract_strided_slice %1 {offsets = [0, 0], sizes = [8, 1], strides = [1, 1]} : vector<8x2xf32> to vector<8x1xf32>
    %cst = arith.constant 1.000000e+00 : f32
    %6 = vector.broadcast %cst : f32 to vector<1x128xf32>
    %7 = arith.subf %6, %4 : vector<1x128xf32>
    %8 = vector.broadcast %5 : vector<8x1xf32> to vector<8x128xf32>
    %9 = vector.broadcast %7 : vector<1x128xf32> to vector<8x128xf32>
    %10 = arith.mulf %8, %9 : vector<8x128xf32>
    %11 = vector.extract_strided_slice %1 {offsets = [0, 1], sizes = [8, 1], strides = [1, 1]} : vector<8x2xf32> to vector<8x1xf32>
    %12 = vector.broadcast %11 : vector<8x1xf32> to vector<8x128xf32>
    %13 = vector.broadcast %4 : vector<1x128xf32> to vector<8x128xf32>
    %14 = arith.mulf %12, %13 : vector<8x128xf32>
    %15 = arith.addf %10, %14 : vector<8x128xf32>
    %16 = vector.broadcast %2 : vector<1x128xf32> to vector<8x128xf32>
    %17 = arith.mulf %15, %16 : vector<8x128xf32>
    %18 = vector.broadcast %3 : vector<1x128xf32> to vector<8x128xf32>
    %19 = arith.addf %17, %18 : vector<8x128xf32>
    %20 = math.sin %19 : vector<8x128xf32>
    %c0_3 = arith.constant 0 : index
    %c0_4 = arith.constant 0 : index
    %21 = vector.load %arg3[%c0_3, %c0_4] : memref<8x128xf32, #tpu.memory_space<vmem>>, vector<8x128xf32>
    %22 = tpu.concatenate %20, %21 in 1 : vector<8x128xf32>, vector<8x128xf32> -> vector<8x256xf32>
    %c0_5 = arith.constant 0 : index
    %c0_6 = arith.constant 0 : index
    %23 = vector.load %arg2[%c0_5, %c0_6] : memref<16x2xf32, #tpu.memory_space<vmem>>, vector<16x2xf32>
    %24 = vector.extract_strided_slice %0 {offsets = [0, 0], sizes = [1, 128], strides = [1, 1]} : vector<3x128xf32> to vector<1x128xf32>
    %25 = vector.extract_strided_slice %0 {offsets = [1, 0], sizes = [1, 128], strides = [1, 1]} : vector<3x128xf32> to vector<1x128xf32>
    %26 = vector.extract_strided_slice %0 {offsets = [2, 0], sizes = [1, 128], strides = [1, 1]} : vector<3x128xf32> to vector<1x128xf32>
    %27 = vector.extract_strided_slice %23 {offsets = [0, 0], sizes = [16, 1], strides = [1, 1]} : vector<16x2xf32> to vector<16x1xf32>
    %cst_7 = arith.constant 1.000000e+00 : f32
    %28 = vector.broadcast %cst_7 : f32 to vector<1x128xf32>
    %29 = arith.subf %28, %26 : vector<1x128xf32>
    %30 = vector.broadcast %27 : vector<16x1xf32> to vector<16x128xf32>
    %31 = vector.broadcast %29 : vector<1x128xf32> to vector<16x128xf32>
    %32 = arith.mulf %30, %31 : vector<16x128xf32>
    %33 = vector.extract_strided_slice %23 {offsets = [0, 1], sizes = [16, 1], strides = [1, 1]} : vector<16x2xf32> to vector<16x1xf32>
    %34 = vector.broadcast %33 : vector<16x1xf32> to vector<16x128xf32>
    %35 = vector.broadcast %26 : vector<1x128xf32> to vector<16x128xf32>
    %36 = arith.mulf %34, %35 : vector<16x128xf32>
    %37 = arith.addf %32, %36 : vector<16x128xf32>
    %38 = vector.broadcast %24 : vector<1x128xf32> to vector<16x128xf32>
    %39 = arith.mulf %37, %38 : vector<16x128xf32>
    %40 = vector.broadcast %25 : vector<1x128xf32> to vector<16x128xf32>
    %41 = arith.addf %39, %40 : vector<16x128xf32>
    %42 = math.sin %41 : vector<16x128xf32>
    %c0_8 = arith.constant 0 : index
    %c0_9 = arith.constant 0 : index
    %43 = vector.load %arg4[%c0_8, %c0_9] : memref<8x16xf32, #tpu.memory_space<vmem>>, vector<8x16xf32>
    %c0_10 = arith.constant 0 : index
    %c0_11 = arith.constant 0 : index
    %44 = vector.load %arg5[%c0_10, %c0_11] : memref<16x8xf32, #tpu.memory_space<vmem>>, vector<16x8xf32>
    %c0_12 = arith.constant 0 : index
    %c0_13 = arith.constant 0 : index
    %45 = vector.load %arg7[%c0_12, %c0_13] : memref<480x32xf32, #tpu.memory_space<vmem>>, vector<128x32xf32>
    %c128 = arith.constant 128 : index
    %c0_14 = arith.constant 0 : index
    %46 = vector.load %arg7[%c128, %c0_14] : memref<480x32xf32, #tpu.memory_space<vmem>>, vector<256x32xf32>
    %c0_15 = arith.constant 0 : index
    %c0_16 = arith.constant 0 : index
    %47 = vector.load %arg8[%c0_15, %c0_16] : memref<480x32xf32, #tpu.memory_space<vmem>>, vector<256x32xf32>
    %c256 = arith.constant 256 : index
    %c0_17 = arith.constant 0 : index
    %48 = vector.load %arg8[%c256, %c0_17] : memref<480x32xf32, #tpu.memory_space<vmem>>, vector<128x32xf32>
    %c0_18 = arith.constant 0 : index
    %c0_19 = arith.constant 0 : index
    %49 = vector.load %arg9[%c0_18, %c0_19] : memref<6x32xf32, #tpu.memory_space<vmem>>, vector<1x32xf32>
    %c1 = arith.constant 1 : index
    %c0_20 = arith.constant 0 : index
    %50 = vector.load %arg9[%c1, %c0_20] : memref<6x32xf32, #tpu.memory_space<vmem>>, vector<1x32xf32>
    %cst_21 = arith.constant dense<0.000000e+00> : vector<8x128xf32>
    %51 = tpu.matmul %43, %42, %cst_21 {dimension_numbers = #tpu.dot_dimension_numbers<[1], [0], [0], [1], [0, 0, 1, 1], [], []>, precision = #tpu.contract_precision<fp32>} : vector<8x16xf32>, vector<16x128xf32>, vector<8x128xf32> -> vector<8x128xf32>
    %cst_22 = arith.constant dense<0.000000e+00> : vector<16x256xf32>
    %52 = tpu.matmul %44, %22, %cst_22 {dimension_numbers = #tpu.dot_dimension_numbers<[1], [0], [0], [1], [0, 0, 1, 1], [], []>, precision = #tpu.contract_precision<fp32>} : vector<16x8xf32>, vector<8x256xf32>, vector<16x256xf32> -> vector<16x256xf32>
    %cst_23 = arith.constant dense<0.000000e+00> : vector<8x32xf32>
    %53 = tpu.matmul %51, %45, %cst_23 {dimension_numbers = #tpu.dot_dimension_numbers<[1], [0], [0], [1], [0, 0, 1, 1], [], []>, precision = #tpu.contract_precision<fp32>} : vector<8x128xf32>, vector<128x32xf32>, vector<8x32xf32> -> vector<8x32xf32>
    %cst_24 = arith.constant dense<0.000000e+00> : vector<8x32xf32>
    %54 = tpu.matmul %22, %46, %cst_24 {dimension_numbers = #tpu.dot_dimension_numbers<[1], [0], [0], [1], [0, 0, 1, 1], [], []>, precision = #tpu.contract_precision<fp32>} : vector<8x256xf32>, vector<256x32xf32>, vector<8x32xf32> -> vector<8x32xf32>
    %55 = arith.addf %53, %54 : vector<8x32xf32>
    %56 = vector.broadcast %49 : vector<1x32xf32> to vector<8x32xf32>
    %57 = arith.addf %55, %56 : vector<8x32xf32>
    %cst_25 = arith.constant dense<0.000000e+00> : vector<16x32xf32>
    %58 = tpu.matmul %52, %47, %cst_25 {dimension_numbers = #tpu.dot_dimension_numbers<[1], [0], [0], [1], [0, 0, 1, 1], [], []>, precision = #tpu.contract_precision<fp32>} : vector<16x256xf32>, vector<256x32xf32>, vector<16x32xf32> -> vector<16x32xf32>
    %cst_26 = arith.constant dense<0.000000e+00> : vector<16x32xf32>
    %59 = tpu.matmul %42, %48, %cst_26 {dimension_numbers = #tpu.dot_dimension_numbers<[1], [0], [0], [1], [0, 0, 1, 1], [], []>, precision = #tpu.contract_precision<fp32>} : vector<16x128xf32>, vector<128x32xf32>, vector<16x32xf32> -> vector<16x32xf32>
    %60 = arith.addf %58, %59 : vector<16x32xf32>
    %61 = vector.broadcast %50 : vector<1x32xf32> to vector<16x32xf32>
    %62 = arith.addf %60, %61 : vector<16x32xf32>
    %cst_27 = arith.constant 0.000000e+00 : f32
    %63 = vector.broadcast %cst_27 : f32 to vector<8x32xf32>
    %64 = arith.maximumf %57, %63 : vector<8x32xf32>
    %cst_28 = arith.constant 0.000000e+00 : f32
    %65 = vector.broadcast %cst_28 : f32 to vector<16x32xf32>
    %66 = arith.maximumf %62, %65 : vector<16x32xf32>
    %c384 = arith.constant 384 : index
    %c0_29 = arith.constant 0 : index
    %67 = vector.load %arg7[%c384, %c0_29] : memref<480x32xf32, #tpu.memory_space<vmem>>, vector<32x32xf32>
    %c416 = arith.constant 416 : index
    %c0_30 = arith.constant 0 : index
    %68 = vector.load %arg7[%c416, %c0_30] : memref<480x32xf32, #tpu.memory_space<vmem>>, vector<32x32xf32>
    %c384_31 = arith.constant 384 : index
    %c0_32 = arith.constant 0 : index
    %69 = vector.load %arg8[%c384_31, %c0_32] : memref<480x32xf32, #tpu.memory_space<vmem>>, vector<32x32xf32>
    %c416_33 = arith.constant 416 : index
    %c0_34 = arith.constant 0 : index
    %70 = vector.load %arg8[%c416_33, %c0_34] : memref<480x32xf32, #tpu.memory_space<vmem>>, vector<32x32xf32>
    %c2 = arith.constant 2 : index
    %c0_35 = arith.constant 0 : index
    %71 = vector.load %arg9[%c2, %c0_35] : memref<6x32xf32, #tpu.memory_space<vmem>>, vector<1x32xf32>
    %c3 = arith.constant 3 : index
    %c0_36 = arith.constant 0 : index
    %72 = vector.load %arg9[%c3, %c0_36] : memref<6x32xf32, #tpu.memory_space<vmem>>, vector<1x32xf32>
    %cst_37 = arith.constant dense<0.000000e+00> : vector<8x32xf32>
    %73 = tpu.matmul %43, %66, %cst_37 {dimension_numbers = #tpu.dot_dimension_numbers<[1], [0], [0], [1], [0, 0, 1, 1], [], []>, precision = #tpu.contract_precision<fp32>} : vector<8x16xf32>, vector<16x32xf32>, vector<8x32xf32> -> vector<8x32xf32>
    %cst_38 = arith.constant dense<0.000000e+00> : vector<16x32xf32>
    %74 = tpu.matmul %44, %64, %cst_38 {dimension_numbers = #tpu.dot_dimension_numbers<[1], [0], [0], [1], [0, 0, 1, 1], [], []>, precision = #tpu.contract_precision<fp32>} : vector<16x8xf32>, vector<8x32xf32>, vector<16x32xf32> -> vector<16x32xf32>
    %cst_39 = arith.constant dense<0.000000e+00> : vector<8x32xf32>
    %75 = tpu.matmul %73, %67, %cst_39 {dimension_numbers = #tpu.dot_dimension_numbers<[1], [0], [0], [1], [0, 0, 1, 1], [], []>, precision = #tpu.contract_precision<fp32>} : vector<8x32xf32>, vector<32x32xf32>, vector<8x32xf32> -> vector<8x32xf32>
    %cst_40 = arith.constant dense<0.000000e+00> : vector<8x32xf32>
    %76 = tpu.matmul %64, %68, %cst_40 {dimension_numbers = #tpu.dot_dimension_numbers<[1], [0], [0], [1], [0, 0, 1, 1], [], []>, precision = #tpu.contract_precision<fp32>} : vector<8x32xf32>, vector<32x32xf32>, vector<8x32xf32> -> vector<8x32xf32>
    %77 = arith.addf %75, %76 : vector<8x32xf32>
    %78 = vector.broadcast %71 : vector<1x32xf32> to vector<8x32xf32>
    %79 = arith.addf %77, %78 : vector<8x32xf32>
    %cst_41 = arith.constant dense<0.000000e+00> : vector<16x32xf32>
    %80 = tpu.matmul %74, %69, %cst_41 {dimension_numbers = #tpu.dot_dimension_numbers<[1], [0], [0], [1], [0, 0, 1, 1], [], []>, precision = #tpu.contract_precision<fp32>} : vector<16x32xf32>, vector<32x32xf32>, vector<16x32xf32> -> vector<16x32xf32>
    %cst_42 = arith.constant dense<0.000000e+00> : vector<16x32xf32>
    %81 = tpu.matmul %66, %70, %cst_42 {dimension_numbers = #tpu.dot_dimension_numbers<[1], [0], [0], [1], [0, 0, 1, 1], [], []>, precision = #tpu.contract_precision<fp32>} : vector<16x32xf32>, vector<32x32xf32>, vector<16x32xf32> -> vector<16x32xf32>
    %82 = arith.addf %80, %81 : vector<16x32xf32>
    %83 = vector.broadcast %72 : vector<1x32xf32> to vector<16x32xf32>
    %84 = arith.addf %82, %83 : vector<16x32xf32>
    %c448 = arith.constant 448 : index
    %c0_43 = arith.constant 0 : index
    %85 = vector.load %arg7[%c448, %c0_43] : memref<480x32xf32, #tpu.memory_space<vmem>>, vector<32x4xf32>
    %c448_44 = arith.constant 448 : index
    %c0_45 = arith.constant 0 : index
    %86 = vector.load %arg8[%c448_44, %c0_45] : memref<480x32xf32, #tpu.memory_space<vmem>>, vector<32x4xf32>
    %c4 = arith.constant 4 : index
    %c0_46 = arith.constant 0 : index
    %87 = vector.load %arg9[%c4, %c0_46] : memref<6x32xf32, #tpu.memory_space<vmem>>, vector<1x4xf32>
    %c5 = arith.constant 5 : index
    %c0_47 = arith.constant 0 : index
    %88 = vector.load %arg9[%c5, %c0_47] : memref<6x32xf32, #tpu.memory_space<vmem>>, vector<1x4xf32>
    %cst_48 = arith.constant dense<0.000000e+00> : vector<8x4xf32>
    %89 = tpu.matmul %79, %85, %cst_48 {dimension_numbers = #tpu.dot_dimension_numbers<[1], [0], [0], [1], [0, 0, 1, 1], [], []>, precision = #tpu.contract_precision<fp32>} : vector<8x32xf32>, vector<32x4xf32>, vector<8x4xf32> -> vector<8x4xf32>
    %90 = vector.broadcast %87 : vector<1x4xf32> to vector<8x4xf32>
    %91 = arith.addf %89, %90 : vector<8x4xf32>
    %c0_49 = arith.constant 0 : index
    %c0_50 = arith.constant 0 : index
    %92 = vector.load %arg10[%c0_49, %c0_50] : memref<8x4xf32, #tpu.memory_space<vmem>>, vector<8x4xf32>
    tpu.vector_store %arg10[%c0_49, %c0_50], %91 {strides = array<i32>} : memref<8x4xf32, #tpu.memory_space<vmem>>, vector<8x4xf32>,
    %cst_51 = arith.constant dense<0.000000e+00> : vector<16x4xf32>
    %93 = tpu.matmul %84, %86, %cst_51 {dimension_numbers = #tpu.dot_dimension_numbers<[1], [0], [0], [1], [0, 0, 1, 1], [], []>, precision = #tpu.contract_precision<fp32>} : vector<16x32xf32>, vector<32x4xf32>, vector<16x4xf32> -> vector<16x4xf32>
    %94 = vector.broadcast %88 : vector<1x4xf32> to vector<16x4xf32>
    %95 = arith.addf %93, %94 : vector<16x4xf32>
    %c0_52 = arith.constant 0 : index
    %c0_53 = arith.constant 0 : index
    %96 = vector.load %arg11[%c0_52, %c0_53] : memref<16x4xf32, #tpu.memory_space<vmem>>, vector<16x4xf32>
    tpu.vector_store %arg11[%c0_52, %c0_53], %95 {strides = array<i32>} : memref<16x4xf32, #tpu.memory_space<vmem>>, vector<16x4xf32>,
    return
  }
  func.func @transform_0(%arg0: i32) -> (i32, i32) {
    %c0_i32 = arith.constant 0 : i32
    %c0_i32_0 = arith.constant 0 : i32
    %c0_i32_1 = arith.constant 0 : i32
    return %c0_i32, %c0_i32_0 : i32, i32
  }
  func.func @transform_1(%arg0: i32) -> (i32, i32) {
    %c0_i32 = arith.constant 0 : i32
    %c0_i32_0 = arith.constant 0 : i32
    %c0_i32_1 = arith.constant 0 : i32
    return %c0_i32, %c0_i32_0 : i32, i32
  }
  func.func @transform_2(%arg0: i32) -> (i32, i32) {
    %c0_i32 = arith.constant 0 : i32
    %c0_i32_0 = arith.constant 0 : i32
    %c0_i32_1 = arith.constant 0 : i32
    return %c0_i32, %c0_i32_0 : i32, i32
  }
  func.func @transform_3(%arg0: i32) -> (i32, i32) {
    %c0_i32 = arith.constant 0 : i32
    %c0_i32_0 = arith.constant 0 : i32
    %c0_i32_1 = arith.constant 0 : i32
    return %c0_i32, %c0_i32_0 : i32, i32
  }
  func.func @transform_4(%arg0: i32) -> (i32, i32) {
    %c0_i32 = arith.constant 0 : i32
    %c0_i32_0 = arith.constant 0 : i32
    %c0_i32_1 = arith.constant 0 : i32
    return %c0_i32, %c0_i32_0 : i32, i32
  }
  func.func @transform_5(%arg0: i32) -> (i32, i32) {
    %c0_i32 = arith.constant 0 : i32
    %c0_i32_0 = arith.constant 0 : i32
    %c0_i32_1 = arith.constant 0 : i32
    return %c0_i32, %c0_i32_0 : i32, i32
  }
  func.func @transform_6(%arg0: i32) -> (i32, i32) {
    %c0_i32 = arith.constant 0 : i32
    %c0_i32_0 = arith.constant 0 : i32
    %c0_i32_1 = arith.constant 0 : i32
    return %c0_i32, %c0_i32_0 : i32, i32
  }
  func.func @transform_7(%arg0: i32) -> (i32, i32) {
    %c0_i32 = arith.constant 0 : i32
    %c0_i32_0 = arith.constant 0 : i32
    %c0_i32_1 = arith.constant 0 : i32
    return %c0_i32, %c0_i32_0 : i32, i32
  }
  func.func @transform_8(%arg0: i32) -> (i32, i32) {
    %c0_i32 = arith.constant 0 : i32
    %c0_i32_0 = arith.constant 0 : i32
    %c0_i32_1 = arith.constant 0 : i32
    return %c0_i32, %c0_i32_0 : i32, i32
  }
  func.func @transform_9(%arg0: i32) -> (i32, i32) {
    %c0_i32 = arith.constant 0 : i32
    %c0_i32_0 = arith.constant 0 : i32
    %c0_i32_1 = arith.constant 0 : i32
    return %c0_i32, %c0_i32_0 : i32, i32
  }
  func.func @transform_10(%arg0: i32) -> (i32, i32) {
    %c0_i32 = arith.constant 0 : i32
    %c0_i32_0 = arith.constant 0 : i32
    %c0_i32_1 = arith.constant 0 : i32
    return %c0_i32, %c0_i32_0 : i32, i32
  }
}

</mosaic_0001>

<bundles_post_ra>
// kernel: forward.1
= control target key start
LH: loop header
LB: loop body
LE: loop exit
PB: predicated region body
PF: predicated region fallthrough
CT: control target
= control target key end

     0   :  { %v11686_v0 = vmov 1   ;;  %v11687_v1 = vmov 0   ;;  %v14610_v5 = vmov 0.0|0.0   ;;  %vm11689_vm0 = vmmov 0   ;;  %s14599_s1 = inlined_call_operand.vmem [shape: f32[16,2], index: 1, kind: input, shape index: {}]   ;;  %s14600_s0 = inlined_call_operand.vmem [shape: f32[8,2], index: 0, kind: input, shape index: {}]   ;;  %s14601_s2 = inlined_call_operand.vmem [shape: f32[8,128], index: 2, kind: input, shape index: {}]   ;;  %s14602_s5 = inlined_call_operand.vmem [shape: f32[3,128], index: 5, kind: input, shape index: {}]   ;;  %s14603_s3 = inlined_call_operand.vmem [shape: f32[8,16], index: 3, kind: input, shape index: {}]   ;;  %s14604_s6 = inlined_call_operand.vmem [shape: f32[480,32], index: 6, kind: input, shape index: {}]   ;;  %s14605_s4 = inlined_call_operand.vmem [shape: f32[16,8], index: 4, kind: input, shape index: {}]   ;;  %s14606_s7 = inlined_call_operand.vmem [shape: f32[480,32], index: 7, kind: input, shape index: {}]   ;;  %s14607_s8 = inlined_call_operand.vmem [shape: f32[6,32], index: 8, kind: input, shape index: {}]   ;;  %s14608_s9 = inlined_call_operand.vmem [shape: f32[8,4], index: 9, kind: output, shape index: {0}]   ;;  %s14609_s10 = inlined_call_operand.vmem [shape: f32[16,4], index: 10, kind: output, shape index: {1}]  }
   0x1   :  { %11672 = vset.pattern.permute.xlu1 %v11686_v0  ;;  %11671 = vset.pattern.permute.xlu0 %v11687_v1  ;;  %v172_v2 = vld [vmem:[%s14599_s1] sm:$0xff]  ;;  %v173_v3 = vld [vmem:[%s14599_s1 + $0x8] sm:$0xff]  ;;  %v14627_v6 = vmov 0.0   ;;  %v42_v7 = vlaneseq }
   0x2   :  { %187 = vperm.xlu1 %11672, %v172_v2   ;;  %176 = vperm.xlu0 %11671, %v172_v2   ;;  %v35_v4 = vld [vmem:[%s14600_s0] sm:$0xff]  ;;  %v11692_v2 = vmov 2475754826  }
   0x3   :  { %10536 = vmatprep.subr.bf16.mxu0 %v14610_v5  ;;  %9610 = vmatprep.mubr.msk.f32.mxu0 %vm11689_vm0, %v14627_v6  ;;  %v171_v8 = vld [vmem:[%s14601_s2] sm:$0xff]  ;;  %v43_v10 = vshrl.u32 %v42_v7, 7  ;;  %v11693_v7 = vmov 2131351028  }
   0x4   :  { %1144 = vmatprep.mubr.f32.mxu1 %v14627_v6  ;;  %v11768_v9 = vand.u32 4294901760, %v171_v8  ;;  %v34_v11 = vld [vmem:[%s14602_s5] sm:$0x7] }
   0x5   :  { %v44_v14 = vsub.s32 2, %v43_v10  ;;  %v36_v15 = vsub.f32 1.0, %v34_v11  ;;  %v59_v20 = vsub.s32 0, %v43_v10  ;;  %v64_v21 = vsub.s32 1, %v43_v10 }
   0x6   :  { %191 = vperm.xlu1 %11672, %v173_v3   ;;  %181 = vperm.xlu0 %11671, %v173_v3   ;;  %v11774_v12 = vsub.f32 %v171_v8, %v11768_v9  ;;  %v11694_v10 = vmov 2102212464  }
   0x7   :  { %v54_v18 = vrot.slane %v34_v11, %v44_v14  ;;  %v45_v19 = vrot.slane %v36_v15, %v44_v14  ;;  %v60_v25 = vrot.slane %v34_v11, %v59_v20  ;;  %v65_v27 = vrot.slane %v34_v11, %v64_v21 }
   0x8   :  { %v11777_v13 = vand.u32 4294901760, %v11774_v12  ;;  %v11695_v14 = vmov 920167782  }
   0xa   :  { %48 = vperm.xlu1 %11672, %v35_v4   ;;  %39 = vperm.xlu0 %11671, %v35_v4   ;;  %14819 = vst [vmem:[#allocation2_spill] sm:$0xff] %v11777_v13  ;;  %v1073_v16 = vsub.f32 %v11774_v12, %v11777_v13 }
   0xc   :  { %v11781_v17 = vand.u32 4294901760, %v1073_v16 }
   0xe   :  { %11673 = vset.pattern.permute.xlu0 %v11686_v0  ;;  %1075 = vmatprep.subr.mxu1 %v11781_v17  ;;  %v11691_v0 = vmov 683565275  }
  0x81   :  { %v188_v22 = vpop.permute.xlu1 %187  ;;  %v177_v23 = vpop.permute.xlu0 %176 }
  0x82   :  { %v194_v24 = vmul.f32 %v188_v22, %v54_v18  ;;  %v184_v26 = vmul.f32 %v177_v23, %v45_v19  ;;  %v11696_v22 = vmov 1326507024  }
  0x84   :  { %v196_v28 = vadd.f32 %v194_v24, %v184_v26 }
  0x85   :  { %v192_v29 = vpop.permute.xlu1 %191  ;;  %v182_v30 = vpop.permute.xlu0 %181 }
  0x86   :  { %v198_v31 = vmul.f32 %v196_v28, %v60_v25  ;;  %v195_v32 = vmul.f32 %v192_v29, %v54_v18  ;;  %v185_v33 = vmul.f32 %v182_v30, %v45_v19 }
  0x88   :  { %v11784_v34 = vadd.f32 %v198_v31, %v65_v27  ;;  %v197_v35 = vadd.f32 %v195_v32, %v185_v33 }
  0x89   :  { %v49_v36 = vpop.permute.xlu1 %48  ;;  %v40_v37 = vpop.permute.xlu0 %39 }
  0x8a   :  { %v202_v38 = vand.u32 2147483647, %v11784_v34  ;;  %v205_v39 = vand.u32 2139095040, %v11784_v34  ;;  %v199_v40 = vmul.f32 %v197_v35, %v60_v25  ;;  %v55_v41 = vmul.f32 %v54_v18, %v49_v36 }
  0x8b   :  { %v46_v42 = vmul.f32 %v45_v19, %v40_v37 }
  0x8c   :  { %v206_v43 = vshrl.u32 %v205_v39, 23  ;;  %v11788_v44 = vadd.f32 %v199_v40, %v65_v27  ;;  %v209_v45 = vand.u32 8388607, %v202_v38 }
  0x8d   :  { %v56_v46 = vadd.f32 %v55_v41, %v46_v42 }
  0x8e   :  { %v8692_v47 = vadd.s32 4294967169, %v206_v43  ;;  %v306_v48 = vand.u32 2147483647, %v11788_v44  ;;  %v309_v49 = vand.u32 2139095040, %v11788_v44  ;;  %v210_v52 = vor.u32 8388608, %v209_v45 }
  0x8f   :  { %v61_v50 = vmul.f32 %v60_v25, %v56_v46 }
  0x90   :  { %v212_v51 = vadd.s32 1, %v8692_v47  ;;  %v310_v53 = vshrl.u32 %v309_v49, 23  ;;  %v313_v54 = vand.u32 8388607, %v306_v48  ;;  %v11798_v60 = vshll.u32 %v210_v52, 8 }
  0x91   :  { %v11796_v55 = vadd.f32 %v65_v27, %v61_v50 }
  0x92   :  { %vm213_vm1 = vcmp.gt.s32.totalorder %v212_v51, 0  ;;  %v8696_v57 = vadd.s32 4294967169, %v310_v53  ;;  %v314_v61 = vor.u32 8388608, %v313_v54 }
  0x93   :  { %v214_v56 = vsel %vm213_vm1, %v212_v51, 0  ;;  %v70_v62 = vand.u32 2139095040, %v11796_v55  ;;  %v67_v47 = vand.u32 2147483647, %v11796_v55 }
  0x94   :  { %v215_v58 = vshrl.u32 %v214_v56, 5  ;;  %v216_v59 = vand.u32 31, %v214_v56  ;;  %v316_v4 = vadd.s32 1, %v8696_v57  ;;  %v354_v56 = vshll.u32 %v314_v61, 8 }
  0x95   :  { %v71_v57 = vshrl.u32 %v70_v62, 23 }
  0x96   :  { %v217_v63 = vsub.s32 32, %v216_v59  ;;  %v219_v1 = vshll.u32 %v11691_v0, %v216_v59  ;;  %v222_v3 = vshll.u32 %v11692_v2, %v216_v59  ;;  %v225_v8 = vshll.u32 %v11693_v7, %v216_v59 }
  0x97   :  { %v228_v11 = vshll.u32 %v11694_v10, %v216_v59  ;;  %v231_v15 = vshll.u32 %v11695_v14, %v216_v59  ;;  %vm234_vm2 = vcmp.lt.s32.totalorder %v215_v58, 1  ;;  %vm235_vm3 = vcmp.lt.s32.totalorder %v215_v58, 2 }
  0x98   :  { %v220_v16 = vshrl.u32 %v11692_v2, %v217_v63  ;;  %v223_v18 = vshrl.u32 %v11693_v7, %v217_v63  ;;  %v226_v19 = vshrl.u32 %v11694_v10, %v217_v63  ;;  %v218_v20 = vshrl.u32 %v11691_v0, %v217_v63 }
  0x99   :  { %v229_v21 = vshrl.u32 %v11695_v14, %v217_v63  ;;  %v232_v23 = vshrl.u32 %v11696_v22, %v217_v63  ;;  %vm236_vm4 = vcmp.lt.s32.totalorder %v215_v58, 3  ;;  %vm317_vm5 = vcmp.gt.s32.totalorder %v316_v4, 0 }
  0x9a   :  { %v221_v24 = vor.u32 %v220_v16, %v219_v1  ;;  %v224_v25 = vor.u32 %v223_v18, %v222_v3  ;;  %v227_v26 = vor.u32 %v226_v19, %v225_v8  ;;  %vm237_vm6 = vcmp.lt.s32.totalorder %v215_v58, 4 }
  0x9b   :  { %v230_v27 = vor.u32 %v229_v21, %v228_v11  ;;  %v233_v28 = vor.u32 %v232_v23, %v231_v15  ;;  %v318_v29 = vsel %vm317_vm5, %v316_v4, 0  ;;  %vm204_vm5 = vcmp.lt.s32.totalorder %v11784_v34, 0 }
  0x9c   :  { %v238_v30 = vsel %vm234_vm2, %v218_v20, %v221_v24  ;;  %v239_v31 = vsel %vm237_vm6, %v227_v26, 2102212464  ;;  %v242_v32 = vsel %vm234_vm2, %v221_v24, %v224_v25  ;;  %v246_v33 = vsel %vm234_vm2, %v224_v25, %v227_v26 }
  0x9d   :  { %v240_v35 = vsel %vm236_vm4, %v224_v25, %v239_v31  ;;  %v243_v36 = vsel %vm237_vm6, %v230_v27, 920167782  ;;  %v247_v37 = vsel %vm237_vm6, %v233_v28, 1326507024  ;;  %v319_v39 = vshrl.u32 %v318_v29, 5 }
  0x9e   :  { %v241_v40 = vsel %vm235_vm3, %v238_v30, %v240_v35  ;;  %v244_v41 = vsel %vm236_vm4, %v227_v26, %v243_v36  ;;  %v248_v42 = vsel %vm236_vm4, %v230_v27, %v247_v37  ;;  %v320_v43 = vand.u32 31, %v318_v29 }
  0x9f   :  { %v245_v45 = vsel %vm235_vm3, %v242_v32, %v244_v41  ;;  %v249_v46 = vsel %vm235_vm3, %v246_v33, %v248_v42  ;;  %v257_v53 = vmul.u32 %v11798_v60, %v241_v40  ;;  %vm338_vm7 = vcmp.lt.s32.totalorder %v319_v39, 1 }
  0xa0   :  { %v11823_v49 = vmul.u32.u64.low %v11798_v60, %v249_v46  ;;  %v11824_v50 = vmul.u32.u64.high %v11798_v60, %v249_v46, %v11823_v49  ;;  %v11827_v51 = vmul.u32.u64.low %v11798_v60, %v245_v45  ;;  %v11828_v52 = vmul.u32.u64.high %v11798_v60, %v245_v45, %v11827_v51 }
  0xa1   :  { %v321_v54 = vsub.s32 32, %v320_v43  ;;  %v323_v59 = vshll.u32 %v11691_v0, %v320_v43  ;;  %v326_v58 = vshll.u32 %v11692_v2, %v320_v43  ;;  %v329_v63 = vshll.u32 %v11693_v7, %v320_v43 }
  0xa2   :  { %v332_v8 = vshll.u32 %v11694_v10, %v320_v43  ;;  %vm259_vm8 = vc.u32 %v11824_v50, %v11827_v51  ;;  %v260_v60 = vadd.s32 1, %v11828_v52  ;;  %v335_v62 = vshll.u32 %v11695_v14, %v320_v43 }
  0xa3   :  { %v324_v1 = vshrl.u32 %v11692_v2, %v321_v54  ;;  %v327_v3 = vshrl.u32 %v11693_v7, %v321_v54  ;;  %v330_v4 = vshrl.u32 %v11694_v10, %v321_v54  ;;  %v333_v61 = vshrl.u32 %v11695_v14, %v321_v54 }
  0xa4   :  { %v336_v18 = vshrl.u32 %v11696_v22, %v321_v54  ;;  %v261_v19 = vsel %vm259_vm8, %v260_v60, %v11828_v52  ;;  %vm340_vm9 = vcmp.lt.s32.totalorder %v319_v39, 3  ;;  %vm341_vm10 = vcmp.lt.s32.totalorder %v319_v39, 4 }
  0xa5   :  { %v325_v11 = vor.u32 %v324_v1, %v323_v59  ;;  %v328_v15 = vor.u32 %v327_v3, %v326_v58  ;;  %v331_v16 = vor.u32 %v330_v4, %v329_v63  ;;  %v334_v20 = vor.u32 %v333_v61, %v332_v8 }
  0xa6   :  { %v262_v21 = vadd.s32 %v261_v19, %v257_v53  ;;  %v322_v23 = vshrl.u32 %v11691_v0, %v321_v54  ;;  %v337_v24 = vor.u32 %v336_v18, %v335_v62  ;;  %v8688_v29 = vadd.s32 4294967169, %v71_v57 }
  0xa7   :  { %v343_v25 = vsel %vm341_vm10, %v331_v16, 2102212464  ;;  %v346_v26 = vsel %vm338_vm7, %v325_v11, %v328_v15  ;;  %v347_v27 = vsel %vm341_vm10, %v334_v20, 920167782  ;;  %v350_v28 = vsel %vm338_vm7, %v328_v15, %v331_v16 }
  0xa8   :  { %v263_v30 = vadd.s32 536870912, %v262_v21  ;;  %vm339_vm11 = vcmp.lt.s32.totalorder %v319_v39, 2  ;;  %v348_v31 = vsel %vm340_vm9, %v331_v16, %v347_v27  ;;  %v351_v32 = vsel %vm341_vm10, %v337_v24, 1326507024 }
  0xa9   :  { %v342_v33 = vsel %vm338_vm7, %v322_v23, %v325_v11  ;;  %v344_v35 = vsel %vm340_vm9, %v328_v15, %v343_v25  ;;  %v349_v36 = vsel %vm339_vm11, %v346_v26, %v348_v31  ;;  %v352_v37 = vsel %vm340_vm9, %v334_v20, %v351_v32 }
  0xaa   :  { %v11853_v40 = vshrl.u32 %v263_v30, 30  ;;  %v353_v41 = vsel %vm339_vm11, %v350_v28, %v352_v37  ;;  %v11855_v42 = vmul.u32.u64.low %v354_v56, %v349_v36  ;;  %v11856_v43 = vmul.u32.u64.high %v354_v56, %v349_v36, %v11855_v42 }
  0xab   :  { %v11859_v45 = vmul.u32.u64.low %v354_v56, %v353_v41  ;;  %v11860_v46 = vmul.u32.u64.high %v354_v56, %v353_v41, %v11859_v45  ;;  %v77_v49 = vadd.s32 1, %v8688_v29  ;;  %v345_v53 = vsel %vm339_vm11, %v342_v33, %v344_v35 }
  0xac   :  { %v265_v52 = vshll.u32 %v11853_v40, 30  ;;  %v364_v57 = vadd.s32 1, %v11856_v43  ;;  %v74_v39 = vand.u32 8388607, %v67_v47  ;;  %v361_v58 = vmul.u32 %v354_v56, %v345_v53 }
  0xad   :  { %vm78_vm12 = vcmp.gt.s32.totalorder %v77_v49, 0  ;;  %vm363_vm13 = vc.u32 %v11860_v46, %v11855_v42  ;;  %v258_v62 = vadd.s32 %v11827_v51, %v11824_v50  ;;  %vm203_vm7 = vcmp.le.f32.partialorder %v202_v38, 0.7853982 }
  0xae   :  { %v266_v54 = vsub.s32 %v262_v21, %v265_v52  ;;  %v79_v59 = vsel %vm78_vm12, %v77_v49, 0  ;;  %v365_v1 = vsel %vm363_vm13, %v364_v57, %v11856_v43  ;;  %v75_v60 = vor.u32 8388608, %v74_v39 }
  0xaf   :  { %v81_v3 = vand.u32 31, %v79_v59  ;;  %v366_v4 = vadd.s32 %v365_v1, %v361_v58  ;;  %v80_v15 = vshrl.u32 %v79_v59, 5  ;;  %vm308_vm8 = vcmp.lt.s32.totalorder %v11788_v44, 0 }
  0xb0   :  { %v268_v63 = vsub.s32 0, %v266_v54  ;;  %v11881_v26 = vshll.u32 %v75_v60, 8  ;;  %vm511_vm9 = vcmask 130048   ;;  %vm11929_vm10 = vcmp.le.f32.partialorder %v306_v48, 0.7853982 }
  0xb1   :  { %v82_v61 = vsub.s32 32, %v81_v3  ;;  %v367_v11 = vadd.s32 536870912, %v366_v4  ;;  %v84_v18 = vshll.u32 %v11691_v0, %v81_v3  ;;  %v87_v21 = vshll.u32 %v11692_v2, %v81_v3 }
  0xb2   :  { %v8693_v8 = vmin.u32 %v268_v63, %v266_v54  ;;  %v93_v50 = vshll.u32 %v11694_v10, %v81_v3  ;;  %v90_v30 = vshll.u32 %v11693_v7, %v81_v3  ;;  %vm99_vm15 = vcmp.lt.s32.totalorder %v80_v15, 1 }
  0xb3   :  { %v85_v56 = vshrl.u32 %v11692_v2, %v82_v61  ;;  %v88_v19 = vshrl.u32 %v11693_v7, %v82_v61  ;;  %v11874_v20 = vshrl.u32 %v367_v11, 30  ;;  %v91_v23 = vshrl.u32 %v11694_v10, %v82_v61 }
  0xb4   :  { %v270_v16 = vclz %v8693_v8  ;;  %v94_v24 = vshrl.u32 %v11695_v14, %v82_v61  ;;  %v97_v51 = vshrl.u32 %v11696_v22, %v82_v61  ;;  %v96_v2 = vshll.u32 %v11695_v14, %v81_v3 }
  0xb5   :  { %v369_v27 = vshll.u32 %v11874_v20, 30  ;;  %v86_v28 = vor.u32 %v85_v56, %v84_v18  ;;  %v89_v29 = vor.u32 %v88_v19, %v87_v21  ;;  %v92_v35 = vor.u32 %v91_v23, %v90_v30 }
  0xb6   :  { %v8694_v25 = vadd.s32 4294967294, %v270_v16  ;;  %v95_v31 = vor.u32 %v94_v24, %v93_v50  ;;  %vm100_vm1 = vcmp.lt.s32.totalorder %v80_v15, 2  ;;  %v98_v22 = vor.u32 %v97_v51, %v96_v2 }
  0xb7   :  { %v370_v33 = vsub.s32 %v366_v4, %v369_v27  ;;  %vm101_vm2 = vcmp.lt.s32.totalorder %v80_v15, 3  ;;  %v83_v41 = vshrl.u32 %v11691_v0, %v82_v61  ;;  %vm102_vm3 = vcmp.lt.s32.totalorder %v80_v15, 4 }
  0xb8   :  { %vm8695_vm14 = vcmp.lt.s32.totalorder %v8694_v25, 0  ;;  %v107_v43 = vsel %vm99_vm15, %v86_v28, %v89_v29  ;;  %v108_v52 = vsel %vm102_vm3, %v95_v31, 920167782  ;;  %v104_v53 = vsel %vm102_vm3, %v92_v35, 2102212464 }
  0xb9   :  { %v273_v32 = vsel %vm8695_vm14, 0, %v8694_v25  ;;  %v372_v37 = vsub.s32 0, %v370_v33  ;;  %v109_v57 = vsel %vm101_vm2, %v92_v35, %v108_v52  ;;  %v111_v39 = vsel %vm99_vm15, %v89_v29, %v92_v35 }
  0xba   :  { %v274_v10 = vsub.s32 32, %v273_v32  ;;  %v278_v36 = vsub.s32 4294967266, %v273_v32  ;;  %v275_v7 = vshll.u32 %v266_v54, %v273_v32  ;;  %v110_v63 = vsel %vm100_vm1, %v107_v43, %v109_v57 }
  0xbb   :  { %v8697_v14 = vmin.u32 %v372_v37, %v370_v33  ;;  %v112_v1 = vsel %vm102_vm3, %v98_v22, 1326507024  ;;  %v11893_v4 = vmul.u32.u64.low %v11881_v26, %v110_v63  ;;  %v11894_v54 = vmul.u32.u64.high %v11881_v26, %v110_v63, %v11893_v4 }
  0xbc   :  { %v276_v45 = vshrl.u32 %v258_v62, %v274_v10  ;;  %v279_v49 = vadd.s32 127, %v278_v36  ;;  %v113_v0 = vsel %vm101_vm2, %v95_v31, %v112_v1  ;;  %v103_v60 = vsel %vm99_vm15, %v83_v41, %v86_v28 }
  0xbd   :  { %v374_v3 = vclz %v8697_v14  ;;  %v105_v61 = vsel %vm101_vm2, %v89_v29, %v104_v53  ;;  %v114_v62 = vsel %vm100_vm1, %v111_v39, %v113_v0  ;;  %v125_v23 = vadd.s32 1, %v11894_v54 }
  0xbe   :  { %v277_v59 = vor.u32 %v276_v45, %v275_v7  ;;  %v280_v58 = vshll.u32 %v279_v49, 23  ;;  %v11901_v16 = vmul.u32.u64.low %v11881_v26, %v114_v62  ;;  %v11902_v18 = vmul.u32.u64.high %v11881_v26, %v114_v62, %v11901_v16 }
  0xbf   :  { %v8698_v11 = vadd.s32 4294967294, %v374_v3  ;;  %v106_v21 = vsel %vm100_vm1, %v103_v60, %v105_v61  ;;  %v288_v25 = vsub.s32 4, %v11853_v40  ;;  %v362_v51 = vadd.s32 %v11855_v42, %v11860_v46 }
  0xc0   :  { %v281_v8 = vor.u32 4788187, %v280_v58  ;;  %v284_v19 = vcvt.s32.f32 %v277_v59  ;;  %v122_v30 = vmul.u32 %v11881_v26, %v106_v21  ;;  %vm124_vm6 = vc.u32 %v11902_v18, %v11893_v4  ;;  %v410_v59 = vld [vmem:[%s14603_s3] sm:$0xff] }
  0xc1   :  { %vm8699_vm4 = vcmp.lt.s32.totalorder %v8698_v11, 0  ;;  %v126_v32 = vsel %vm124_vm6, %v125_v23, %v11894_v54  ;;  %v289_v42 = vsel %vm204_vm5, %v288_v25, %v11853_v40  ;;  %v392_v38 = vsub.s32 4, %v11874_v20 }
  0xc2   :  { %v282_v56 = vand.u32 2147483647, %v281_v8  ;;  %v377_v50 = vsel %vm8699_vm4, 0, %v8698_v11  ;;  %v127_v46 = vadd.s32 %v126_v32, %v122_v30  ;;  %v291_v37 = vsel %vm203_vm7, 0, %v289_v42 }
  0xc3   :  { %v378_v27 = vsub.s32 32, %v377_v50  ;;  %v382_v28 = vsub.s32 4294967266, %v377_v50  ;;  %v379_v15 = vshll.u32 %v370_v33, %v377_v50  ;;  %v295_v45 = vadd.s32 3, %v291_v37 }
  0xc4   :  { %v285_v24 = vmul.f32 %v284_v19, %v282_v56  ;;  %v128_v26 = vadd.s32 536870912, %v127_v46  ;;  %v393_v57 = vsel %vm308_vm8, %v392_v38, %v11874_v20  ;;  %v513_v60 = vsel %vm511_vm9, %v410_v59, 0 }
  0xc5   :  { %v380_v31 = vshrl.u32 %v362_v51, %v378_v27  ;;  %v383_v2 = vadd.s32 127, %v382_v28  ;;  %v296_v53 = vand.u32 3, %v295_v45  ;;  %v395_v54 = vsel %vm11929_vm10, 0, %v393_v57 }
  0xc6   :  { %v286_v29 = vxor.u32 2147483648, %v285_v24  ;;  %v11918_v41 = vshrl.u32 %v128_v26, 30  ;;  %v399_v56 = vadd.s32 3, %v395_v54  ;;  %v11938_v21 = vand.u32 4294901760, %v513_v60 }
  0xc7   :  { %v381_v36 = vor.u32 %v380_v31, %v379_v15  ;;  %v384_v22 = vshll.u32 %v383_v2, 23  ;;  %vm301_vm11 = vcmp.eq.s32.totalorder %v296_v53, 2  ;;  %vm298_vm12 = vcmp.eq.s32.totalorder %v296_v53, 0 }
  0xc8   :  { %v287_v35 = vsel %vm204_vm5, %v286_v29, %v285_v24  ;;  %v130_v49 = vshll.u32 %v11918_v41, 30  ;;  %vm297_vm13 = vcmp.lt.s32.totalorder %v296_v53, 2  ;;  %14822 = vst [vmem:[#allocation3_spill] sm:$0xff] %v11938_v21  ;;  %vm294_vm15 = vweird.f32 %v11784_v34 }
  0xc9   :  { %v290_v10 = vsel %vm203_vm7, %v11784_v34, %v287_v35  ;;  %v385_v33 = vor.u32 4788187, %v384_v22  ;;  %v388_v7 = vcvt.s32.f32 %v381_v36  ;;  %v123_v25 = vadd.s32 %v11893_v4, %v11902_v18 }
  0xca   :  { %11674 = vcosq.f32 %v290_v10  ;;  %v131_v52 = vsub.s32 %v127_v46, %v130_v49  ;;  %v400_v27 = vand.u32 3, %v399_v56  ;;  %v11944_v28 = vsub.f32 %v513_v60, %v11938_v21  ;;  %v12018_v56 = vld [vmem:[%s14604_s6 + $0x108] sm:$0xff] }
  0xcb   :  { %11676 = vsinq.f32 %v290_v10  ;;  %v386_v43 = vand.u32 2147483647, %v385_v33  ;;  %vm398_vm4 = vweird.f32 %v11788_v44  ;;  %vm11972_vm5 = vcmp.le.f32.partialorder %v67_v47, 0.7853982 }
  0xcc   :  { %v133_v39 = vsub.s32 0, %v131_v52  ;;  %14823 = vst [vmem:[#allocation4_spill] sm:$0xff] %v11944_v28  ;;  %vm405_vm1 = vcmp.eq.s32.totalorder %v400_v27, 2  ;;  %v11949_v4 = vand.u32 4294901760, %v11944_v28  ;;  %vm402_vm2 = vcmp.eq.s32.totalorder %v400_v27, 0 }
  0xcd   :  { %v389_v40 = vmul.f32 %v388_v7, %v386_v43  ;;  %vm401_vm3 = vcmp.lt.s32.totalorder %v400_v27, 2  ;;  %vm69_vm6 = vcmp.lt.s32.totalorder %v11796_v55, 0 }
  0xce   :  { %v8689_v0 = vmin.u32 %v133_v39, %v131_v52  ;;  %14825 = vst [vmem:[#allocation6_spill] sm:$0xff] %v11949_v4  ;;  %v585_v7 = vsub.f32 %v11944_v28, %v11949_v4 }
  0xcf   :  { %v390_v14 = vxor.u32 2147483648, %v389_v40 }
  0xd0   :  { %v135_v61 = vclz %v8689_v0  ;;  %v11977_v57 = vand.u32 4294901760, %v585_v7 }
  0xd1   :  { %v391_v63 = vsel %vm308_vm8, %v390_v14, %v389_v40  ;;  %v153_v40 = vsub.s32 4, %v11918_v41 }
  0xd2   :  { %v394_v3 = vsel %vm11929_vm10, %v11788_v44, %v391_v63  ;;  %v8690_v11 = vadd.s32 4294967294, %v135_v61  ;;  %14832 = vst [vmem:[#allocation11_spill] sm:$0xff] %v11977_v57  ;;  %vm159_vm10 = vweird.f32 %v11796_v55 }
  0xd3   :  { %11678 = vcosq.f32 %v394_v3  ;;  %v154_v63 = vsel %vm69_vm6, %v153_v40, %v11918_v41 }
  0xd4   :  { %v11675_v1 = vpop.eup %11674  ;;  %11680 = vsinq.f32 %v394_v3  ;;  %vm8691_vm14 = vcmp.lt.s32.totalorder %v8690_v11, 0  ;;  %v156_v3 = vsel %vm11972_vm5, 0, %v154_v63 }
  0xd5   :  { %v11677_v20 = vpop.eup %11676  ;;  %v302_v8 = vxor.u32 2147483648, %v11675_v1  ;;  %v138_v23 = vsel %vm8691_vm14, 0, %v8690_v11  ;;  %v160_v54 = vadd.s32 3, %v156_v3  ;;  %v12013_v11 = vld [vmem:[%s14604_s6 + $0x100] sm:$0xff] }
  0xd6   :  { %v299_v48 = vxor.u32 2147483648, %v11677_v20  ;;  %v139_v50 = vsub.s32 32, %v138_v23  ;;  %v143_v51 = vsub.s32 4294967266, %v138_v23  ;;  %v140_v29 = vshll.u32 %v131_v52, %v138_v23 }
  0xd7   :  { %v303_v62 = vsel %vm301_vm11, %v302_v8, %v11677_v20  ;;  %v161_v8 = vand.u32 3, %v160_v54  ;;  %vm974_vm11 = vcmask 64512   ;;  %v12126_v54 = vld [vmem:[%s14604_s6 + $0x90] sm:$0xff] }
  0xd8   :  { %v300_v16 = vsel %vm298_vm12, %v11675_v1, %v299_v48  ;;  %v141_v30 = vshrl.u32 %v123_v25, %v139_v50  ;;  %v144_v15 = vadd.s32 127, %v143_v51  ;;  %v1547_v50 = vand.u32 4294901760, %v12018_v56 }
  0xd9   :  { %v304_v19 = vsel %vm297_vm13, %v300_v16, %v303_v62  ;;  %vm166_vm7 = vcmp.eq.s32.totalorder %v161_v8, 2  ;;  %vm163_vm8 = vcmp.eq.s32.totalorder %v161_v8, 0  ;;  %vm162_vm9 = vcmp.lt.s32.totalorder %v161_v8, 2  ;;  %v12133_v8 = vld [vmem:[%s14604_s6 + $0x98] sm:$0xff] }
  0xda   :  { %v305_v24 = vsel %vm294_vm15, nan, %v304_v19  ;;  %v142_v35 = vor.u32 %v141_v30, %v140_v29  ;;  %v145_v34 = vshll.u32 %v144_v15, 23  ;;  %v411_v29 = vld [vmem:[%s14605_s4] sm:$0xff]  ;;  %v12044_v15 = vsub.f32 %v12018_v56, %v1547_v50 }
  0xdb   :  { %v11946_v31 = vand.u32 4294901760, %v305_v24  ;;  %vm5580_vm12 = vcmask 261120  }
  0xdc   :  { %v146_v18 = vor.u32 4788187, %v145_v34  ;;  %v149_v37 = vcvt.s32.f32 %v142_v35  ;;  %v12059_v35 = vld [vmem:[%s14604_s6 + $0x110] sm:$0xff]  ;;  %v12064_v34 = vld [vmem:[%s14604_s6 + $0x118] sm:$0xff] }
  0xdd   :  { %14824 = vst [vmem:[#allocation5_spill] sm:$0xff] %v11946_v31  ;;  %v11679_v2 = vpop.eup %11678  ;;  %v11952_v36 = vsub.f32 %v305_v24, %v11946_v31  ;;  %v1544_v24 = vand.u32 4294901760, %v12013_v11  ;;  %v14616_v7 = vand.u32 4294901760, %v12064_v34 }
  0xde   :  { %v11681_v32 = vpop.eup %11680  ;;  %v406_v42 = vxor.u32 2147483648, %v11679_v2  ;;  %v147_v26 = vand.u32 2147483647, %v146_v18  ;;  %v412_v18 = vld [vmem:[%s14605_s4 + $0x8] sm:$0xff] }
  0xdf   :  { %v403_v46 = vxor.u32 2147483648, %v11681_v32  ;;  %14826 = vst [vmem:[#allocation7_spill] sm:$0xff] %v11952_v36  ;;  %v11960_v49 = vand.u32 4294901760, %v11952_v36  ;;  %v979_v53 = vsel %vm974_vm11, %v412_v18, 0  ;;  %v12117_v3 = vsub.f32 %v12064_v34, %v14616_v7 }
  0xe0   :  { %v407_v10 = vsel %vm405_vm1, %v406_v42, %v11681_v32  ;;  %v150_v45 = vmul.f32 %v149_v37, %v147_v26  ;;  %v12054_v32 = vld [vmem:[%s14604_s6 + $0x88] sm:$0xff]  ;;  %v14621_v18 = vand.u32 4294901760, %v12133_v8 }
  0xe1   :  { %v404_v22 = vsel %vm402_vm2, %v11679_v2, %v403_v46  ;;  %14828 = vst [vmem:[#allocation9_spill] sm:$0xff] %v11960_v49  ;;  %v596_v59 = vsub.f32 %v11952_v36, %v11960_v49  ;;  %v12049_v2 = vld [vmem:[%s14604_s6 + $0x80] sm:$0xff]  ;;  %v976_v46 = vsel %vm974_vm11, %v411_v29, 0  ;;  %v14623_v26 = vand.u32 4294901760, %v12054_v32 }
  0xe2   :  { %v408_v33 = vsel %vm401_vm3, %v404_v22, %v407_v10  ;;  %v151_v52 = vxor.u32 2147483648, %v150_v45  ;;  %v14624_v22 = vand.u32 4294901760, %v12049_v2 }
  0xe3   :  { %v409_v43 = vsel %vm398_vm4, nan, %v408_v33  ;;  %v11995_v0 = vand.u32 4294901760, %v596_v59  ;;  %v14612_v33 = vand.u32 4294901760, %v12044_v15  ;;  %v12102_v63 = vsub.f32 %v12054_v32, %v14623_v26 }
  0xe4   :  { %v11957_v38 = vand.u32 4294901760, %v409_v43  ;;  %v152_v39 = vsel %vm69_vm6, %v151_v52, %v150_v45  ;;  %v12081_v45 = vand.u32 4294901760, %v976_v46  ;;  %v12097_v59 = vsub.f32 %v12049_v2, %v14624_v22 }
  0xe5   :  { %v155_v47 = vsel %vm11972_vm5, %v11796_v55, %v152_v39  ;;  %14834 = vst [vmem:[#allocation13_spill] sm:$0xff] %v11995_v0  ;;  %v12035_v55 = vsub.f32 %v12013_v11, %v1544_v24  ;;  %v12237_v11 = vld [vmem:[%s14604_s6 + $0xb8] sm:$0xff] }
  0xe6   :  { %14827 = vst [vmem:[#allocation8_spill] sm:$0xff] %v11957_v38  ;;  %v11965_v14 = vpack.c.bf16 %v11957_v38, %v11946_v31  ;;  %v11968_v44 = vsub.f32 %v409_v43, %v11957_v38  ;;  %11682 = vcosq.f32 %v155_v47  ;;  %v14617_v43 = vand.u32 4294901760, %v12059_v35  ;;  %14839 = vst [vmem:[#allocation18_spill] sm:$0xff] %v12081_v45 }
  0xe7   :  { %11684 = vsinq.f32 %v155_v47  ;;  %v14615_v10 = vand.u32 4294901760, %v12035_v55  ;;  %v1730_v47 = vsub.f32 %v12044_v15, %v14612_v33  ;;  %v12190_v33 = vld [vmem:[%s14604_s6 + $0x130] sm:$0xff] }
  0xe8   :  { %14829 = vst [vmem:[#allocation10_spill] sm:$0xff] %v11968_v44  ;;  %10538 = vmatpush3.bf16.msra.mxu0 %v11965_v14  ;;  %v11983_v58 = vand.u32 4294901760, %v11968_v44  ;;  %v10543_v60 = vpack.c.bf16 %v11968_v44, %v11952_v36 }
  0xe9   :  { %10539 = vmatprep.subr.bf16.mxu0 %v14610_v5  ;;  %v1723_v39 = vsub.f32 %v12035_v55, %v14615_v10 }
  0xea   :  { %14833 = vst [vmem:[#allocation12_spill] sm:$0xff] %v11983_v58  ;;  %v603_v1 = vsub.f32 %v11968_v44, %v11983_v58  ;;  %v10549_v40 = vpack.c.bf16 %v11983_v58, %v11960_v49  ;;  %v14856_v58 = vand.u32 4294901760, %v12237_v11 }
  0xeb   :  { %9611 = vmatmul.mubr.f32.vlgmr.msra.gmra.mrb[0].mxu0 %v11977_v57 }
  0xec   :  { %v11997_v20 = vand.u32 4294901760, %v603_v1  ;;  %9617 = vmatprep.mubr.msk.f32.mxu0 %vm11689_vm0, %v14627_v6  ;;  %v12112_v1 = vsub.f32 %v12059_v35, %v14617_v43  ;;  %v12209_v43 = vld [vmem:[%s14604_s6 + $0x138] sm:$0xff]  ;;  %v12319_v49 = vsub.f32 %v12237_v11, %v14856_v58 }
  0xed   :  { %v14630_v26 = vand.u32 4294901760, %v12209_v43 }
  0xee   :  { %14835 = vst [vmem:[#allocation14_spill] sm:$0xff] %v11997_v20  ;;  %v10540_v41 = vpack.c.bf16 %v11997_v20, %v11995_v0 }
  0xf0   :  { %10541 = vmatpush3.bf16.msra.mxu0 %v10540_v41  ;;  %v11683_v61 = vpop.eup %11682  ;;  %v12121_v41 = vand.u32 4294901760, %v979_v53 }
  0xf1   :  { %10542 = vmatprep.subr.bf16.mxu0 %v14610_v5  ;;  %v11685_v48 = vpop.eup %11684  ;;  %v167_v62 = vxor.u32 2147483648, %v11683_v61 }
  0xf2   :  { %v164_v16 = vxor.u32 2147483648, %v11685_v48  ;;  %14840 = vst [vmem:[#allocation19_spill] sm:$0xff] %v12121_v41  ;;  %v12151_v29 = vsub.f32 %v979_v53, %v12121_v41 }
  0xf3   :  { %9618 = vmatmul.mubr.f32.vlgmr.msra.gmra.mrb[0].mxu0 %v11938_v21  ;;  %v168_v19 = vsel %vm166_vm7, %v167_v62, %v11685_v48  ;;  %v14613_v48 = vand.u32 4294901760, %v12097_v59  ;;  %v14614_v62 = vand.u32 4294901760, %v12102_v63 }
  0xf4   :  { %10544 = vmatpush3.bf16.msra.mxu0 %v10543_v60  ;;  %9624 = vmatprep.mubr.msk.f32.mxu0 %vm11689_vm0, %v14627_v6  ;;  %v165_v23 = vsel %vm163_vm8, %v11683_v61, %v164_v16  ;;  %v12138_v60 = vld [vmem:[%s14604_s6 + $0x120] sm:$0xff]  ;;  %v1724_v61 = vand.u32 4294901760, %v1723_v39  ;;  %v1731_v16 = vand.u32 4294901760, %v1730_v47  ;;  %14842 = vst [vmem:[#allocation21_spill] sm:$0xff] %v12151_v29 }
  0xf5   :  { %10545 = vmatprep.subr.bf16.mxu0 %v14610_v5  ;;  %v169_v25 = vsel %vm162_vm9, %v165_v23, %v168_v19  ;;  %v14619_v19 = vand.u32 4294901760, %v12112_v1  ;;  %v14618_v23 = vand.u32 4294901760, %v12117_v3  ;;  %v1611_v53 = vsub.f32 %v12097_v59, %v14613_v48 }
  0xf6   :  { %v170_v51 = vsel %vm159_vm10, nan, %v169_v25  ;;  %v14620_v25 = vand.u32 4294901760, %v12126_v54  ;;  %v1618_v47 = vsub.f32 %v12102_v63, %v14614_v62  ;;  %v12193_v48 = vpack.c.bf16 %v1731_v16, %v1724_v61  ;;  %v12214_v61 = vld [vmem:[%s14604_s6 + $0xb0] sm:$0xff] }
  0xf7   :  { %v12023_v27 = vand.u32 4294901760, %v170_v51  ;;  %v1737_v62 = vsub.f32 %v12112_v1, %v14619_v19  ;;  %v1744_v10 = vsub.f32 %v12117_v3, %v14618_v23  ;;  %v12221_v16 = vpack.c.bf16 %v1547_v50, %v1544_v24 }
  0xf8   :  { %v12204_v7 = vsub.f32 %v12126_v54, %v14620_v25  ;;  %v12226_v23 = vsub.f32 %v12133_v8, %v14621_v18  ;;  %v1619_v19 = vand.u32 4294901760, %v1618_v47  ;;  %v14845_v50 = vand.u32 4294901760, %v12049_v2 }
  0xf9   :  { %14836 = vst [vmem:[#allocation15_spill] sm:$0xff] %v12023_v27  ;;  %v12038_v30 = vsub.f32 %v170_v51, %v12023_v27  ;;  %v12148_v51 = vsub.f32 %v976_v46, %v12081_v45  ;;  %v12166_v46 = vand.u32 4294901760, %v12151_v29  ;;  %v14846_v18 = vand.u32 4294901760, %v12054_v32 }
  0xfa   :  { %v14857_v44 = vand.u32 4294901760, %v12226_v23 }
  0xfb   :  { %9625 = vmatmul.mubr.f32.vlgmr.msra.gmra.mrb[0].mxu0 %v11944_v28  ;;  %14837 = vst [vmem:[#allocation16_spill] sm:$0xff] %v12038_v30  ;;  %v12067_v42 = vand.u32 4294901760, %v12038_v30  ;;  %14841 = vst [vmem:[#allocation20_spill] sm:$0xff] %v12148_v51  ;;  %v12163_v39 = vand.u32 4294901760, %v12148_v51  ;;  %v1745_v28 = vand.u32 4294901760, %v1744_v10  ;;  %v12256_v24 = vpack.c.bf16 %v14846_v18, %v14845_v50 }
  0xfc   :  { %10547 = vmatpush3.bf16.msra.mxu0 %v11965_v14  ;;  %9631 = vmatprep.mubr.msk.f32.mxu0 %vm11689_vm0, %v14627_v6  ;;  %14844 = vst [vmem:[#allocation23_spill] sm:$0xff] %v12166_v46  ;;  %v14852_v50 = vand.u32 4294901760, %v12190_v33 }
  0xfd   :  { %10548 = vmatprep.subr.bf16.mxu0 %v14610_v5  ;;  %14838 = vst [vmem:[#allocation17_spill] sm:$0xff] %v12067_v42  ;;  %v1079_v37 = vsub.f32 %v12038_v30, %v12067_v42  ;;  %14843 = vst [vmem:[#allocation22_spill] sm:$0xff] %v12163_v39  ;;  %v1051_v56 = vsub.f32 %v12148_v51, %v12163_v39 }
  0xfe   :  { %14847 = vst [vmem:[#allocation24_spill] sm:$0xff] %v12256_v24  ;;  %v12280_v47 = vsub.f32 %v12190_v33, %v14852_v50  ;;  %v12299_v50 = vld [vmem:[%s14604_s6 + $0x140] sm:$0xff] }
  0xff   :  { %v12085_v52 = vand.u32 4294901760, %v1079_v37  ;;  %v14622_v37 = vand.u32 4294901760, %v12138_v60 }
 0x101   :  { %1081 = vmatpush1.msra.mxu1 %v12085_v52  ;;  %v12232_v25 = vsub.f32 %v12138_v60, %v14622_v37  ;;  %v1612_v37 = vand.u32 4294901760, %v1611_v53  ;;  %v14854_v53 = vand.u32 4294901760, %v12214_v61 }
 0x102   :  { %1146 = vmatmul.mubr.f32.vlgmr.msra.gmra.mrb[0].mxu1 %v12081_v45  ;;  %1161 = vmatprep.subr.mxu1 %v11774_v12 }
 0x103   :  { %9632 = vmatmul.mubr.f32.vlgmr.msra.gmra.mrb[0].mxu0 %v11949_v4  ;;  %1164 = vmatpush1.msra.mxu1 %v12038_v30  ;;  %v1738_v4 = vand.u32 4294901760, %v1737_v62  ;;  %v14849_v62 = vmov 0.0  }
 0x104   :  { %10550 = vmatpush3.bf16.msra.mxu0 %v10549_v40  ;;  %9638 = vmatprep.mubr.msk.f32.mxu0 %vm11689_vm0, %v14627_v6  ;;  %v12160_v40 = vld [vmem:[%s14604_s6 + $0x128] sm:$0xff] }
 0x105   :  { %10551 = vmatprep.subr.bf16.mxu0 %v14610_v5  ;;  %1151 = vmatprep.mubr.f32.mxu1 %v14627_v6  ;;  %v12180_v5 = vld [vmem:[%s14604_s6 + $0xa0] sm:$0xff]  ;;  %v14848_v22 = vand.u32 4294901760, %v12160_v40 }
 0x106   :  { %1245 = vmatprep.subr.mxu1 %v11768_v9  ;;  %1153 = vmatmul.mubr.f32.gmra.mrb[2].mxu1 %v12121_v41 }
 0x107   :  { %1227 = vmatprep.mubr.f32.mxu1 %v14627_v6  ;;  %v12263_v10 = vsub.f32 %v12160_v40, %v14848_v22  ;;  %v12284_v22 = vand.u32 4294901760, %v1051_v56  ;;  %v12304_v56 = vld [vmem:[%s14604_s6 + $0x148] sm:$0xff] }
 0x108   :  { %v14873_v38 = vand.u32 4294901760, %v12304_v56 }
 0x109   :  { %14853 = vst [vmem:[#allocation25_spill] sm:$0xff] %v12284_v22 }
 0x10a   :  { %1230 = vmatmul.mubr.f32.vlgmr.msra.gmra.mrb[0].mxu1 %v12148_v51  ;;  %v14850_v51 = vand.u32 4294901760, %v12180_v5 }
 0x10b   :  { %9639 = vmatmul.mubr.f32.vlgmr.msra.gmra.mrb[0].mxu0 %v11938_v21  ;;  %1247 = vmatpush1.msra.mxu1 %v12023_v27 }
 0x10c   :  { %10553 = vmatpush3.bf16.msra.mxu0 %v11965_v14  ;;  %9645 = vmatprep.mubr.msk.f32.mxu0 %vm11689_vm0, %v14627_v6  ;;  %v12185_v14 = vld [vmem:[%s14604_s6 + $0xa8] sm:$0xff]  ;;  %v12270_v2 = vsub.f32 %v12180_v5, %v14850_v51  ;;  %v12289_v51 = vsub.f32 %v12209_v43, %v14630_v26  ;;  %v12308_v26 = vpack.c.bf16 %v1619_v19, %v1612_v37  ;;  %v14858_v37 = vand.u32 4294901760, %v12059_v35 }
 0x10d   :  { %982 = vmatprep.subr.mxu0 %v11768_v9  ;;  %1235 = vmatprep.mubr.f32.mxu1 %v14627_v6  ;;  %v14851_v32 = vand.u32 4294901760, %v12185_v14  ;;  %v1062_v6 = vsub.f32 %v12151_v29, %v12166_v46  ;;  %v1632_v19 = vsub.f32 %v12226_v23, %v14857_v44  ;;  %v14863_v35 = vand.u32 4294901760, %v12126_v54 }
 0x10e   :  { %1332 = vmatprep.subr.mxu1 %v11777_v13  ;;  %1238 = vmatmul.mubr.f32.gmra.mrb[2].mxu1 %v12151_v29  ;;  %v14861_v29 = vand.u32 4294901760, %v12232_v25  ;;  %v14877_v20 = vand.u32 4294901760, %v12185_v14 }
 0x10f   :  { %1310 = vmatprep.mubr.f32.mxu1 %v14849_v62  ;;  %v12275_v18 = vsub.f32 %v12185_v14, %v14851_v32  ;;  %v12294_v32 = vsub.f32 %v12214_v61, %v14854_v53  ;;  %v14855_v53 = vand.u32 4294901760, %v12204_v7  ;;  %v12353_v36 = vand.u32 4294901760, %v1062_v6 }
 0x110   :  { %v1633_v58 = vand.u32 4294901760, %v1632_v19  ;;  %v12383_v19 = vld [vmem:[%s14604_s6 + $0x150] sm:$0xff] }
 0x111   :  { %v1625_v57 = vsub.f32 %v12204_v7, %v14855_v53  ;;  %v12334_v53 = vsub.f32 %v12232_v25, %v14861_v29  ;;  %14862 = vst [vmem:[#allocation27_spill] sm:$0xff] %v12353_v36 }
 0x112   :  { %1314 = vmatmul.mubr.f32.vlgmr.msra.gmra.mrb[0].mxu1 %v12163_v39  ;;  %v12340_v39 = vld [vmem:[%s14604_s6 + $0xc0] sm:$0xff] }
 0x113   :  { %9646 = vmatmul.mubr.f32.vlgmr.msra.gmra.mrb[0].mxu0 %v11938_v21  ;;  %v12311_v21 = vpack.c.bf16 %v1745_v28, %v1738_v4  ;;  %v14859_v28 = vand.u32 4294901760, %v12064_v34  ;;  %1336 = vmatpush1.msra.mxu1 %v12067_v42  ;;  %v1626_v44 = vand.u32 4294901760, %v1625_v57  ;;  %v14864_v34 = vand.u32 4294901760, %v12133_v8 }
 0x114   :  { %984 = vmatpush1.msra.mxu0 %v12023_v27  ;;  %1047 = vmatprep.mubr.f32.mxu0 %v14849_v62  ;;  %v1752_v6 = vand.u32 4294901760, %v12334_v53  ;;  %v14866_v57 = vand.u32 4294901760, %v12263_v10  ;;  %v14867_v8 = vand.u32 4294901760, %v12138_v60  ;;  %v14870_v53 = vand.u32 4294901760, %v12270_v2 }
 0x115   :  { %10555 = vmatprep.subr.bf16.mxu0 %v12221_v16  ;;  %v12329_v4 = vpack.c.bf16 %v14859_v28, %v14858_v37  ;;  %1319 = vmatprep.mubr.f32.mxu1 %v14849_v62  ;;  %v12360_v29 = vpack.c.bf16 %v14864_v34, %v14863_v35  ;;  %v14868_v35 = vand.u32 4294901760, %v12160_v40  ;;  %v14871_v60 = vand.u32 4294901760, %v12275_v18  ;;  %v12405_v37 = vld [vmem:[%s14604_s6 + $0x158] sm:$0xff] }
 0x116   :  { %1415 = vmatprep.subr.mxu1 %v11768_v9  ;;  %1323 = vmatmul.mubr.f32.gmra.mrb[2].mxu1 %v12166_v46  ;;  %v1758_v54 = vsub.f32 %v12263_v10, %v14866_v57  ;;  %v1639_v57 = vsub.f32 %v12270_v2, %v14870_v53  ;;  %v12400_v28 = vsub.f32 %v12304_v56, %v14873_v38  ;;  %v14874_v53 = vand.u32 4294901760, %v12280_v47 }
 0x117   :  { %14860 = vst [vmem:[#allocation26_spill] sm:$0xff] %v12329_v4  ;;  %1053 = vmatmul.mubr.f32.vlgmr.msra.gmra.mrb[2].mxu0 %v12284_v22  ;;  %14865 = vst [vmem:[#allocation28_spill] sm:$0xff] %v12360_v29  ;;  %v12375_v34 = vpack.c.bf16 %v14868_v35, %v14867_v8  ;;  %v438_v22 = vld [vmem:[%s14604_s6 + $0xc8] sm:$0xff]  ;;  %1399 = vmatprep.mubr.f32.mxu1 %v14849_v62  ;;  %v1646_v40 = vsub.f32 %v12275_v18, %v14871_v60  ;;  %v14872_v8 = vand.u32 4294901760, %v12299_v50 }
 0x118   :  { %10557 = vmatpush3.bf16.msra.mxu0 %v12256_v24  ;;  %1058 = vmatprep.mubr.f32.mxu0 %v14849_v62  ;;  %v1765_v46 = vsub.f32 %v12280_v47, %v14874_v53  ;;  %v14875_v60 = vand.u32 4294901760, %v12289_v51  ;;  %v14879_v38 = vand.u32 4294901760, %v12294_v32  ;;  %v14880_v53 = vand.u32 4294901760, %v12319_v49 }
 0x119   :  { %10559 = vmatprep.subr.bf16.mxu0 %v12329_v4  ;;  %14869 = vst [vmem:[#allocation29_spill] sm:$0xff] %v12375_v34  ;;  %v12395_v35 = vsub.f32 %v12299_v50, %v14872_v8  ;;  %v14876_v8 = vand.u32 4294901760, %v12180_v5  ;;  %v1523_v4 = vand.u32 4294901760, %v438_v22  ;;  %v12435_v14 = vpack.c.bf16 %v1633_v58, %v1626_v44 }
 0x11a   :  { %v1772_v31 = vsub.f32 %v12289_v51, %v14875_v60  ;;  %v1653_v42 = vsub.f32 %v12294_v32, %v14879_v38  ;;  %v1660_v30 = vsub.f32 %v12319_v49, %v14880_v53  ;;  %v14881_v60 = vand.u32 4294901760, %v12340_v39  ;;  %1401 = vmatmul.mubr.f32.vlgmr.msra.gmra.mrb[0].mxu1 %v12081_v45 }
 0x11b   :  { %v12417_v0 = vpack.c.bf16 %v14877_v20, %v14876_v8  ;;  %1064 = vmatmul.mubr.f32.gmra.mrb[4].mxu0 %v12353_v36  ;;  %v1574_v20 = vand.u32 4294901760, %v12383_v19  ;;  %v1759_v8 = vand.u32 4294901760, %v1758_v54  ;;  %v14882_v38 = vand.u32 4294901760, %v12190_v33  ;;  %1417 = vmatpush1.msra.mxu1 %v12023_v27  ;;  %v439_v33 = vld [vmem:[%s14604_s6 + $0xd0] sm:$0xff] }
 0x11c   :  { %10561 = vmatpush3.bf16.msra.mxu0 %v12360_v29  ;;  %v12430_v5 = vsub.f32 %v12340_v39, %v14881_v60  ;;  %1596 = vmatprep.mubr.f32.mxu0 %v11781_v17  ;;  %v14883_v53 = vand.u32 4294901760, %v12209_v43  ;;  %v1577_v60 = vand.u32 4294901760, %v12405_v37  ;;  %v1640_v17 = vand.u32 4294901760, %v1639_v57  ;;  %v440_v43 = vld [vmem:[%s14604_s6 + $0xd8] sm:$0xff] }
 0x11d   :  { %14878 = vst [vmem:[#allocation30_spill] sm:$0xff] %v12417_v0  ;;  %10563 = vmatprep.subr.bf16.mxu0 %v12375_v34  ;;  %1406 = vmatprep.mubr.f32.mxu1 %v14849_v62  ;;  %v1647_v29 = vand.u32 4294901760, %v1646_v40  ;;  %v1766_v54 = vand.u32 4294901760, %v1765_v46  ;;  %v14885_v57 = vand.u32 4294901760, %v12214_v61  ;;  %v14886_v40 = vand.u32 4294901760, %v12237_v11 }
 0x11e   :  { %v12442_v36 = vpack.c.bf16 %v14883_v53, %v14882_v38  ;;  %10587 = vmatprep.subr.bf16.mxu1 %v12193_v48  ;;  %v1773_v38 = vand.u32 4294901760, %v1772_v31  ;;  %v1654_v53 = vand.u32 4294901760, %v1653_v42  ;;  %v1661_v44 = vand.u32 4294901760, %v1660_v30  ;;  %v457_v31 = vld [vmem:[%s14604_s6 + $0x160] sm:$0xff]  ;;  %v458_v42 = vld [vmem:[%s14604_s6 + $0x168] sm:$0xff]  ;;  %1408 = vmatmul.mubr.f32.gmra.mrb[2].mxu1 %v12121_v41 }
 0x11f   :  { %v12460_v58 = vpack.c.bf16 %v14886_v40, %v14885_v57  ;;  %v12464_v13 = vsub.f32 %v438_v22, %v1523_v4  ;;  %v12467_v24 = vsub.f32 %v12383_v19, %v1574_v20  ;;  %v14888_v30 = vand.u32 4294901760, %v12299_v50  ;;  %1480 = vmatprep.mubr.f32.mxu1 %v14849_v62 }
 0x120   :  { %14884 = vst [vmem:[#allocation31_spill] sm:$0xff] %v12442_v36  ;;  %10565 = vmatpush3.bf16.msra.mxu0 %v12417_v0  ;;  %v14889_v48 = vand.u32 4294901760, %v12304_v56  ;;  %v12484_v61 = vsub.f32 %v12405_v37, %v1577_v60  ;;  %v1526_v11 = vand.u32 4294901760, %v439_v33  ;;  %v1529_v22 = vand.u32 4294901760, %v440_v43 }
 0x121   :  { %14887 = vst [vmem:[#allocation32_spill] sm:$0xff] %v12460_v58  ;;  %10567 = vmatprep.subr.bf16.mxu0 %v12442_v36  ;;  %v10594_v19 = vpack.c.bf16 %v1759_v8, %v1752_v6  ;;  %v12487_v57 = vpack.c.bf16 %v1647_v29, %v1640_v17  ;;  %v14891_v40 = vand.u32 4294901760, %v12395_v35  ;;  %v14892_v50 = vand.u32 4294901760, %v12400_v28  ;;  %v441_v29 = vld [vmem:[%s14604_s6 + $0xe0] sm:$0xff]  ;;  %v442_v6 = vld [vmem:[%s14604_s6 + $0xe8] sm:$0xff] }
 0x122   :  { %v12481_v46 = vpack.c.bf16 %v14889_v48, %v14888_v30  ;;  %v12495_v30 = vpack.c.bf16 %v1773_v38, %v1766_v54  ;;  %v14893_v37 = vand.u32 4294901760, %v12340_v39  ;;  %v1580_v36 = vand.u32 4294901760, %v457_v31  ;;  %v459_v38 = vld [vmem:[%s14604_s6 + $0x170] sm:$0xff]  ;;  %1482 = vmatmul.mubr.f32.vlgmr.msra.gmra.mrb[0].mxu1 %v12081_v45 }
 0x123   :  { %v1779_v34 = vsub.f32 %v12395_v35, %v14891_v40  ;;  %v1786_v56 = vsub.f32 %v12400_v28, %v14892_v50  ;;  %v1583_v0 = vand.u32 4294901760, %v458_v42  ;;  %v12507_v8 = vpack.c.bf16 %v1661_v44, %v1654_v53  ;;  %v460_v44 = vld [vmem:[%s14604_s6 + $0x178] sm:$0xff]  ;;  %10589 = vmatpush3.bf16.msra.mxu1 %v12308_v26  ;;  %1487 = vmatprep.mubr.f32.mxu1 %v14849_v62 }
 0x124   :  { %14890 = vst [vmem:[#allocation33_spill] sm:$0xff] %v12481_v46  ;;  %v12499_v48 = vpack.c.bf16 %v1523_v4, %v14893_v37  ;;  %10569 = vmatpush3.bf16.msra.mxu0 %v12460_v58  ;;  %v14895_v17 = vand.u32 4294901760, %v12430_v5  ;;  %v12526_v40 = vsub.f32 %v439_v33, %v1526_v11  ;;  %v12528_v50 = vsub.f32 %v440_v43, %v1529_v22  ;;  %v444_v26 = vld [vmem:[%s14604_s6 + $0xf8] sm:$0xff] }
 0x125   :  { %10571 = vmatprep.subr.bf16.mxu0 %v12481_v46  ;;  %v12530_v37 = vpack.c.bf16 %v1577_v60, %v1574_v20  ;;  %v1787_v54 = vand.u32 4294901760, %v1786_v56  ;;  %v1532_v4 = vand.u32 4294901760, %v441_v29  ;;  %v1535_v58 = vand.u32 4294901760, %v442_v6  ;;  %10591 = vmatprep.subr.bf16.mxu1 %v12311_v21  ;;  %v443_v20 = vld [vmem:[%s14604_s6 + $0xf0] sm:$0xff] }
 0x126   :  { %14894 = vst [vmem:[#allocation34_spill] sm:$0xff] %v12499_v48  ;;  %v12513_v39 = vsub.f32 %v12430_v5, %v14895_v17  ;;  %v1780_v17 = vand.u32 4294901760, %v1779_v34  ;;  %v12535_v45 = vsub.f32 %v457_v31, %v1580_v36  ;;  %v12537_v46 = vsub.f32 %v458_v42, %v1583_v0  ;;  %1489 = vmatmul.mubr.f32.gmra.mrb[2].mxu1 %v12121_v41 }
 0x127   :  { %14896 = vst [vmem:[#allocation35_spill] sm:$0xff] %v12530_v37  ;;  %v1586_v33 = vand.u32 4294901760, %v459_v38  ;;  %v1589_v53 = vand.u32 4294901760, %v460_v44  ;;  %v14897_v60 = vand.u32 4294901760, %v12464_v13  ;;  %v14898_v43 = vand.u32 4294901760, %v12467_v24  ;;  %10593 = vmatpush3.bf16.msra.mxu1 %v12435_v14  ;;  %1832 = vmatprep.mubr.f32.mxu1 %v11768_v9 }
 0x128   :  { %v1668_v34 = vand.u32 4294901760, %v12513_v39  ;;  %10573 = vmatpush3.bf16.msra.mxu0 %v12499_v48  ;;  %v12553_v42 = vpack.c.bf16 %v1529_v22, %v1526_v11  ;;  %v14899_v56 = vand.u32 4294901760, %v12484_v61  ;;  %v12567_v11 = vsub.f32 %v442_v6, %v1535_v58  ;;  %10595 = vmatprep.subr.bf16.mxu1 %v10594_v19 }
 0x129   :  { %v1674_v21 = vsub.f32 %v12464_v13, %v14897_v60  ;;  %v1793_v31 = vsub.f32 %v12467_v24, %v14898_v43  ;;  %10575 = vmatprep.subr.bf16.mxu0 %v12530_v37  ;;  %v12562_v60 = vpack.c.bf16 %v1583_v0, %v1580_v36  ;;  %v12565_v43 = vsub.f32 %v441_v29, %v1532_v4 }
 0x12a   :  { %v1800_v62 = vsub.f32 %v12484_v61, %v14899_v56  ;;  %v1538_v22 = vand.u32 4294901760, %v443_v20  ;;  %v1541_v48 = vand.u32 4294901760, %v444_v26  ;;  %v12572_v27 = vsub.f32 %v459_v38, %v1586_v33 }
 0x12b   :  { %v12574_v41 = vsub.f32 %v460_v44, %v1589_v53  ;;  %v10602_v36 = vpack.c.bf16 %v1787_v54, %v1780_v17  ;;  %v1675_v0 = vand.u32 4294901760, %v1674_v21  ;;  %v1794_v14 = vand.u32 4294901760, %v1793_v31  ;;  %10597 = vmatpush3.bf16.msra.mxu1 %v12487_v57 }
 0x12c   :  { %10577 = vmatpush3.bf16.msra.mxu0 %v12553_v42  ;;  %v12577_v29 = vpack.c.bf16 %v1535_v58, %v1532_v4  ;;  %v1801_v6 = vand.u32 4294901760, %v1800_v62  ;;  %v14900_v37 = vand.u32 4294901760, %v12526_v40  ;;  %v14901_v56 = vand.u32 4294901760, %v12528_v50  ;;  %10599 = vmatprep.subr.bf16.mxu1 %v12495_v30 }
 0x12d   :  { %10579 = vmatprep.subr.bf16.mxu0 %v12562_v60  ;;  %v12586_v38 = vpack.c.bf16 %v1589_v53, %v1586_v33  ;;  %v14682_v54 = vand.u32 4294901760, %v12565_v43  ;;  %v14681_v58 = vand.u32 4294901760, %v12567_v11  ;;  %v12591_v4 = vsub.f32 %v443_v20, %v1538_v22 }
 0x12e   :  { %v1681_v19 = vsub.f32 %v12526_v40, %v14900_v37  ;;  %v1688_v39 = vsub.f32 %v12528_v50, %v14901_v56  ;;  %v12593_v62 = vsub.f32 %v444_v26, %v1541_v48  ;;  %v14902_v44 = vand.u32 4294901760, %v12535_v45 }
 0x12f   :  { %v14903_v17 = vand.u32 4294901760, %v12537_v46  ;;  %v14680_v57 = vand.u32 4294901760, %v12572_v27  ;;  %v14679_v33 = vand.u32 4294901760, %v12574_v41  ;;  %v10604_v21 = vpack.c.bf16 %v1675_v0, %v1668_v34  ;;  %10601 = vmatpush3.bf16.msra.mxu1 %v12507_v8 }
 0x130   :  { %v1807_v37 = vsub.f32 %v12535_v45, %v14902_v44  ;;  %10581 = vmatpush3.bf16.msra.mxu0 %v12577_v29  ;;  %v12605_v20 = vpack.c.bf16 %v1541_v48, %v1538_v22  ;;  %v10606_v26 = vpack.c.bf16 %v1801_v6, %v1794_v14  ;;  %v1682_v31 = vand.u32 4294901760, %v1681_v19  ;;  %10603 = vmatprep.subr.bf16.mxu1 %v10602_v36 }
 0x131   :  { %v1814_v53 = vsub.f32 %v12537_v46, %v14903_v17  ;;  %v1689_v30 = vand.u32 4294901760, %v1688_v39  ;;  %10583 = vmatprep.subr.bf16.mxu0 %v12586_v38  ;;  %v10618_v56 = vpack.c.bf16 %v12044_v15, %v12035_v55  ;;  %v1695_v44 = vsub.f32 %v12565_v43, %v14682_v54 }
 0x132   :  { %v1702_v34 = vsub.f32 %v12567_v11, %v14681_v58  ;;  %v1708_v48 = vand.u32 4294901760, %v12591_v4  ;;  %v1715_v22 = vand.u32 4294901760, %v12593_v62  ;;  %v1808_v39 = vand.u32 4294901760, %v1807_v37 }
 0x133   :  { %v1815_v0 = vand.u32 4294901760, %v1814_v53  ;;  %v1821_v14 = vsub.f32 %v12572_v27, %v14680_v57  ;;  %v1828_v8 = vsub.f32 %v12574_v41, %v14679_v33  ;;  %v10620_v6 = vpack.c.bf16 %v12102_v63, %v12097_v59  ;;  %10605 = vmatpush3.bf16.msra.mxu1 %v10604_v21 }
 0x134   :  { %10585 = vmatpush3.bf16.msra.mxu0 %v12605_v20  ;;  %v10608_v19 = vpack.c.bf16 %v1689_v30, %v1682_v31  ;;  %v10622_v36 = vpack.c.bf16 %v12117_v3, %v12112_v1  ;;  %v1696_v37 = vand.u32 4294901760, %v1695_v44  ;;  %v1703_v17 = vand.u32 4294901760, %v1702_v34  ;;  %10607 = vmatprep.subr.bf16.mxu1 %v10606_v26 }
 0x135   :  { %10619 = vmatprep.subr.bf16.mxu0 %v10618_v56  ;;  %v1709_v53 = vsub.f32 %v12591_v4, %v1708_v48  ;;  %v1716_v33 = vsub.f32 %v12593_v62, %v1715_v22  ;;  %v10610_v57 = vpack.c.bf16 %v1815_v0, %v1808_v39  ;;  %v1822_v58 = vand.u32 4294901760, %v1821_v14  ;;  %v14905_v0 = vld [vmem:[#allocation24_spill] sm:$0xff]  ;;  %v14906_v14 = vld [vmem:[#allocation2_spill] sm:$0xff] }
 0x136   :  { %v1829_v54 = vand.u32 4294901760, %v1828_v8  ;;  %v10624_v21 = vpack.c.bf16 %v12226_v23, %v12204_v7  ;;  %v10626_v31 = vpack.c.bf16 %v12263_v10, %v12232_v25  ;;  %v10612_v30 = vpack.c.bf16 %v1703_v17, %v1696_v37  ;;  %v14907_v8 = vld [vmem:[#allocation26_spill] sm:$0xff]  ;;  %v14909_v37 = vld [vmem:[#allocation29_spill] sm:$0xff] }
 0x137   :  { %1602 = vmatmul.mubr.f32.vlgmr.msra.gmra.mrb[6].mxu0 %v12085_v52  ;;  %10609 = vmatpush3.bf16.msra.mxu1 %v10608_v19  ;;  %v1710_v56 = vand.u32 4294901760, %v1709_v53  ;;  %v1717_v44 = vand.u32 4294901760, %v1716_v33  ;;  %v10628_v52 = vpack.c.bf16 %v12275_v18, %v12270_v2  ;;  %v10630_v34 = vpack.c.bf16 %v12289_v51, %v12280_v47 }
 0x138   :  { %10621 = vmatpush3.bf16.msra.mxu0 %v10620_v6  ;;  %1969 = vmatprep.mubr.f32.mxu0 %v11774_v12  ;;  %v10614_v26 = vpack.c.bf16 %v1829_v54, %v1822_v58  ;;  %v10632_v39 = vpack.c.bf16 %v12319_v49, %v12294_v32  ;;  %v10636_v54 = vpack.c.bf16 %v12464_v13, %v12430_v5  ;;  %v14904_v58 = vld [vmem:[#allocation15_spill] sm:$0xff] }
 0x139   :  { %10623 = vmatprep.subr.bf16.mxu0 %v10622_v36  ;;  %10611 = vmatprep.subr.bf16.mxu1 %v10610_v57  ;;  %v10616_v12 = vpack.c.bf16 %v1717_v44, %v1710_v56  ;;  %v10634_v57 = vpack.c.bf16 %v12400_v28, %v12395_v35  ;;  %v10638_v33 = vpack.c.bf16 %v12484_v61, %v12467_v24  ;;  %v14908_v36 = vld [vmem:[#allocation28_spill] sm:$0xff]  ;;  %v14912_v56 = vand.u32 4294901760, %v12035_v55  ;;  %v14920_v55 = vld [vmem:[#allocation34_spill] sm:$0xff] }
 0x13a   :  { %v10640_v6 = vpack.c.bf16 %v12528_v50, %v12526_v40  ;;  %v10642_v19 = vpack.c.bf16 %v12537_v46, %v12535_v45  ;;  %v10644_v17 = vpack.c.bf16 %v12567_v11, %v12565_v43  ;;  %v10646_v53 = vpack.c.bf16 %v12574_v41, %v12572_v27 }
 0x13b   :  { %10613 = vmatpush3.bf16.msra.mxu1 %v10612_v30  ;;  %v10648_v30 = vpack.c.bf16 %v12593_v62, %v12591_v4  ;;  %v14913_v44 = vand.u32 4294901760, %v12044_v15  ;;  %v14921_v15 = vld [vmem:[#allocation35_spill] sm:$0xff] }
 0x13c   :  { %10625 = vmatpush3.bf16.msra.mxu0 %v10624_v21  ;;  %10615 = vmatprep.subr.bf16.mxu1 %v10614_v26  ;;  %v14910_v21 = vld [vmem:[#allocation30_spill] sm:$0xff] }
 0x13d   :  { %10627 = vmatprep.subr.bf16.mxu0 %v10626_v31  ;;  %v14911_v31 = vld [vmem:[#allocation31_spill] sm:$0xff]  ;;  %v10682_v26 = vpack.c.bf16 %v14913_v44, %v14912_v56  ;;  %v14930_v56 = vand.u32 4294901760, %v12289_v51  ;;  %v14936_v51 = vand.u32 4294901760, %v12464_v13  ;;  %v14941_v13 = vand.u32 4294901760, %v12528_v50 }
 0x13f   :  { %10617 = vmatpush3.bf16.msra.mxu1 %v10616_v12  ;;  %v14916_v12 = vand.u32 4294901760, %v12097_v59  ;;  %v14924_v59 = vand.u32 4294901760, %v12226_v23  ;;  %v14929_v23 = vand.u32 4294901760, %v12280_v47  ;;  %v14935_v47 = vand.u32 4294901760, %v12430_v5 }
 0x140   :  { %10629 = vmatpush3.bf16.msra.mxu0 %v10628_v52  ;;  %10651 = vmatprep.subr.bf16.mxu1 %v12221_v16  ;;  %v14914_v52 = vld [vmem:[#allocation32_spill] sm:$0xff]  ;;  %v14942_v5 = vand.u32 4294901760, %v12535_v45  ;;  %v14945_v45 = vand.u32 4294901760, %v12567_v11  ;;  %v418_v11 = vld [vmem:[%s14604_s6 + $0x28] sm:$0xff] }
 0x141   :  { %10631 = vmatprep.subr.bf16.mxu0 %v10630_v34  ;;  %v14915_v34 = vld [vmem:[#allocation33_spill] sm:$0xff]  ;;  %v10694_v44 = vpack.c.bf16 %v14930_v56, %v14929_v23 }
 0x142   :  { %1834 = vmatmul.mubr.f32.vlgmr.msra.gmra.mrb[4].mxu1 %v14904_v58 }
 0x143   :  { %10653 = vmatpush3.bf16.msra.mxu1 %v14905_v0  ;;  %2076 = vmatprep.mubr.f32.mxu1 %v14906_v14 }
 0x144   :  { %10633 = vmatpush3.bf16.msra.mxu0 %v10632_v39  ;;  %10655 = vmatprep.subr.bf16.mxu1 %v14907_v8  ;;  %v14917_v39 = vand.u32 4294901760, %v12102_v63  ;;  %v14925_v63 = vand.u32 4294901760, %v12232_v25  ;;  %v14931_v25 = vand.u32 4294901760, %v12294_v32  ;;  %v14937_v32 = vld [vmem:[#allocation17_spill] sm:$0xff] }
 0x145   :  { %10635 = vmatprep.subr.bf16.mxu0 %v10634_v57 }
 0x146   :  { %v10684_v57 = vpack.c.bf16 %v14917_v39, %v14916_v12  ;;  %v10700_v39 = vpack.c.bf16 %v14936_v51, %v14935_v47 }
 0x147   :  { %10657 = vmatpush3.bf16.msra.mxu1 %v14908_v36 }
 0x148   :  { %10637 = vmatpush3.bf16.msra.mxu0 %v10636_v54  ;;  %10659 = vmatprep.subr.bf16.mxu1 %v14909_v37  ;;  %v14918_v54 = vand.u32 4294901760, %v12112_v1  ;;  %v14926_v1 = vand.u32 4294901760, %v12263_v10  ;;  %v14932_v10 = vand.u32 4294901760, %v12319_v49  ;;  %v14938_v49 = vand.u32 4294901760, %v12467_v24 }
 0x149   :  { %10639 = vmatprep.subr.bf16.mxu0 %v10638_v33  ;;  %v14919_v33 = vand.u32 4294901760, %v12117_v3  ;;  %v14943_v24 = vand.u32 4294901760, %v12537_v46  ;;  %v14946_v46 = vand.u32 4294901760, %v12572_v27  ;;  %v10712_v27 = vpack.c.bf16 %v1715_v22, %v1708_v48 }
 0x14a   :  { %v10690_v3 = vpack.c.bf16 %v14926_v1, %v14925_v63  ;;  %v2373_v22 = vand.u32 4294901760, %v418_v11 }
 0x14b   :  { %10661 = vmatpush3.bf16.msra.mxu1 %v14910_v21  ;;  %v10686_v14 = vpack.c.bf16 %v14919_v33, %v14918_v54  ;;  %v10706_v54 = vpack.c.bf16 %v14943_v24, %v14942_v5  ;;  %v415_v33 = vld [vmem:[%s14604_s6 + $0x10] sm:$0xff] }
 0x14c   :  { %10641 = vmatpush3.bf16.msra.mxu0 %v10640_v6  ;;  %10663 = vmatprep.subr.bf16.mxu1 %v14911_v31  ;;  %v14922_v6 = vld [vmem:[#allocation16_spill] sm:$0xff] }
 0x14d   :  { %10643 = vmatprep.subr.bf16.mxu0 %v10642_v19  ;;  %v14923_v19 = vand.u32 4294901760, %v12204_v7  ;;  %v14928_v7 = vand.u32 4294901760, %v12275_v18  ;;  %v14934_v18 = vand.u32 4294901760, %v12400_v28 }
 0x14f   :  { %10665 = vmatpush3.bf16.msra.mxu1 %v14914_v52 }
 0x150   :  { %10645 = vmatpush3.bf16.msra.mxu0 %v10644_v17  ;;  %10667 = vmatprep.subr.bf16.mxu1 %v14915_v34  ;;  %v10688_v17 = vpack.c.bf16 %v14924_v59, %v14923_v19  ;;  %v419_v19 = vld [vmem:[%s14604_s6 + $0x30] sm:$0xff] }
 0x151   :  { %10647 = vmatprep.subr.bf16.mxu0 %v10646_v53  ;;  %v14927_v53 = vand.u32 4294901760, %v12270_v2  ;;  %v14933_v2 = vand.u32 4294901760, %v12395_v35  ;;  %v14939_v35 = vand.u32 4294901760, %v12484_v61  ;;  %v414_v61 = vld [vmem:[%s14604_s6 + $0x8] sm:$0xff] }
 0x153   :  { %10669 = vmatpush3.bf16.msra.mxu1 %v14920_v55  ;;  %v10698_v12 = vpack.c.bf16 %v14934_v18, %v14933_v2 }
 0x154   :  { %10649 = vmatpush3.bf16.msra.mxu0 %v10648_v30  ;;  %10671 = vmatprep.subr.bf16.mxu1 %v14921_v15  ;;  %v10692_v30 = vpack.c.bf16 %v14928_v7, %v14927_v53 }
 0x155   :  { %10683 = vmatprep.subr.bf16.mxu0 %v10682_v26  ;;  %v10696_v26 = vpack.c.bf16 %v14932_v10, %v14931_v25  ;;  %v421_v25 = vld [vmem:[%s14604_s6 + $0x40] sm:$0xff] }
 0x156   :  { %v2382_v47 = vand.u32 4294901760, %v421_v25 }
 0x157   :  { %1972 = vmatmul.mubr.f32.vlgmr.msra.gmra.mrb[8].mxu0 %v14922_v6  ;;  %10673 = vmatpush3.bf16.msra.mxu1 %v12553_v42  ;;  %v14948_v6 = vmov 0.0|0.0  }
 0x158   :  { %10685 = vmatpush3.bf16.msra.mxu0 %v10684_v57  ;;  %2246 = vmatprep.mubr.f32.mxu0 %v11768_v9  ;;  %v10702_v57 = vpack.c.bf16 %v14939_v35, %v14938_v49  ;;  %v423_v35 = vld [vmem:[%s14604_s6 + $0x50] sm:$0xff] }
 0x159   :  { %10687 = vmatprep.subr.bf16.mxu0 %v10686_v14  ;;  %10675 = vmatprep.subr.bf16.mxu1 %v12562_v60  ;;  %v2364_v14 = vand.u32 4294901760, %v415_v33 }
 0x15b   :  { %10677 = vmatpush3.bf16.msra.mxu1 %v12577_v29 }
 0x15c   :  { %10689 = vmatpush3.bf16.msra.mxu0 %v10688_v17  ;;  %10679 = vmatprep.subr.bf16.mxu1 %v12586_v38  ;;  %v12793_v17 = vsub.f32 %v415_v33, %v2364_v14 }
 0x15d   :  { %10691 = vmatprep.subr.bf16.mxu0 %v10690_v3  ;;  %v12802_v3 = vsub.f32 %v418_v11, %v2373_v22 }
 0x15e   :  { %v2465_v56 = vand.u32 4294901760, %v12793_v17 }
 0x15f   :  { %10681 = vmatpush3.bf16.msra.mxu1 %v12605_v20 }
 0x160   :  { %10693 = vmatpush3.bf16.msra.mxu0 %v10692_v30  ;;  %10715 = vmatprep.subr.bf16.mxu1 %v12221_v16  ;;  %v14940_v16 = vand.u32 4294901760, %v12526_v40  ;;  %v14944_v40 = vand.u32 4294901760, %v12565_v43  ;;  %v416_v43 = vld [vmem:[%s14604_s6 + $0x18] sm:$0xff]  ;;  %v14949_v30 = vmov 0.0  }
 0x161   :  { %10695 = vmatprep.subr.bf16.mxu0 %v10694_v44  ;;  %v2367_v4 = vand.u32 4294901760, %v416_v43 }
 0x162   :  { %2080 = vmatmul.mubr.f32.vlgmr.msra.gmra.mrb[6].mxu1 %v14937_v32  ;;  %v10704_v28 = vpack.c.bf16 %v14941_v13, %v14940_v16  ;;  %v10708_v50 = vpack.c.bf16 %v14945_v45, %v14944_v40  ;;  %v2466_v32 = vsub.f32 %v12793_v17, %v2465_v56 }
 0x163   :  { %10717 = vmatpush3.bf16.msra.mxu1 %v14905_v0  ;;  %2350 = vmatprep.mubr.f32.mxu1 %v11768_v9  ;;  %v413_v9 = vld [vmem:[%s14604_s6] sm:$0xff]  ;;  %v14947_v0 = vand.u32 4294901760, %v12574_v41  ;;  %v12795_v63 = vsub.f32 %v416_v43, %v2367_v4  ;;  %v12804_v53 = vpack.c.bf16 %v2367_v4, %v2364_v14 }
 0x164   :  { %10697 = vmatpush3.bf16.msra.mxu0 %v10696_v26  ;;  %10719 = vmatprep.subr.bf16.mxu1 %v14907_v8  ;;  %v417_v41 = vld [vmem:[%s14604_s6 + $0x20] sm:$0xff]  ;;  %v2486_v26 = vand.u32 4294901760, %v12802_v3 }
 0x165   :  { %10699 = vmatprep.subr.bf16.mxu0 %v10698_v12  ;;  %v10710_v8 = vpack.c.bf16 %v14947_v0, %v14946_v46  ;;  %v2370_v62 = vand.u32 4294901760, %v417_v41  ;;  %v2472_v44 = vand.u32 4294901760, %v12795_v63  ;;  %v426_v0 = vld [vmem:[%s14604_s6 + $0x68] sm:$0xff] }
 0x166   :  { %v2487_v16 = vsub.f32 %v12802_v3, %v2486_v26  ;;  %v2397_v4 = vand.u32 4294901760, %v426_v0 }
 0x167   :  { %10721 = vmatpush3.bf16.msra.mxu1 %v14908_v36  ;;  %v2358_v36 = vand.u32 4294901760, %v413_v9  ;;  %v12799_v1 = vsub.f32 %v417_v41, %v2370_v62  ;;  %v12832_v12 = vpack.c.bf16 %v2373_v22, %v2370_v62  ;;  %v2473_v49 = vsub.f32 %v12795_v63, %v2472_v44  ;;  %v428_v62 = vld [vmem:[%s14604_s6 + $0x78] sm:$0xff] }
 0x168   :  { %10701 = vmatpush3.bf16.msra.mxu0 %v10700_v39  ;;  %10723 = vmatprep.subr.bf16.mxu1 %v14909_v37  ;;  %v2361_v37 = vand.u32 4294901760, %v414_v61 }
 0x169   :  { %10703 = vmatprep.subr.bf16.mxu0 %v10702_v57  ;;  %v2479_v10 = vand.u32 4294901760, %v12799_v1  ;;  %v424_v57 = vld [vmem:[%s14604_s6 + $0x58] sm:$0xff]  ;;  %v2474_v40 = vand.u32 4294901760, %v2473_v49 }
 0x16a   :  { %v12781_v48 = vpack.c.bf16 %v2361_v37, %v2358_v36  ;;  %v2391_v45 = vand.u32 4294901760, %v424_v57 }
 0x16b   :  { %10725 = vmatpush3.bf16.msra.mxu1 %v14910_v21  ;;  %v12776_v21 = vsub.f32 %v413_v9, %v2358_v36 }
 0x16c   :  { %10705 = vmatpush3.bf16.msra.mxu0 %v10704_v28  ;;  %10727 = vmatprep.subr.bf16.mxu1 %v14911_v31  ;;  %v12778_v31 = vsub.f32 %v414_v61, %v2361_v37  ;;  %v2467_v61 = vand.u32 4294901760, %v2466_v32  ;;  %v12888_v14 = vsub.f32 %v424_v57, %v2391_v45 }
 0x16d   :  { %10707 = vmatprep.subr.bf16.mxu0 %v10706_v54  ;;  %v2451_v59 = vand.u32 4294901760, %v12776_v21  ;;  %v2388_v54 = vand.u32 4294901760, %v423_v35 }
 0x16e   :  { %v10774_v11 = vpack.c.bf16 %v2474_v40, %v2467_v61 }
 0x16f   :  { %10729 = vmatpush3.bf16.msra.mxu1 %v14914_v52  ;;  %v420_v52 = vld [vmem:[%s14604_s6 + $0x38] sm:$0xff] }
 0x170   :  { %10709 = vmatpush3.bf16.msra.mxu0 %v10708_v50  ;;  %10731 = vmatprep.subr.bf16.mxu1 %v14915_v34  ;;  %v2458_v34 = vand.u32 4294901760, %v12778_v31  ;;  %v2379_v7 = vand.u32 4294901760, %v420_v52  ;;  %v425_v50 = vld [vmem:[%s14604_s6 + $0x60] sm:$0xff] }
 0x171   :  { %10711 = vmatprep.subr.bf16.mxu0 %v10710_v8  ;;  %v2488_v8 = vand.u32 4294901760, %v2487_v16  ;;  %v2394_v41 = vand.u32 4294901760, %v425_v50 }
 0x172   :  { %v2459_v23 = vsub.f32 %v12778_v31, %v2458_v34  ;;  %v12830_v18 = vsub.f32 %v420_v52, %v2379_v7 }
 0x173   :  { %10733 = vmatpush3.bf16.msra.mxu1 %v14920_v55  ;;  %v2376_v55 = vand.u32 4294901760, %v419_v19  ;;  %v12917_v32 = vpack.c.bf16 %v2397_v4, %v2394_v41 }
 0x174   :  { %10713 = vmatpush3.bf16.msra.mxu0 %v10712_v27  ;;  %10735 = vmatprep.subr.bf16.mxu1 %v14921_v15  ;;  %v2452_v15 = vsub.f32 %v12776_v21, %v2451_v59  ;;  %v2500_v28 = vand.u32 4294901760, %v12830_v18  ;;  %v12885_v27 = vsub.f32 %v423_v35, %v2388_v54 }
 0x175   :  { %10746 = vmatprep.subr.bf16.mxu0 %v14948_v6  ;;  %v12828_v2 = vsub.f32 %v419_v19, %v2376_v55  ;;  %v12858_v5 = vpack.c.bf16 %v2379_v7, %v2376_v55  ;;  %v12900_v55 = vpack.c.bf16 %v2391_v45, %v2388_v54 }
 0x176   :  { %v2453_v39 = vand.u32 4294901760, %v2452_v15  ;;  %v2501_v36 = vsub.f32 %v12830_v18, %v2500_v28 }
 0x177   :  { %2248 = vmatmul.mubr.f32.vlgmr.msra.gmra.mrb[10].mxu0 %v14904_v58  ;;  %10737 = vmatpush3.bf16.msra.mxu1 %v12553_v42  ;;  %v422_v42 = vld [vmem:[%s14604_s6 + $0x48] sm:$0xff]  ;;  %v2493_v13 = vand.u32 4294901760, %v12828_v2 }
 0x178   :  { %10748 = vmatpush3.bf16.msra.mxu0 %v12781_v48  ;;  %9680 = vmatprep.mubr.msk.f32.mxu0 %vm11689_vm0, %v14949_v30  ;;  %v2385_v51 = vand.u32 4294901760, %v422_v42  ;;  %v2502_v52 = vand.u32 4294901760, %v2501_v36 }
 0x179   :  { %10749 = vmatprep.subr.bf16.mxu0 %v14948_v6  ;;  %10739 = vmatprep.subr.bf16.mxu1 %v12562_v60  ;;  %v2460_v60 = vand.u32 4294901760, %v2459_v23  ;;  %v2521_v23 = vand.u32 4294901760, %v12885_v27 }
 0x17a   :  { %v12862_v24 = vsub.f32 %v422_v42, %v2385_v51  ;;  %v12880_v37 = vpack.c.bf16 %v2385_v51, %v2382_v47  ;;  %v2528_v42 = vand.u32 4294901760, %v12888_v14 }
 0x17b   :  { %10741 = vmatpush3.bf16.msra.mxu1 %v12577_v29  ;;  %v2480_v29 = vsub.f32 %v12799_v1, %v2479_v10  ;;  %v10771_v9 = vpack.c.bf16 %v2460_v60, %v2453_v39  ;;  %v2403_v39 = vand.u32 4294901760, %v428_v62 }
 0x17c   :  { %10751 = vmatpush3.bf16.msra.mxu0 %v12804_v53  ;;  %10743 = vmatprep.subr.bf16.mxu1 %v12586_v38  ;;  %v12860_v38 = vsub.f32 %v421_v25, %v2382_v47  ;;  %v2514_v43 = vand.u32 4294901760, %v12862_v24  ;;  %v12909_v25 = vsub.f32 %v425_v50, %v2394_v41  ;;  %v12913_v47 = vsub.f32 %v426_v0, %v2397_v4 }
 0x17d   :  { %10752 = vmatprep.subr.bf16.mxu0 %v14948_v6  ;;  %v2481_v46 = vand.u32 4294901760, %v2480_v29  ;;  %v2522_v29 = vsub.f32 %v12885_v27, %v2521_v23  ;;  %v2529_v16 = vsub.f32 %v12888_v14, %v2528_v42  ;;  %v12930_v61 = vsub.f32 %v428_v62, %v2403_v39 }
 0x17e   :  { %v2507_v33 = vand.u32 4294901760, %v12860_v38  ;;  %v2515_v15 = vsub.f32 %v12862_v24, %v2514_v43  ;;  %v2535_v57 = vand.u32 4294901760, %v12909_v25  ;;  %v2542_v54 = vand.u32 4294901760, %v12913_v47 }
 0x17f   :  { %10745 = vmatpush3.bf16.msra.mxu1 %v12605_v20  ;;  %v2494_v20 = vsub.f32 %v12828_v2, %v2493_v13  ;;  %v10777_v22 = vpack.c.bf16 %v2488_v8, %v2481_v46  ;;  %v2523_v50 = vand.u32 4294901760, %v2522_v29  ;;  %v2530_v0 = vand.u32 4294901760, %v2529_v16 }
 0x180   :  { %10754 = vmatpush3.bf16.msra.mxu0 %v12832_v12  ;;  %10770 = vmatprep.subr.bf16.mxu1 %v14948_v6  ;;  %v2508_v7 = vsub.f32 %v12860_v38, %v2507_v33  ;;  %v2516_v35 = vand.u32 4294901760, %v2515_v15  ;;  %v2536_v46 = vsub.f32 %v12909_v25, %v2535_v57  ;;  %v2543_v8 = vsub.f32 %v12913_v47, %v2542_v54 }
 0x181   :  { %10755 = vmatprep.subr.bf16.mxu0 %v14948_v6  ;;  %v2495_v19 = vand.u32 4294901760, %v2494_v20  ;;  %v2556_v36 = vand.u32 4294901760, %v12930_v61 }
 0x182   :  { %2352 = vmatmul.mubr.f32.vlgmr.msra.gmra.mrb[8].mxu1 %v14904_v58  ;;  %v427_v58 = vld [vmem:[%s14604_s6 + $0x70] sm:$0xff]  ;;  %v2509_v49 = vand.u32 4294901760, %v2508_v7  ;;  %v2537_v41 = vand.u32 4294901760, %v2536_v46  ;;  %v2544_v4 = vand.u32 4294901760, %v2543_v8  ;;  %v10798_v8 = vpack.c.bf16 %v12795_v63, %v12793_v17 }
 0x183   :  { %10772 = vmatpush3.bf16.msra.mxu1 %v10771_v9  ;;  %9715 = vmatprep.mubr.msk.f32.mxu1 %vm11689_vm0, %v14949_v30  ;;  %v2400_v51 = vand.u32 4294901760, %v427_v58  ;;  %v10780_v60 = vpack.c.bf16 %v2502_v52, %v2495_v19  ;;  %v2557_v62 = vsub.f32 %v12930_v61, %v2556_v36  ;;  %v13072_v17 = vpack.c.bf16 %v2514_v43, %v2507_v33  ;;  %v466_v33 = vld [vmem:[%s14606_s7 + $0x28] sm:$0xff] }
 0x184   :  { %10757 = vmatpush3.bf16.msra.mxu0 %v12858_v5  ;;  %10773 = vmatprep.subr.bf16.mxu1 %v14948_v6  ;;  %v10783_v45 = vpack.c.bf16 %v2516_v35, %v2509_v49 }
 0x185   :  { %10758 = vmatprep.subr.bf16.mxu0 %v14948_v6  ;;  %v12928_v9 = vsub.f32 %v427_v58, %v2400_v51  ;;  %v12934_v40 = vpack.c.bf16 %v2403_v39, %v2400_v51  ;;  %v2558_v52 = vand.u32 4294901760, %v2557_v62 }
 0x187   :  { %10775 = vmatpush3.bf16.msra.mxu1 %v10774_v11  ;;  %v2549_v20 = vand.u32 4294901760, %v12928_v9  ;;  %v10786_v11 = vpack.c.bf16 %v2530_v0, %v2523_v50 }
 0x188   :  { %10760 = vmatpush3.bf16.msra.mxu0 %v12880_v37  ;;  %10776 = vmatprep.subr.bf16.mxu1 %v14948_v6 }
 0x189   :  { %10761 = vmatprep.subr.bf16.mxu0 %v14948_v6  ;;  %v2550_v58 = vsub.f32 %v12928_v9, %v2549_v20 }
 0x18b   :  { %10778 = vmatpush3.bf16.msra.mxu1 %v10777_v22  ;;  %v10789_v22 = vpack.c.bf16 %v2544_v4, %v2537_v41  ;;  %v2551_v19 = vand.u32 4294901760, %v2550_v58  ;;  %v10801_v41 = vpack.c.bf16 %v12802_v3, %v12799_v1  ;;  %v10804_v4 = vpack.c.bf16 %v12830_v18, %v12828_v2 }
 0x18c   :  { %10763 = vmatpush3.bf16.msra.mxu0 %v12900_v55  ;;  %10779 = vmatprep.subr.bf16.mxu1 %v14948_v6  ;;  %v13080_v3 = vpack.c.bf16 %v2528_v42, %v2521_v23  ;;  %v13105_v18 = vpack.c.bf16 %v2542_v54, %v2535_v57  ;;  %v13127_v23 = vpack.c.bf16 %v2556_v36, %v2549_v20 }
 0x18d   :  { %10764 = vmatprep.subr.bf16.mxu0 %v14948_v6  ;;  %v10792_v7 = vpack.c.bf16 %v2558_v52, %v2551_v19  ;;  %v10807_v52 = vpack.c.bf16 %v12862_v24, %v12860_v38  ;;  %v482_v38 = vld [vmem:[%s14606_s7 + $0xa8] sm:$0xff]  ;;  %v465_v24 = vld [vmem:[%s14606_s7 + $0x20] sm:$0xff] }
 0x18e   :  { %v3751_v36 = vand.u32 4294901760, %v482_v38 }
 0x18f   :  { %10781 = vmatpush3.bf16.msra.mxu1 %v10780_v60 }
 0x190   :  { %10766 = vmatpush3.bf16.msra.mxu0 %v12917_v32  ;;  %10782 = vmatprep.subr.bf16.mxu1 %v14948_v6 }
 0x191   :  { %10767 = vmatprep.subr.bf16.mxu0 %v14948_v6 }
 0x193   :  { %10784 = vmatpush3.bf16.msra.mxu1 %v10783_v45  ;;  %v10795_v45 = vpack.c.bf16 %v12778_v31, %v12776_v21  ;;  %v463_v31 = vld [vmem:[%s14606_s7 + $0x10] sm:$0xff] }
 0x194   :  { %10769 = vmatpush3.bf16.msra.mxu0 %v12934_v40  ;;  %10785 = vmatprep.subr.bf16.mxu1 %v14948_v6 }
 0x195   :  { %10794 = vmatprep.subr.bf16.mxu0 %v14948_v6 }
 0x197   :  { %10787 = vmatpush3.bf16.msra.mxu1 %v10786_v11 }
 0x198   :  { %10788 = vmatprep.subr.bf16.mxu1 %v14948_v6 }
 0x19b   :  { %10790 = vmatpush3.bf16.msra.mxu1 %v10789_v22 }
 0x19c   :  { %10791 = vmatprep.subr.bf16.mxu1 %v14948_v6 }
 0x19f   :  { %10793 = vmatpush3.bf16.msra.mxu1 %v10792_v7 }
 0x1a0   :  { %10818 = vmatprep.subr.bf16.mxu1 %v14948_v6 }
 0x1e6   :  { %v970_v15 = vpop.f32.mrb[0].mxu0 }
 0x1e7   :  { %v12958_v51 = vand.u32 4294901760, %v970_v15  ;;  %v9647_v39 = vpop.f32.mrb[1].mxu0 }
 0x1e9   :  { %v12961_v60 = vsub.f32 %v970_v15, %v12958_v51  ;;  %9716 = vmatmul.mubr.f32.vlgmr.msra.gmra.mrb[10].mxu1 %v12958_v51 }
 0x1ea   :  { %10820 = vmatpush3.bf16.msra.mxu1 %v12781_v48  ;;  %9785 = vmatprep.mubr.msk.f32.mxu1 %vm11689_vm0, %v14949_v30  ;;  %v1054_v35 = vpop.f32.mrb[2].mxu0 }
 0x1eb   :  { %v2440_v49 = vand.u32 4294901760, %v12961_v60  ;;  %10821 = vmatprep.subr.bf16.mxu1 %v14948_v6  ;;  %v1056_v29 = vpop.f32.mrb[3].mxu0 }
 0x1ed   :  { %v2441_v16 = vsub.f32 %v12961_v60, %v2440_v49 }
 0x1ee   :  { %10823 = vmatpush3.bf16.msra.mxu1 %v12804_v53  ;;  %v1065_v46 = vpop.f32.mrb[4].mxu0 }
 0x1ef   :  { %v2442_v50 = vand.u32 4294901760, %v2441_v16  ;;  %10824 = vmatprep.subr.bf16.mxu1 %v14948_v6  ;;  %v1067_v0 = vpop.f32.mrb[5].mxu0  ;;  %v477_v16 = vld [vmem:[%s14606_s7 + $0x80] sm:$0xff] }
 0x1f1   :  { %9681 = vmatmul.mubr.f32.vlgmr.msra.gmra.mrb[12].mxu0 %v2442_v50  ;;  %v10816_v50 = vpack.c.bf16 %v12930_v61, %v12928_v9  ;;  %v13144_v9 = vld [vmem:[%s14606_s7 + $0x118] sm:$0xff]  ;;  %v483_v61 = vld [vmem:[%s14606_s7 + $0xb0] sm:$0xff] }
 0x1f2   :  { %10796 = vmatpush3.bf16.msra.mxu0 %v10795_v45  ;;  %10826 = vmatpush3.bf16.msra.mxu1 %v12832_v12  ;;  %v478_v45 = vld [vmem:[%s14606_s7 + $0x88] sm:$0xff] }
 0x1f3   :  { %10797 = vmatprep.subr.bf16.mxu0 %v14948_v6  ;;  %10827 = vmatprep.subr.bf16.mxu1 %v14948_v6 }
 0x1f4   :  { %9750 = vmatprep.mubr.msk.f32.mxu0 %vm11689_vm0, %v14949_v30 }
 0x1f5   :  { %v1483_v11 = vpop.f32.mrb[0].mxu1 }
 0x1f6   :  { %10799 = vmatpush3.bf16.msra.mxu0 %v10798_v8  ;;  %10829 = vmatpush3.bf16.msra.mxu1 %v12858_v5  ;;  %v1485_v58 = vpop.f32.mrb[1].mxu1  ;;  %v12989_v62 = vadd.f32 %v1483_v11, %v1054_v35  ;;  %v10810_v35 = vpack.c.bf16 %v12888_v14, %v12885_v27  ;;  %v480_v11 = vld [vmem:[%s14606_s7 + $0x98] sm:$0xff] }
 0x1f7   :  { %10800 = vmatprep.subr.bf16.mxu0 %v14948_v6  ;;  %10830 = vmatprep.subr.bf16.mxu1 %v14948_v6  ;;  %v12993_v22 = vadd.f32 %v1485_v58, %v1056_v29  ;;  %v10813_v29 = vpack.c.bf16 %v12913_v47, %v12909_v25  ;;  %v10843_v58 = vpack.c.bf16 %v2458_v34, %v2451_v59  ;;  %v464_v59 = vld [vmem:[%s14606_s7 + $0x18] sm:$0xff]  ;;  %v3745_v1 = vand.u32 4294901760, %v480_v11  ;;  %v13132_v25 = vld [vmem:[%s14606_s7 + $0x110] sm:$0xff] }
 0x1f8   :  { %14950 = vst [vmem:[#allocation15_spill] sm:$0xff] %v12989_v62  ;;  %v13066_v34 = vpack.c.bf16 %v2500_v28, %v2493_v13  ;;  %v3694_v13 = vand.u32 4294901760, %v463_v31  ;;  %v3697_v28 = vand.u32 4294901760, %v464_v59  ;;  %v472_v62 = vld [vmem:[%s14606_s7 + $0x58] sm:$0xff] }
 0x1f9   :  { %v1490_v19 = vpop.f32.mrb[2].mxu1 }
 0x1fa   :  { %10802 = vmatpush3.bf16.msra.mxu0 %v10801_v41  ;;  %10832 = vmatpush3.bf16.msra.mxu1 %v12880_v37  ;;  %v1492_v7 = vpop.f32.mrb[3].mxu1  ;;  %v12998_v15 = vadd.f32 %v1490_v19, %v1065_v46  ;;  %v461_v46 = vld [vmem:[%s14606_s7] sm:$0xff]  ;;  %v3739_v41 = vand.u32 4294901760, %v478_v45  ;;  %v10846_v19 = vpack.c.bf16 %v2472_v44, %v2465_v56 }
 0x1fb   :  { %10803 = vmatprep.subr.bf16.mxu0 %v14948_v6  ;;  %10833 = vmatprep.subr.bf16.mxu1 %v14948_v6  ;;  %v13002_v39 = vadd.f32 %v1492_v7, %v1067_v0  ;;  %v462_v0 = vld [vmem:[%s14606_s7 + $0x8] sm:$0xff]  ;;  %v13053_v7 = vpack.c.bf16 %v2486_v26, %v2479_v10  ;;  %v3688_v21 = vand.u32 4294901760, %v461_v46  ;;  %v13089_v44 = vld [vmem:[%s14606_s7 + $0x100] sm:$0xff] }
 0x1fc   :  { %14951 = vst [vmem:[#allocation24_spill] sm:$0xff] %v12998_v15  ;;  %v13094_v10 = vld [vmem:[%s14606_s7 + $0x108] sm:$0xff]  ;;  %v481_v26 = vld [vmem:[%s14606_s7 + $0xa0] sm:$0xff]  ;;  %v13099_v2 = vsub.f32 %v478_v45, %v3739_v41  ;;  %v14684_v57 = vand.u32 4294901760, %v13089_v44  ;;  %v468_v45 = vld [vmem:[%s14606_s7 + $0x38] sm:$0xff] }
 0x1fd   :  { %14952 = vst [vmem:[#allocation2_spill] sm:$0xff] %v13002_v39  ;;  %v13119_v27 = vsub.f32 %v461_v46, %v3688_v21  ;;  %v14683_v54 = vand.u32 4294901760, %v13094_v10  ;;  %v3748_v20 = vand.u32 4294901760, %v481_v26  ;;  %v13162_v46 = vpack.c.bf16 %v3697_v28, %v3694_v13 }
 0x1fe   :  { %10805 = vmatpush3.bf16.msra.mxu0 %v10804_v4  ;;  %10835 = vmatpush3.bf16.msra.mxu1 %v12900_v55  ;;  %14955 = vst [vmem:[#allocation29_spill] sm:$0xff] %v13099_v2 }
 0x1ff   :  { %10806 = vmatprep.subr.bf16.mxu0 %v14948_v6  ;;  %10836 = vmatprep.subr.bf16.mxu1 %v14948_v6  ;;  %14961 = vst [vmem:[#allocation35_spill] sm:$0xff] %v13162_v46 }
 0x202   :  { %10808 = vmatpush3.bf16.msra.mxu0 %v10807_v52  ;;  %10838 = vmatpush3.bf16.msra.mxu1 %v12917_v32 }
 0x203   :  { %10809 = vmatprep.subr.bf16.mxu0 %v14948_v6  ;;  %10839 = vmatprep.subr.bf16.mxu1 %v14948_v6 }
 0x206   :  { %10811 = vmatpush3.bf16.msra.mxu0 %v10810_v35  ;;  %10841 = vmatpush3.bf16.msra.mxu1 %v12934_v40  ;;  %v3691_v35 = vand.u32 4294901760, %v462_v0 }
 0x207   :  { %10812 = vmatprep.subr.bf16.mxu0 %v14948_v6  ;;  %10866 = vmatprep.subr.bf16.mxu1 %v14948_v6 }
 0x208   :  { %v13117_v43 = vpack.c.bf16 %v3691_v35, %v3688_v21  ;;  %v13121_v14 = vsub.f32 %v462_v0, %v3691_v35  ;;  %v13164_v0 = vsub.f32 %v463_v31, %v3694_v13  ;;  %v13187_v21 = vpack.c.bf16 %v14683_v54, %v14684_v57  ;;  %v470_v54 = vld [vmem:[%s14606_s7 + $0x48] sm:$0xff] }
 0x209   :  { %9786 = vmatmul.mubr.f32.vlgmr.msra.gmra.mrb[12].mxu1 %v2440_v49  ;;  %v3736_v49 = vand.u32 4294901760, %v477_v16  ;;  %v13189_v35 = vsub.f32 %v481_v26, %v3748_v20  ;;  %v486_v26 = vld [vmem:[%s14606_s7 + $0xc8] sm:$0xff]  ;;  %v13206_v13 = vand.u32 4294901760, %v12993_v22  ;;  %v3715_v39 = vand.u32 4294901760, %v470_v54 }
 0x20a   :  { %10814 = vmatpush3.bf16.msra.mxu0 %v10813_v29  ;;  %10868 = vmatpush3.bf16.msra.mxu1 %v12781_v48  ;;  %v8756_v8 = vpop.f32.mrb[6].mxu0  ;;  %v479_v48 = vld [vmem:[%s14606_s7 + $0x90] sm:$0xff]  ;;  %14956 = vst [vmem:[#allocation30_spill] sm:$0xff] %v13117_v43  ;;  %14957 = vst [vmem:[#allocation31_spill] sm:$0xff] %v13121_v14  ;;  %v3703_v29 = vand.u32 4294901760, %v466_v33 }
 0x20b   :  { %10815 = vmatprep.subr.bf16.mxu0 %v14948_v6  ;;  %10869 = vmatprep.subr.bf16.mxu1 %v14948_v6  ;;  %v8757_v4 = vpop.f32.mrb[7].mxu0  ;;  %v3742_v63 = vand.u32 4294901760, %v479_v48  ;;  %v13084_v56 = vsub.f32 %v477_v16, %v3736_v49  ;;  %v467_v16 = vld [vmem:[%s14606_s7 + $0x30] sm:$0xff]  ;;  %14962 = vst [vmem:[#allocation16_spill] sm:$0xff] %v13164_v0  ;;  %14964 = vst [vmem:[#allocation36_spill] sm:$0xff] %v13187_v21 }
 0x20c   :  { %9855 = vmatprep.mubr.msk.f32.mxu1 %vm11689_vm0, %v14949_v30  ;;  %v13047_v52 = vadd.f32 %v8757_v4, %v8756_v8  ;;  %v13166_v8 = vsub.f32 %v464_v59, %v3697_v28  ;;  %14965 = vst [vmem:[#allocation37_spill] sm:$0xff] %v13189_v35  ;;  %v3706_v31 = vand.u32 4294901760, %v467_v16  ;;  %v3709_v59 = vand.u32 4294901760, %v468_v45  ;;  %14969 = vst [vmem:[#allocation41_spill] sm:$0xff] %v13206_v13 }
 0x20d   :  { %14954 = vst [vmem:[#allocation28_spill] sm:$0xff] %v13084_v56  ;;  %v13135_v42 = vpack.c.bf16 %v3745_v1, %v3742_v63  ;;  %v13137_v47 = vsub.f32 %v479_v48, %v3742_v63  ;;  %v3754_v48 = vand.u32 4294901760, %v483_v61  ;;  %v13193_v63 = vpack.c.bf16 %v3751_v36, %v3748_v20 }
 0x20e   :  { %10817 = vmatpush3.bf16.msra.mxu0 %v10816_v50  ;;  %10871 = vmatpush3.bf16.msra.mxu1 %v12804_v53  ;;  %v13082_v53 = vpack.c.bf16 %v3739_v41, %v3736_v49  ;;  %v13160_v50 = vsub.f32 %v480_v11, %v3745_v1  ;;  %14963 = vst [vmem:[#allocation17_spill] sm:$0xff] %v13166_v8  ;;  %v14687_v49 = vand.u32 4294901760, %v13132_v25  ;;  %v13175_v11 = vld [vmem:[%s14606_s7 + $0x120] sm:$0xff] }
 0x20f   :  { %10842 = vmatprep.subr.bf16.mxu0 %v14948_v6  ;;  %10872 = vmatprep.subr.bf16.mxu1 %v14948_v6  ;;  %14958 = vst [vmem:[#allocation32_spill] sm:$0xff] %v13135_v42  ;;  %14959 = vst [vmem:[#allocation33_spill] sm:$0xff] %v13137_v47  ;;  %v13195_v1 = vsub.f32 %v482_v38, %v3751_v36  ;;  %v469_v36 = vld [vmem:[%s14606_s7 + $0x40] sm:$0xff]  ;;  %v13218_v41 = vsub.f32 %v466_v33, %v3703_v29 }
 0x210   :  { %14953 = vst [vmem:[#allocation26_spill] sm:$0xff] %v13082_v53  ;;  %14960 = vst [vmem:[#allocation34_spill] sm:$0xff] %v13160_v50  ;;  %v13228_v38 = vsub.f32 %v483_v61, %v3754_v48  ;;  %v13244_v61 = vld [vmem:[%s14606_s7 + $0x138] sm:$0xff] }
 0x211   :  { %9751 = vmatmul.mubr.f32.vlgmr.msra.gmra.mrb[14].mxu0 %v12961_v60  ;;  %v3700_v60 = vand.u32 4294901760, %v465_v24  ;;  %14966 = vst [vmem:[#allocation38_spill] sm:$0xff] %v13193_v63  ;;  %14967 = vst [vmem:[#allocation39_spill] sm:$0xff] %v13195_v1 }
 0x212   :  { %10844 = vmatpush3.bf16.msra.mxu0 %v10843_v58  ;;  %10874 = vmatpush3.bf16.msra.mxu1 %v12832_v12  ;;  %v484_v12 = vld [vmem:[%s14606_s7 + $0xb8] sm:$0xff]  ;;  %v13180_v58 = vld [vmem:[%s14606_s7 + $0x128] sm:$0xff]  ;;  %14971 = vst [vmem:[#allocation43_spill] sm:$0xff] %v13218_v41  ;;  %14975 = vst [vmem:[#allocation46_spill] sm:$0xff] %v13228_v38 }
 0x213   :  { %10845 = vmatprep.subr.bf16.mxu0 %v14948_v6  ;;  %10875 = vmatprep.subr.bf16.mxu1 %v14948_v6  ;;  %v3757_v4 = vand.u32 4294901760, %v484_v12  ;;  %v13208_v28 = vsub.f32 %v465_v24, %v3700_v60  ;;  %v14972_v24 = vand.u32 4294901760, %v13144_v9  ;;  %14979 = vst [vmem:[#allocation50_spill] sm:$0xff] %v13244_v61 }
 0x214   :  { %9820 = vmatprep.mubr.msk.f32.mxu0 %vm11689_vm0, %v14949_v30  ;;  %v13233_v30 = vld [vmem:[%s14606_s7 + $0x130] sm:$0xff] }
 0x215   :  { %14970 = vst [vmem:[#allocation42_spill] sm:$0xff] %v13208_v28  ;;  %v8791_v57 = vpop.f32.mrb[4].mxu1  ;;  %v13226_v20 = vpack.c.bf16 %v3757_v4, %v3754_v48  ;;  %14976 = vst [vmem:[#allocation47_spill] sm:$0xff] %v13233_v30  ;;  %v13237_v33 = vsub.f32 %v484_v12, %v3757_v4  ;;  %v487_v48 = vld [vmem:[%s14606_s7 + $0xd0] sm:$0xff]  ;;  %v13254_v12 = vsub.f32 %v467_v16, %v3706_v31  ;;  %v3712_v4 = vand.u32 4294901760, %v469_v36 }
 0x216   :  { %10847 = vmatpush3.bf16.msra.mxu0 %v10846_v19  ;;  %10877 = vmatpush3.bf16.msra.mxu1 %v12858_v5  ;;  %v13197_v19 = vpack.c.bf16 %v3703_v29, %v3700_v60  ;;  %v485_v5 = vld [vmem:[%s14606_s7 + $0xc0] sm:$0xff]  ;;  %v13224_v60 = vpack.c.bf16 %v14972_v24, %v14687_v49  ;;  %v8792_v15 = vpop.f32.mrb[5].mxu1  ;;  %v13239_v29 = vpack.c.bf16 %v3709_v59, %v3706_v31  ;;  %v3763_v49 = vand.u32 4294901760, %v486_v26 }
 0x217   :  { %10848 = vmatprep.subr.bf16.mxu0 %v14948_v6  ;;  %10878 = vmatprep.subr.bf16.mxu1 %v14948_v6  ;;  %14974 = vst [vmem:[#allocation45_spill] sm:$0xff] %v13226_v20  ;;  %14977 = vst [vmem:[#allocation48_spill] sm:$0xff] %v13237_v33  ;;  %v3760_v24 = vand.u32 4294901760, %v485_v5  ;;  %v13264_v33 = vsub.f32 %v12993_v22, %v13206_v13  ;;  %v14984_v16 = vand.u32 4294901760, %v13180_v58  ;;  %v3766_v41 = vand.u32 4294901760, %v487_v48  ;;  %v13282_v22 = vld [vmem:[%s14606_s7 + $0x140] sm:$0xff] }
 0x218   :  { %14968 = vst [vmem:[#allocation40_spill] sm:$0xff] %v13197_v19  ;;  %14973 = vst [vmem:[#allocation44_spill] sm:$0xff] %v13224_v60  ;;  %v13299_v20 = vpack.c.bf16 %v3715_v39, %v3712_v4 }
 0x219   :  { %14978 = vst [vmem:[#allocation49_spill] sm:$0xff] %v13239_v29  ;;  %14980 = vst [vmem:[#allocation51_spill] sm:$0xff] %v13254_v12  ;;  %v471_v29 = vld [vmem:[%s14606_s7 + $0x50] sm:$0xff]  ;;  %v13301_v12 = vsub.f32 %v469_v36, %v3712_v4  ;;  %v474_v36 = vld [vmem:[%s14606_s7 + $0x68] sm:$0xff] }
 0x21a   :  { %10850 = vmatpush3.bf16.msra.mxu0 %v13053_v7  ;;  %10880 = vmatpush3.bf16.msra.mxu1 %v12880_v37  ;;  %v488_v7 = vld [vmem:[%s14606_s7 + $0xd8] sm:$0xff]  ;;  %v8793_v37 = vadd.f32 %v8792_v15, %v8791_v57  ;;  %14981 = vst [vmem:[#allocation52_spill] sm:$0xff] %v13264_v33  ;;  %v13266_v15 = vsub.f32 %v468_v45, %v3709_v59  ;;  %v14983_v57 = vand.u32 4294901760, %v13175_v11  ;;  %14986 = vst [vmem:[#allocation55_spill] sm:$0xff] %v13282_v22  ;;  %v13287_v45 = vld [vmem:[%s14606_s7 + $0x148] sm:$0xff] }
 0x21b   :  { %10851 = vmatprep.subr.bf16.mxu0 %v14948_v6  ;;  %10881 = vmatprep.subr.bf16.mxu1 %v14948_v6  ;;  %v3769_v60 = vand.u32 4294901760, %v488_v7  ;;  %14987 = vst [vmem:[#allocation56_spill] sm:$0xff] %v13287_v45  ;;  %v13293_v59 = vsub.f32 %v485_v5, %v3760_v24  ;;  %14991 = vst [vmem:[#allocation60_spill] sm:$0xff] %v13299_v20  ;;  %v13323_v4 = vld [vmem:[%s14606_s7 + $0x150] sm:$0xff]  ;;  %v13333_v5 = vsub.f32 %v487_v48, %v3766_v41 }
 0x21c   :  { %14982 = vst [vmem:[#allocation53_spill] sm:$0xff] %v13266_v15  ;;  %v13272_v31 = vpack.c.bf16 %v14984_v16, %v14983_v57  ;;  %v13276_v38 = vadd.f32 %v8793_v37, %v13047_v52  ;;  %v13291_v52 = vpack.c.bf16 %v3763_v49, %v3760_v24  ;;  %v3718_v37 = vand.u32 4294901760, %v471_v29  ;;  %14992 = vst [vmem:[#allocation61_spill] sm:$0xff] %v13301_v12 }
 0x21d   :  { %14989 = vst [vmem:[#allocation58_spill] sm:$0xff] %v13293_v59  ;;  %v3721_v57 = vand.u32 4294901760, %v472_v62  ;;  %v13297_v16 = vsub.f32 %v486_v26, %v3763_v49  ;;  %v13310_v24 = vsub.f32 %v470_v54, %v3715_v39  ;;  %v473_v26 = vld [vmem:[%s14606_s7 + $0x60] sm:$0xff]  ;;  %v14994_v39 = vand.u32 4294901760, %v13233_v30  ;;  %14998 = vst [vmem:[#allocation65_spill] sm:$0xff] %v13333_v5  ;;  %v475_v5 = vld [vmem:[%s14606_s7 + $0x70] sm:$0xff] }
 0x21e   :  { %14985 = vst [vmem:[#allocation54_spill] sm:$0xff] %v13272_v31  ;;  %10853 = vmatpush3.bf16.msra.mxu0 %v13066_v34  ;;  %10883 = vmatpush3.bf16.msra.mxu1 %v12900_v55  ;;  %14988 = vst [vmem:[#allocation57_spill] sm:$0xff] %v13291_v52  ;;  %v489_v55 = vld [vmem:[%s14606_s7 + $0xe0] sm:$0xff]  ;;  %v490_v34 = vld [vmem:[%s14606_s7 + $0xe8] sm:$0xff]  ;;  %v14995_v54 = vand.u32 4294901760, %v13244_v61  ;;  %v13331_v49 = vpack.c.bf16 %v3769_v60, %v3766_v41 }
 0x21f   :  { %10854 = vmatprep.subr.bf16.mxu0 %v14948_v6  ;;  %10884 = vmatprep.subr.bf16.mxu1 %v14948_v6  ;;  %14990 = vst [vmem:[#allocation59_spill] sm:$0xff] %v13297_v16  ;;  %14993 = vst [vmem:[#allocation62_spill] sm:$0xff] %v13310_v24  ;;  %v13335_v24 = vsub.f32 %v488_v7, %v3769_v60  ;;  %v13339_v12 = vpack.c.bf16 %v3721_v57, %v3718_v37  ;;  %v3772_v59 = vand.u32 4294901760, %v489_v55  ;;  %v491_v41 = vld [vmem:[%s14606_s7 + $0xf0] sm:$0xff] }
 0x220   :  { %v13329_v13 = vpack.c.bf16 %v14995_v54, %v14994_v39  ;;  %14997 = vst [vmem:[#allocation64_spill] sm:$0xff] %v13331_v49  ;;  %v13341_v16 = vsub.f32 %v471_v29, %v3718_v37  ;;  %v3775_v30 = vand.u32 4294901760, %v490_v34  ;;  %v13346_v39 = vld [vmem:[%s14606_s7 + $0x158] sm:$0xff]  ;;  %v3724_v60 = vand.u32 4294901760, %v473_v26 }
 0x221   :  { %14999 = vst [vmem:[#allocation66_spill] sm:$0xff] %v13335_v24  ;;  %15000 = vst [vmem:[#allocation67_spill] sm:$0xff] %v13339_v12  ;;  %v3727_v29 = vand.u32 4294901760, %v474_v36  ;;  %v15003_v7 = vand.u32 4294901760, %v13264_v33  ;;  %v15004_v54 = vand.u32 4294901760, %v13282_v22 }
 0x222   :  { %14996 = vst [vmem:[#allocation63_spill] sm:$0xff] %v13329_v13  ;;  %10856 = vmatpush3.bf16.msra.mxu0 %v13072_v17  ;;  %10886 = vmatpush3.bf16.msra.mxu1 %v12917_v32  ;;  %15001 = vst [vmem:[#allocation68_spill] sm:$0xff] %v13341_v16  ;;  %v492_v17 = vld [vmem:[%s14606_s7 + $0xf8] sm:$0xff]  ;;  %v13356_v32 = vsub.f32 %v472_v62, %v3721_v57  ;;  %v15005_v16 = vand.u32 4294901760, %v13287_v45  ;;  %v13384_v22 = vsub.f32 %v490_v34, %v3775_v30 }
 0x223   :  { %10857 = vmatprep.subr.bf16.mxu0 %v14948_v6  ;;  %10887 = vmatprep.subr.bf16.mxu1 %v14948_v6  ;;  %v3786_v37 = vsub.f32 %v13264_v33, %v15003_v7  ;;  %v476_v62 = vld [vmem:[%s14606_s7 + $0x78] sm:$0xff]  ;;  %v3778_v33 = vand.u32 4294901760, %v491_v41  ;;  %v13389_v7 = vpack.c.bf16 %v3727_v29, %v3724_v60  ;;  %v13391_v48 = vsub.f32 %v473_v26, %v3724_v60 }
 0x224   :  { %15002 = vst [vmem:[#allocation69_spill] sm:$0xff] %v13356_v32  ;;  %v13366_v24 = vpack.c.bf16 %v15005_v16, %v15004_v54  ;;  %v3781_v32 = vand.u32 4294901760, %v492_v17  ;;  %v13380_v16 = vpack.c.bf16 %v3775_v30, %v3772_v59  ;;  %v13382_v54 = vsub.f32 %v489_v55, %v3772_v59  ;;  %v13398_v30 = vld [vmem:[%s14606_s7 + $0x160] sm:$0xff]  ;;  %v13403_v59 = vld [vmem:[%s14606_s7 + $0x168] sm:$0xff] }
 0x225   :  { %15008 = vst [vmem:[#allocation72_spill] sm:$0xff] %v13389_v7  ;;  %v3730_v45 = vand.u32 4294901760, %v475_v5  ;;  %v3787_v61 = vand.u32 4294901760, %v3786_v37  ;;  %v15010_v55 = vand.u32 4294901760, %v13084_v56  ;;  %v15011_v26 = vand.u32 4294901760, %v13099_v2 }
 0x226   :  { %15006 = vst [vmem:[#allocation70_spill] sm:$0xff] %v13366_v24  ;;  %10859 = vmatpush3.bf16.msra.mxu0 %v13080_v3  ;;  %10889 = vmatpush3.bf16.msra.mxu1 %v12934_v40  ;;  %15007 = vst [vmem:[#allocation71_spill] sm:$0xff] %v13380_v16  ;;  %v3733_v3 = vand.u32 4294901760, %v476_v62  ;;  %v13393_v40 = vsub.f32 %v474_v36, %v3727_v29  ;;  %v15012_v36 = vand.u32 4294901760, %v13323_v4  ;;  %v15013_v29 = vand.u32 4294901760, %v13346_v39 }
 0x227   :  { %10860 = vmatprep.subr.bf16.mxu0 %v14948_v6  ;;  %11083 = vmatprep.subr.bf16.mxu1 %v13082_v53  ;;  %v3930_v34 = vsub.f32 %v13084_v56, %v15010_v55  ;;  %v3937_v60 = vsub.f32 %v13099_v2, %v15011_v26  ;;  %v13418_v57 = vpack.c.bf16 %v3781_v32, %v3778_v33  ;;  %v15017_v2 = vand.u32 4294901760, %v13121_v14 }
 0x228   :  { %15009 = vst [vmem:[#allocation73_spill] sm:$0xff] %v13393_v40  ;;  %v13416_v37 = vpack.c.bf16 %v15013_v29, %v15012_v36  ;;  %v13420_v53 = vsub.f32 %v491_v41, %v3778_v33  ;;  %v15016_v40 = vand.u32 4294901760, %v13119_v27  ;;  %v13427_v26 = vsub.f32 %v492_v17, %v3781_v32  ;;  %v13455_v17 = vld [vmem:[%s14606_s7 + $0x178] sm:$0xff] }
 0x229   :  { %9856 = vmatmul.mubr.f32.vlgmr.msra.gmra.mrb[14].mxu1 %v12958_v51  ;;  %15015 = vst [vmem:[#allocation75_spill] sm:$0xff] %v13418_v57  ;;  %v3825_v56 = vsub.f32 %v13121_v14, %v15017_v2  ;;  %v13436_v41 = vpack.c.bf16 %v3733_v3, %v3730_v45  ;;  %v15019_v32 = vand.u32 4294901760, %v13089_v44  ;;  %v13445_v36 = vsub.f32 %v475_v5, %v3730_v45 }
 0x22a   :  { %15014 = vst [vmem:[#allocation74_spill] sm:$0xff] %v13416_v37  ;;  %v3818_v55 = vsub.f32 %v13119_v27, %v15016_v40  ;;  %10862 = vmatpush3.bf16.msra.mxu0 %v13105_v18  ;;  %11085 = vmatpush3.bf16.msra.mxu1 %v13117_v43  ;;  %v8826_v33 = vpop.f32.mrb[8].mxu0  ;;  %v3931_v29 = vand.u32 4294901760, %v3930_v34  ;;  %v3938_v43 = vand.u32 4294901760, %v3937_v60  ;;  %v15021_v45 = vand.u32 4294901760, %v13094_v10 }
 0x22b   :  { %10863 = vmatprep.subr.bf16.mxu0 %v14948_v6  ;;  %11087 = vmatprep.subr.bf16.mxu1 %v13135_v42  ;;  %15018 = vst [vmem:[#allocation76_spill] sm:$0xff] %v13436_v41  ;;  %v13443_v40 = vsub.f32 %v13089_v44, %v15019_v32  ;;  %v8827_v2 = vpop.f32.mrb[9].mxu0  ;;  %v13450_v6 = vld [vmem:[%s14606_s7 + $0x170] sm:$0xff]  ;;  %v13458_v32 = vsub.f32 %v476_v62, %v3733_v3  ;;  %v3826_v34 = vand.u32 4294901760, %v3825_v56  ;;  %v15023_v60 = vand.u32 4294901760, %v13137_v47 }
 0x22c   :  { %3788 = vmatprep.mubr.f32.mxu1 %v3787_v61  ;;  %v8828_v44 = vadd.f32 %v8827_v2, %v8826_v33  ;;  %v3819_v61 = vand.u32 4294901760, %v3818_v55  ;;  %v13463_v5 = vsub.f32 %v13094_v10, %v15021_v45  ;;  %v15024_v18 = vand.u32 4294901760, %v13160_v50 }
 0x22d   :  { %15020 = vst [vmem:[#allocation77_spill] sm:$0xff] %v13443_v40  ;;  %v3944_v42 = vsub.f32 %v13137_v47, %v15023_v60  ;;  %v14729_v3 = vand.u32 4294901760, %v13166_v8  ;;  %v15025_v33 = vand.u32 4294901760, %v13398_v30  ;;  %v15026_v2 = vand.u32 4294901760, %v13403_v59 }
 0x22e   :  { %15022 = vst [vmem:[#allocation78_spill] sm:$0xff] %v13463_v5  ;;  %10865 = vmatpush3.bf16.msra.mxu0 %v13127_v23  ;;  %11089 = vmatpush3.bf16.msra.mxu1 %v13162_v46  ;;  %v3951_v62 = vsub.f32 %v13160_v50, %v15024_v18  ;;  %v13475_v55 = vadd.f32 %v8828_v44, %v13276_v38  ;;  %v15028_v38 = vand.u32 4294901760, %v13164_v0  ;;  %v15029_v10 = vand.u32 4294901760, %v13132_v25  ;;  %v15042_v46 = vld [vmem:[#allocation48_spill] sm:$0xff]  ;;  %v15048_v50 = vld [vmem:[#allocation49_spill] sm:$0xff] }
 0x22f   :  { %10891 = vmatprep.subr.bf16.mxu0 %v13187_v21  ;;  %11091 = vmatprep.subr.bf16.mxu1 %v13193_v63  ;;  %v13486_v18 = vpack.c.bf16 %v15026_v2, %v15025_v33  ;;  %v13488_v45 = vpack.c.bf16 %v3938_v43, %v3931_v29  ;;  %v15030_v43 = vand.u32 4294901760, %v13144_v9  ;;  %v15032_v2 = vld [vmem:[#allocation13_spill] sm:$0xff]  ;;  %v3839_v23 = vsub.f32 %v13166_v8, %v14729_v3 }
 0x230   :  { %v13493_v44 = vsub.f32 %v13164_v0, %v15028_v38  ;;  %v13502_v33 = vsub.f32 %v13132_v25, %v15029_v10  ;;  %v3945_v38 = vand.u32 4294901760, %v3944_v42  ;;  %v15033_v25 = vld [vmem:[#allocation44_spill] sm:$0xff]  ;;  %v13517_v10 = vpack.c.bf16 %v3826_v34, %v3819_v61  ;;  %v15039_v63 = vld [vmem:[#allocation45_spill] sm:$0xff]  ;;  %v15041_v34 = vld [vmem:[#allocation46_spill] sm:$0xff] }
 0x231   :  { %15027 = vst [vmem:[#allocation79_spill] sm:$0xff] %v13486_v18  ;;  %9821 = vmatmul.mubr.f32.vlgmr.msra.gmra.mrb[16].mxu0 %v12958_v51  ;;  %v13507_v29 = vsub.f32 %v13144_v9, %v15030_v43  ;;  %v3952_v51 = vand.u32 4294901760, %v3951_v62  ;;  %v15034_v9 = vand.u32 4294901760, %v13450_v6  ;;  %v15035_v43 = vand.u32 4294901760, %v13455_v17 }
 0x232   :  { %10893 = vmatpush3.bf16.msra.mxu0 %v13187_v21  ;;  %9890 = vmatprep.mubr.f32.mxu0 %v15032_v2  ;;  %v15037_v42 = vand.u32 4294901760, %v13443_v40  ;;  %v15038_v2 = vld [vmem:[#allocation43_spill] sm:$0xff]  ;;  %v3833_v56 = vand.u32 4294901760, %v13493_v44  ;;  %v15045_v21 = vand.u32 4294901760, %v13208_v28  ;;  %v15051_v0 = vand.u32 4294901760, %v15041_v34 }
 0x233   :  { %15031 = vst [vmem:[#allocation80_spill] sm:$0xff] %v13507_v29  ;;  %11093 = vmatpush3.bf16.msra.mxu1 %v13197_v19  ;;  %10895 = vmatprep.subr.bf16.mxu0 %v15033_v25  ;;  %v13523_v60 = vpack.c.bf16 %v15035_v43, %v15034_v9  ;;  %v15040_v19 = vand.u32 4294901760, %v13189_v35  ;;  %v15043_v9 = vand.u32 4294901760, %v13463_v5  ;;  %v15049_v44 = vand.u32 4294901760, %v15038_v2 }
 0x234   :  { %v3108_v62 = vsub.f32 %v13443_v40, %v15037_v42  ;;  %11095 = vmatprep.subr.bf16.mxu1 %v15039_v63  ;;  %v15044_v42 = vand.u32 4294901760, %v13195_v1  ;;  %v13545_v40 = vpack.c.bf16 %v3952_v51, %v3945_v38  ;;  %v3846_v8 = vsub.f32 %v13208_v28, %v15045_v21  ;;  %v15050_v51 = vld [vmem:[#allocation2_spill] sm:$0xff] }
 0x235   :  { %15036 = vst [vmem:[#allocation13_spill] sm:$0xff] %v13523_v60  ;;  %v3958_v61 = vsub.f32 %v13189_v35, %v15040_v19  ;;  %v3115_v43 = vsub.f32 %v13463_v5, %v15043_v9  ;;  %v3840_v19 = vand.u32 4294901760, %v3839_v23  ;;  %v15046_v35 = vld [vmem:[#allocation51_spill] sm:$0xff]  ;;  %v3853_v38 = vsub.f32 %v15038_v2, %v15049_v44  ;;  %v8861_v28 = vpop.f32.mrb[6].mxu1 }
 0x236   :  { %v3965_v3 = vsub.f32 %v13195_v1, %v15044_v42  ;;  %10897 = vmatpush3.bf16.msra.mxu0 %v15033_v25  ;;  %v15047_v9 = vld [vmem:[#allocation15_spill] sm:$0xff]  ;;  %v3109_v42 = vand.u32 4294901760, %v3108_v62  ;;  %v13561_v63 = vand.u32 4294901760, %v15050_v51  ;;  %v3972_v25 = vsub.f32 %v15041_v34, %v15051_v0 }
 0x237   :  { %v13552_v5 = vand.u32 4294901760, %v15047_v9  ;;  %11097 = vmatpush3.bf16.msra.mxu1 %v15048_v50  ;;  %10899 = vmatprep.subr.bf16.mxu0 %v13272_v31  ;;  %v3959_v21 = vand.u32 4294901760, %v3958_v61  ;;  %v15052_v50 = vand.u32 4294901760, %v15042_v46  ;;  %v3116_v1 = vand.u32 4294901760, %v3115_v43  ;;  %v8862_v61 = vpop.f32.mrb[7].mxu1 }
 0x238   :  { %11099 = vmatprep.subr.bf16.mxu1 %v13291_v52  ;;  %v3966_v47 = vand.u32 4294901760, %v3965_v3  ;;  %v15053_v44 = vand.u32 4294901760, %v13502_v33  ;;  %v15054_v2 = vand.u32 4294901760, %v13507_v29  ;;  %v3847_v14 = vand.u32 4294901760, %v3846_v8 }
 0x239   :  { %v3979_v62 = vsub.f32 %v15042_v46, %v15052_v50  ;;  %v15055_v0 = vand.u32 4294901760, %v15046_v35  ;;  %v15056_v50 = vand.u32 4294901760, %v13175_v11  ;;  %v15057_v43 = vand.u32 4294901760, %v13180_v58 }
 0x23a   :  { %v3122_v23 = vsub.f32 %v13502_v33, %v15053_v44  ;;  %v3129_v52 = vsub.f32 %v13507_v29, %v15054_v2  ;;  %10901 = vmatpush3.bf16.msra.mxu0 %v13272_v31  ;;  %v13592_v2 = vsub.f32 %v15047_v9, %v13552_v5  ;;  %v8863_v31 = vadd.f32 %v8862_v61, %v8861_v28 }
 0x23b   :  { %v3860_v34 = vsub.f32 %v15046_v35, %v15055_v0  ;;  %v13583_v3 = vsub.f32 %v13175_v11, %v15056_v50  ;;  %v13588_v44 = vsub.f32 %v13180_v58, %v15057_v43  ;;  %11101 = vmatpush3.bf16.msra.mxu1 %v13299_v20  ;;  %10903 = vmatprep.subr.bf16.mxu0 %v13329_v13  ;;  %v3854_v8 = vand.u32 4294901760, %v3853_v38  ;;  %v15060_v50 = vld [vmem:[#allocation24_spill] sm:$0xff]  ;;  %v15062_v20 = vld [vmem:[#allocation58_spill] sm:$0xff] }
 0x23c   :  { %15058 = vst [vmem:[#allocation15_spill] sm:$0xff] %v13592_v2  ;;  %v15059_v0 = vand.u32 4294901760, %v13266_v15  ;;  %v13600_v35 = vand.u32 4294901760, %v15060_v50  ;;  %v13604_v58 = vsub.f32 %v15050_v51, %v13561_v63  ;;  %11103 = vmatprep.subr.bf16.mxu1 %v13331_v49  ;;  %v3973_v9 = vand.u32 4294901760, %v3972_v25 }
 0x23d   :  { %v3980_v28 = vand.u32 4294901760, %v3979_v62  ;;  %v13608_v61 = vadd.f32 %v8863_v31, %v13475_v55  ;;  %v3123_v43 = vand.u32 4294901760, %v3122_v23  ;;  %v3130_v38 = vand.u32 4294901760, %v3129_v52 }
 0x23e   :  { %v3867_v11 = vsub.f32 %v13266_v15, %v15059_v0  ;;  %15061 = vst [vmem:[#allocation2_spill] sm:$0xff] %v13604_v58  ;;  %v14773_v46 = vand.u32 4294901760, %v15062_v20  ;;  %10905 = vmatpush3.bf16.msra.mxu0 %v13329_v13  ;;  %v13612_v0 = vpack.c.bf16 %v3840_v19, %v3833_v56  ;;  %v13614_v15 = vpack.c.bf16 %v3116_v1, %v3109_v42 }
 0x23f   :  { %v14775_v51 = vand.u32 4294901760, %v13583_v3  ;;  %v14774_v29 = vand.u32 4294901760, %v13588_v44  ;;  %v14776_v25 = vand.u32 4294901760, %v13592_v2  ;;  %11105 = vmatpush3.bf16.msra.mxu1 %v13339_v12  ;;  %10907 = vmatprep.subr.bf16.mxu0 %v13366_v24  ;;  %v13621_v31 = vpack.c.bf16 %v3966_v47, %v3959_v21  ;;  %v15087_v12 = vld [vmem:[#allocation56_spill] sm:$0xff] }
 0x240   :  { %v3861_v52 = vand.u32 4294901760, %v3860_v34  ;;  %v3868_v55 = vand.u32 4294901760, %v3867_v11  ;;  %v13625_v56 = vsub.f32 %v15060_v50, %v13600_v35  ;;  %11107 = vmatprep.subr.bf16.mxu1 %v13380_v16  ;;  %v14779_v1 = vand.u32 4294901760, %v13604_v58  ;;  %v15066_v50 = vld [vmem:[#allocation59_spill] sm:$0xff] }
 0x241   :  { %v13629_v19 = vpack.c.bf16 %v3854_v8, %v3847_v14  ;;  %v13631_v42 = vpack.c.bf16 %v3980_v28, %v3973_v9  ;;  %v13633_v23 = vpack.c.bf16 %v3130_v38, %v3123_v43  ;;  %v13638_v47 = vsub.f32 %v15062_v20, %v14773_v46  ;;  %v15067_v28 = vld [vmem:[#allocation61_spill] sm:$0xff]  ;;  %v15068_v38 = vld [vmem:[#allocation62_spill] sm:$0xff] }
 0x242   :  { %15063 = vst [vmem:[#allocation24_spill] sm:$0xff] %v13625_v56  ;;  %v15064_v34 = vand.u32 4294901760, %v13398_v30  ;;  %v15065_v62 = vand.u32 4294901760, %v13403_v59  ;;  %10909 = vmatpush3.bf16.msra.mxu0 %v13366_v24  ;;  %v3136_v14 = vsub.f32 %v13583_v3, %v14775_v51  ;;  %v3143_v8 = vsub.f32 %v13588_v44, %v14774_v29 }
 0x243   :  { %v3792_v43 = vsub.f32 %v13592_v2, %v14776_v25  ;;  %11109 = vmatpush3.bf16.msra.mxu1 %v13389_v7  ;;  %10911 = vmatprep.subr.bf16.mxu0 %v13416_v37  ;;  %v3801_v51 = vsub.f32 %v13604_v58, %v14779_v1  ;;  %v15071_v9 = vand.u32 4294901760, %v13450_v6  ;;  %v15073_v25 = vand.u32 4294901760, %v15066_v50 }
 0x244   :  { %v13643_v21 = vsub.f32 %v13398_v30, %v15064_v34  ;;  %v13648_v11 = vsub.f32 %v13403_v59, %v15065_v62  ;;  %v13664_v59 = vpack.c.bf16 %v3868_v55, %v3861_v52  ;;  %v15069_v62 = vld [vmem:[#allocation47_spill] sm:$0xff]  ;;  %11111 = vmatprep.subr.bf16.mxu1 %v13418_v57  ;;  %v3137_v1 = vand.u32 4294901760, %v3136_v14  ;;  %v15074_v55 = vld [vmem:[#allocation50_spill] sm:$0xff]  ;;  %v15079_v14 = vld [vmem:[#allocation65_spill] sm:$0xff] }
 0x245   :  { %v15070_v46 = vand.u32 4294901760, %v15069_v62  ;;  %v3993_v52 = vsub.f32 %v15066_v50, %v15073_v25  ;;  %v15075_v30 = vand.u32 4294901760, %v15074_v55  ;;  %v3793_v24 = vand.u32 4294901760, %v3792_v43 }
 0x246   :  { %10913 = vmatpush3.bf16.msra.mxu0 %v13416_v37  ;;  %v15080_v37 = vld [vmem:[#allocation66_spill] sm:$0xff]  ;;  %v15081_v16 = vand.u32 4294901760, %v13643_v21  ;;  %v3802_v25 = vand.u32 4294901760, %v3801_v51  ;;  %v15088_v49 = vand.u32 4294901760, %v15087_v12  ;;  %v15090_v51 = vand.u32 4294901760, %v15068_v38 }
 0x247   :  { %v13670_v29 = vsub.f32 %v15069_v62, %v15070_v46  ;;  %v13684_v46 = vsub.f32 %v13450_v6, %v15071_v9  ;;  %v15072_v62 = vand.u32 4294901760, %v13455_v17  ;;  %v13698_v34 = vsub.f32 %v15074_v55, %v15075_v30  ;;  %11113 = vmatpush3.bf16.msra.mxu1 %v13436_v41  ;;  %10915 = vmatprep.subr.bf16.mxu0 %v13486_v18 }
 0x248   :  { %v15076_v6 = vand.u32 4294901760, %v13445_v36  ;;  %v15077_v9 = vand.u32 4294901760, %v13458_v32  ;;  %v15082_v30 = vand.u32 4294901760, %v13648_v11  ;;  %11115 = vmatprep.subr.bf16.mxu1 %v13488_v45  ;;  %v15097_v43 = vand.u32 4294901760, %v15080_v37 }
 0x249   :  { %v13689_v57 = vsub.f32 %v13455_v17, %v15072_v62  ;;  %v3144_v17 = vand.u32 4294901760, %v3143_v8  ;;  %v15085_v8 = vld [vmem:[#allocation55_spill] sm:$0xff] }
 0x24a   :  { %v13704_v7 = vpack.c.bf16 %v15077_v9, %v15076_v6  ;;  %v13714_v55 = vpack.c.bf16 %v15082_v30, %v15081_v16  ;;  %v15084_v6 = vand.u32 4294901760, %v13625_v56  ;;  %v15086_v41 = vand.u32 4294901760, %v15085_v8  ;;  %3794 = vmatmul.mubr.f32.vlgmr.msra.gmra.mrb[16].mxu1 %v3793_v24  ;;  %10917 = vmatpush3.bf16.msra.mxu0 %v13486_v18 }
 0x24b   :  { %v13729_v16 = vsub.f32 %v15087_v12, %v15088_v49  ;;  %v3987_v30 = vand.u32 4294901760, %v13638_v47  ;;  %v8896_v49 = vpop.f32.mrb[10].mxu0  ;;  %3803 = vmatprep.mubr.f32.mxu1 %v3802_v25  ;;  %11117 = vmatpush3.bf16.msra.mxu1 %v13517_v10  ;;  %v3994_v24 = vand.u32 4294901760, %v3993_v52  ;;  %v15092_v47 = vld [vmem:[#allocation69_spill] sm:$0xff]  ;;  %v13757_v25 = vpack.c.bf16 %v3144_v17, %v3137_v1 }
 0x24c   :  { %15078 = vst [vmem:[#allocation58_spill] sm:$0xff] %v13704_v7  ;;  %15083 = vst [vmem:[#allocation59_spill] sm:$0xff] %v13714_v55  ;;  %v3807_v9 = vsub.f32 %v13625_v56, %v15084_v6  ;;  %v13724_v62 = vsub.f32 %v15085_v8, %v15086_v41  ;;  %v15089_v6 = vand.u32 4294901760, %v15067_v28  ;;  %v13743_v8 = vsub.f32 %v15068_v38, %v15090_v51  ;;  %v15091_v7 = vld [vmem:[#allocation68_spill] sm:$0xff]  ;;  %v8897_v13 = vpop.f32.mrb[11].mxu0 }
 0x24d   :  { %v15093_v55 = vand.u32 4294901760, %v13684_v46  ;;  %10919 = vmatprep.subr.bf16.mxu0 %v13523_v60  ;;  %11119 = vmatprep.subr.bf16.mxu1 %v13545_v40  ;;  %v15096_v10 = vand.u32 4294901760, %v15079_v14  ;;  %v4007_v45 = vsub.f32 %v15080_v37, %v15097_v43  ;;  %v8898_v12 = vadd.f32 %v8897_v13, %v8896_v49 }
 0x24e   :  { %v13738_v41 = vsub.f32 %v15067_v28, %v15089_v6  ;;  %v15094_v6 = vand.u32 4294901760, %v13689_v57  ;;  %v3808_v51 = vand.u32 4294901760, %v3807_v9  ;;  %10921 = vmatpush3.bf16.msra.mxu0 %v13523_v60  ;;  %v15099_v40 = vand.u32 4294901760, %v13698_v34 }
 0x24f   :  { %v4000_v52 = vsub.f32 %v15079_v14, %v15096_v10  ;;  %v15100_v17 = vand.u32 4294901760, %v13323_v4  ;;  %v15102_v13 = vand.u32 4294901760, %v13346_v39  ;;  %v13785_v10 = vadd.f32 %v8898_v12, %v13608_v61  ;;  %11121 = vmatpush3.bf16.msra.mxu1 %v13612_v0  ;;  %10923 = vmatprep.subr.bf16.mxu0 %v13614_v15 }
 0x250   :  { %v13753_v18 = vpack.c.bf16 %v15094_v6, %v15093_v55  ;;  %v15098_v55 = vand.u32 4294901760, %v13670_v29  ;;  %3809 = vmatmul.mubr.f32.gmra.mrb[18].mxu1 %v3808_v51  ;;  %v3157_v1 = vsub.f32 %v13698_v34, %v15099_v40  ;;  %v15104_v51 = vld [vmem:[#allocation41_spill] sm:$0xff]  ;;  %v15105_v40 = vand.u32 4294901760, %v15091_v7  ;;  %11123 = vmatprep.subr.bf16.mxu1 %v13621_v31 }
 0x251   :  { %v13777_v43 = vsub.f32 %v13323_v4, %v15100_v17  ;;  %v13782_v49 = vsub.f32 %v13346_v39, %v15102_v13  ;;  %4039 = vmatprep.mubr.f32.mxu1 %v15104_v51  ;;  %v15106_v4 = vand.u32 4294901760, %v15092_v47  ;;  %v11130_v39 = vpack.c.bf16 %v3994_v24, %v3987_v30  ;;  %v15109_v31 = vld [vmem:[#allocation73_spill] sm:$0xff] }
 0x252   :  { %15095 = vst [vmem:[#allocation61_spill] sm:$0xff] %v13753_v18  ;;  %v3150_v6 = vsub.f32 %v13670_v29, %v15098_v55  ;;  %v14800_v18 = vand.u32 4294901760, %v13724_v62  ;;  %v3875_v55 = vand.u32 4294901760, %v13738_v41  ;;  %v3888_v9 = vsub.f32 %v15091_v7, %v15105_v40  ;;  %v15107_v41 = vld [vmem:[#allocation14_spill] sm:$0xff] }
 0x253   :  { %15101 = vst [vmem:[#allocation62_spill] sm:$0xff] %v13777_v43  ;;  %15103 = vst [vmem:[#allocation47_spill] sm:$0xff] %v13782_v49  ;;  %v3895_v17 = vsub.f32 %v15092_v47, %v15106_v4  ;;  %v3882_v61 = vand.u32 4294901760, %v13743_v8  ;;  %9891 = vmatmul.mubr.f32.vlgmr.msra.gmra.mrb[18].mxu0 %v15107_v41  ;;  %v15108_v40 = vand.u32 4294901760, %v13729_v16  ;;  %v15110_v8 = vld [vmem:[#allocation5_spill] sm:$0xff]  ;;  %v4001_v24 = vand.u32 4294901760, %v4000_v52  ;;  %11125 = vmatpush3.bf16.msra.mxu1 %v13629_v19 }
 0x254   :  { %v3164_v13 = vsub.f32 %v13724_v62, %v14800_v18  ;;  %10925 = vmatpush3.bf16.msra.mxu0 %v13614_v15  ;;  %9925 = vmatprep.mubr.f32.mxu0 %v15110_v8  ;;  %v4008_v12 = vand.u32 4294901760, %v4007_v45  ;;  %v3151_v18 = vand.u32 4294901760, %v3150_v6  ;;  %v3889_v60 = vand.u32 4294901760, %v3888_v9 }
 0x255   :  { %v3171_v4 = vsub.f32 %v13729_v16, %v15108_v40  ;;  %10927 = vmatprep.subr.bf16.mxu0 %v13633_v23  ;;  %v3158_v40 = vand.u32 4294901760, %v3157_v1  ;;  %v3896_v51 = vand.u32 4294901760, %v3895_v17  ;;  %11127 = vmatprep.subr.bf16.mxu1 %v13631_v42  ;;  %v15111_v15 = vand.u32 4294901760, %v13382_v54  ;;  %v8931_v2 = vpop.f32.mrb[8].mxu1 }
 0x256   :  { %v15112_v45 = vand.u32 4294901760, %v13384_v22  ;;  %v3165_v41 = vand.u32 4294901760, %v3164_v13  ;;  %v15113_v6 = vand.u32 4294901760, %v13391_v48  ;;  %v15114_v42 = vand.u32 4294901760, %v15109_v31 }
 0x257   :  { %v4014_v30 = vsub.f32 %v13382_v54, %v15111_v15  ;;  %v3172_v8 = vand.u32 4294901760, %v3171_v4  ;;  %v15115_v17 = vand.u32 4294901760, %v13777_v43  ;;  %11129 = vmatpush3.bf16.msra.mxu1 %v13664_v59  ;;  %v11132_v13 = vpack.c.bf16 %v3882_v61, %v3875_v55 }
 0x258   :  { %v4021_v52 = vsub.f32 %v13384_v22, %v15112_v45  ;;  %v3902_v9 = vsub.f32 %v13391_v48, %v15113_v6  ;;  %v3909_v1 = vsub.f32 %v15109_v31, %v15114_v42  ;;  %10929 = vmatpush3.bf16.msra.mxu0 %v13633_v23  ;;  %v15116_v45 = vand.u32 4294901760, %v13782_v49  ;;  %11131 = vmatprep.subr.bf16.mxu1 %v11130_v39  ;;  %v8932_v31 = vpop.f32.mrb[9].mxu1 }
 0x259   :  { %v3178_v15 = vsub.f32 %v13777_v43, %v15115_v17  ;;  %10931 = vmatprep.subr.bf16.mxu0 %v13757_v25  ;;  %v10934_v4 = vpack.c.bf16 %v3158_v40, %v3151_v18  ;;  %v11134_v6 = vpack.c.bf16 %v4008_v12, %v4001_v24  ;;  %v4015_v0 = vand.u32 4294901760, %v4014_v30 }
 0x25a   :  { %v3185_v19 = vsub.f32 %v13782_v49, %v15116_v45  ;;  %v4022_v42 = vand.u32 4294901760, %v4021_v52  ;;  %v15117_v23 = vand.u32 4294901760, %v13420_v53  ;;  %v15118_v17 = vand.u32 4294901760, %v13427_v26 }
 0x25b   :  { %v11136_v45 = vpack.c.bf16 %v3896_v51, %v3889_v60  ;;  %v10938_v49 = vpack.c.bf16 %v3172_v8, %v3165_v41  ;;  %v3903_v59 = vand.u32 4294901760, %v3902_v9  ;;  %v3910_v43 = vand.u32 4294901760, %v3909_v1  ;;  %11133 = vmatpush3.bf16.msra.mxu1 %v11132_v13 }
 0x25c   :  { %v4028_v56 = vsub.f32 %v13420_v53, %v15117_v23  ;;  %v4035_v58 = vsub.f32 %v13427_v26, %v15118_v17  ;;  %10933 = vmatpush3.bf16.msra.mxu0 %v13757_v25  ;;  %v3179_v18 = vand.u32 4294901760, %v3178_v15  ;;  %v3186_v55 = vand.u32 4294901760, %v3185_v19  ;;  %11135 = vmatprep.subr.bf16.mxu1 %v11134_v6  ;;  %v15126_v6 = vld [vmem:[#allocation29_spill] sm:$0xff] }
 0x25d   :  { %v15119_v39 = vand.u32 4294901760, %v13445_v36  ;;  %v15120_v12 = vand.u32 4294901760, %v13458_v32  ;;  %v8933_v24 = vadd.f32 %v8932_v31, %v8931_v2  ;;  %10935 = vmatprep.subr.bf16.mxu0 %v10934_v4  ;;  %v15121_v60 = vand.u32 4294901760, %v13643_v21 }
 0x25e   :  { %v15122_v8 = vand.u32 4294901760, %v13648_v11  ;;  %v11138_v41 = vpack.c.bf16 %v4022_v42, %v4015_v0  ;;  %v4029_v40 = vand.u32 4294901760, %v4028_v56  ;;  %v4036_v52 = vand.u32 4294901760, %v4035_v58 }
 0x25f   :  { %v3916_v61 = vsub.f32 %v13445_v36, %v15119_v39  ;;  %v3923_v30 = vsub.f32 %v13458_v32, %v15120_v12  ;;  %v3192_v51 = vsub.f32 %v13643_v21, %v15121_v60  ;;  %v13860_v19 = vadd.f32 %v8933_v24, %v13785_v10  ;;  %11137 = vmatpush3.bf16.msra.mxu1 %v11136_v45  ;;  %v15131_v24 = vld [vmem:[#allocation17_spill] sm:$0xff] }
 0x260   :  { %v3199_v25 = vsub.f32 %v13648_v11, %v15122_v8  ;;  %10937 = vmatpush3.bf16.msra.mxu0 %v10934_v4  ;;  %v11140_v9 = vpack.c.bf16 %v3910_v43, %v3903_v59  ;;  %v10942_v2 = vpack.c.bf16 %v3186_v55, %v3179_v18  ;;  %11139 = vmatprep.subr.bf16.mxu1 %v11138_v41  ;;  %v15123_v17 = vand.u32 4294901760, %v13684_v46  ;;  %v15125_v4 = vld [vmem:[#allocation28_spill] sm:$0xff]  ;;  %v15127_v18 = vld [vmem:[#allocation31_spill] sm:$0xff]  ;;  %v15133_v8 = vld [vmem:[#allocation78_spill] sm:$0xff] }
 0x261   :  { %10939 = vmatprep.subr.bf16.mxu0 %v10938_v49  ;;  %v3917_v31 = vand.u32 4294901760, %v3916_v61  ;;  %v3924_v1 = vand.u32 4294901760, %v3923_v30  ;;  %v3193_v15 = vand.u32 4294901760, %v3192_v51  ;;  %v11142_v23 = vpack.c.bf16 %v4036_v52, %v4029_v40  ;;  %v15128_v61 = vld [vmem:[#allocation33_spill] sm:$0xff]  ;;  %v15130_v30 = vld [vmem:[#allocation16_spill] sm:$0xff]  ;;  %v15135_v40 = vld [vmem:[#allocation39_spill] sm:$0xff] }
 0x262   :  { %v3200_v13 = vand.u32 4294901760, %v3199_v25  ;;  %v3206_v0 = vsub.f32 %v13684_v46, %v15123_v17  ;;  %v15124_v58 = vand.u32 4294901760, %v13689_v57  ;;  %v11146_v42 = vpack.c.bf16 %v15126_v6, %v15125_v4  ;;  %v15132_v51 = vld [vmem:[#allocation77_spill] sm:$0xff]  ;;  %v15141_v17 = vld [vmem:[#allocation48_spill] sm:$0xff] }
 0x263   :  { %11141 = vmatpush3.bf16.msra.mxu1 %v11140_v9  ;;  %v11144_v43 = vpack.c.bf16 %v3924_v1, %v3917_v31  ;;  %v11148_v55 = vpack.c.bf16 %v15127_v18, %v13119_v27  ;;  %v11152_v60 = vpack.c.bf16 %v15131_v24, %v15130_v30  ;;  %v10954_v25 = vpack.c.bf16 %v15133_v8, %v15132_v51  ;;  %v15134_v41 = vld [vmem:[#allocation37_spill] sm:$0xff]  ;;  %v15136_v9 = vld [vmem:[#allocation52_spill] sm:$0xff]  ;;  %v15138_v31 = vld [vmem:[#allocation43_spill] sm:$0xff] }
 0x264   :  { %v3213_v56 = vsub.f32 %v13689_v57, %v15124_v58  ;;  %10941 = vmatpush3.bf16.msra.mxu0 %v10938_v49  ;;  %v10946_v10 = vpack.c.bf16 %v3200_v13, %v3193_v15  ;;  %11143 = vmatprep.subr.bf16.mxu1 %v11142_v23  ;;  %v3207_v45 = vand.u32 4294901760, %v3206_v0  ;;  %v15129_v49 = vld [vmem:[#allocation34_spill] sm:$0xff]  ;;  %v11154_v52 = vpack.c.bf16 %v15135_v40, %v15134_v41  ;;  %v15139_v15 = vld [vmem:[#allocation80_spill] sm:$0xff] }
 0x265   :  { %10943 = vmatprep.subr.bf16.mxu0 %v10942_v2  ;;  %v11150_v12 = vpack.c.bf16 %v15129_v49, %v15128_v61  ;;  %v10958_v13 = vpack.c.bf16 %v15139_v15, %v13502_v33  ;;  %v15140_v23 = vld [vmem:[#allocation46_spill] sm:$0xff]  ;;  %v15142_v58 = vld [vmem:[#allocation8_spill] sm:$0xff] }
 0x266   :  { %v3214_v59 = vand.u32 4294901760, %v3213_v56  ;;  %v11158_v0 = vpack.c.bf16 %v15141_v17, %v15140_v23  ;;  %v15143_v56 = vld [vmem:[#allocation7_spill] sm:$0xff] }
 0x267   :  { %11145 = vmatpush3.bf16.msra.mxu1 %v11144_v43  ;;  %v15144_v43 = vld [vmem:[#allocation51_spill] sm:$0xff] }
 0x268   :  { %10945 = vmatpush3.bf16.msra.mxu0 %v10942_v2  ;;  %11147 = vmatprep.subr.bf16.mxu1 %v11146_v42  ;;  %v10950_v39 = vpack.c.bf16 %v3214_v59, %v3207_v45  ;;  %v15137_v2 = vld [vmem:[#allocation42_spill] sm:$0xff]  ;;  %v10962_v45 = vpack.c.bf16 %v13588_v44, %v13583_v3  ;;  %v11162_v59 = vpack.c.bf16 %v15066_v50, %v15062_v20 }
 0x269   :  { %10947 = vmatprep.subr.bf16.mxu0 %v10946_v10  ;;  %v11156_v1 = vpack.c.bf16 %v15138_v31, %v15137_v2 }
 0x26a   :  { %4041 = vmatmul.mubr.f32.vlgmr.msra.gmra.mrb[20].mxu1 %v13552_v5 }
 0x26b   :  { %4046 = vmatprep.mubr.f32.mxu1 %v13561_v63  ;;  %11149 = vmatpush3.bf16.msra.mxu1 %v11148_v55  ;;  %v11164_v55 = vpack.c.bf16 %v15068_v38, %v15067_v28 }
 0x26c   :  { %10949 = vmatpush3.bf16.msra.mxu0 %v10946_v10  ;;  %11151 = vmatprep.subr.bf16.mxu1 %v11150_v12  ;;  %v15145_v10 = vld [vmem:[#allocation53_spill] sm:$0xff]  ;;  %v11166_v12 = vpack.c.bf16 %v15080_v37, %v15079_v14 }
 0x26d   :  { %10951 = vmatprep.subr.bf16.mxu0 %v10950_v39  ;;  %v11160_v42 = vpack.c.bf16 %v15145_v10, %v15144_v43 }
 0x26e   :  { %4048 = vmatmul.mubr.f32.gmra.mrb[22].mxu1 %v13600_v35 }
 0x26f   :  { %11153 = vmatpush3.bf16.msra.mxu1 %v11152_v60  ;;  %4183 = vmatprep.mubr.f32.mxu1 %v15136_v9  ;;  %v11168_v60 = vpack.c.bf16 %v15092_v47, %v15091_v7 }
 0x270   :  { %10953 = vmatpush3.bf16.msra.mxu0 %v10950_v39  ;;  %11155 = vmatprep.subr.bf16.mxu1 %v11154_v52  ;;  %v10966_v39 = vpack.c.bf16 %v13698_v34, %v13670_v29  ;;  %v11170_v52 = vpack.c.bf16 %v13384_v22, %v13382_v54 }
 0x271   :  { %10955 = vmatprep.subr.bf16.mxu0 %v10954_v25 }
 0x273   :  { %9926 = vmatmul.mubr.f32.vlgmr.msra.gmra.mrb[18].mxu0 %v15142_v58  ;;  %11157 = vmatpush3.bf16.msra.mxu1 %v11156_v1  ;;  %v15146_v1 = vld [vmem:[#allocation73_spill] sm:$0xff]  ;;  %v15168_v58 = vld [vmem:[#allocation63_spill] sm:$0xff] }
 0x274   :  { %10957 = vmatpush3.bf16.msra.mxu0 %v10954_v25  ;;  %9960 = vmatprep.mubr.f32.mxu0 %v15143_v56  ;;  %v10970_v25 = vpack.c.bf16 %v13729_v16, %v13724_v62  ;;  %v15148_v56 = vld [vmem:[#allocation47_spill] sm:$0xff] }
 0x275   :  { %10959 = vmatprep.subr.bf16.mxu0 %v10958_v13  ;;  %11159 = vmatprep.subr.bf16.mxu1 %v11158_v0  ;;  %v15147_v0 = vld [vmem:[#allocation62_spill] sm:$0xff] }
 0x277   :  { %11161 = vmatpush3.bf16.msra.mxu1 %v11160_v42  ;;  %v10974_v42 = vpack.c.bf16 %v15148_v56, %v15147_v0 }
 0x278   :  { %10961 = vmatpush3.bf16.msra.mxu0 %v10958_v13  ;;  %11163 = vmatprep.subr.bf16.mxu1 %v11162_v59  ;;  %v11172_v13 = vpack.c.bf16 %v15146_v1, %v13391_v48  ;;  %v11176_v59 = vpack.c.bf16 %v13458_v32, %v13445_v36  ;;  %v15153_v36 = vld [vmem:[#allocation32_spill] sm:$0xff] }
 0x279   :  { %10963 = vmatprep.subr.bf16.mxu0 %v10962_v45  ;;  %v15154_v32 = vld [vmem:[#allocation24_spill] sm:$0xff] }
 0x27b   :  { %11165 = vmatpush3.bf16.msra.mxu1 %v11164_v55  ;;  %v10978_v55 = vpack.c.bf16 %v13648_v11, %v13643_v21  ;;  %v15155_v21 = vld [vmem:[#allocation35_spill] sm:$0xff]  ;;  %v15156_v11 = vand.u32 4294901760, %v15136_v9  ;;  %v15164_v9 = vld [vmem:[#allocation49_spill] sm:$0xff] }
 0x27c   :  { %10965 = vmatpush3.bf16.msra.mxu0 %v10962_v45  ;;  %11167 = vmatprep.subr.bf16.mxu1 %v11166_v12  ;;  %v11174_v45 = vpack.c.bf16 %v13427_v26, %v13420_v53  ;;  %v10982_v12 = vpack.c.bf16 %v13689_v57, %v13684_v46  ;;  %v15158_v57 = vld [vmem:[#allocation38_spill] sm:$0xff] }
 0x27d   :  { %10967 = vmatprep.subr.bf16.mxu0 %v10966_v39  ;;  %v15159_v46 = vld [vmem:[#allocation10_spill] sm:$0xff] }
 0x27f   :  { %11169 = vmatpush3.bf16.msra.mxu1 %v11168_v60  ;;  %v15150_v60 = vld [vmem:[#allocation15_spill] sm:$0xff] }
 0x280   :  { %10969 = vmatpush3.bf16.msra.mxu0 %v10966_v39  ;;  %11171 = vmatprep.subr.bf16.mxu1 %v11170_v52  ;;  %v15149_v39 = vld [vmem:[#allocation26_spill] sm:$0xff] }
 0x281   :  { %10971 = vmatprep.subr.bf16.mxu0 %v10970_v25  ;;  %v15152_v52 = vld [vmem:[#allocation30_spill] sm:$0xff] }
 0x283   :  { %11173 = vmatpush3.bf16.msra.mxu1 %v11172_v13  ;;  %v15157_v13 = vld [vmem:[#allocation36_spill] sm:$0xff] }
 0x284   :  { %10973 = vmatpush3.bf16.msra.mxu0 %v10970_v25  ;;  %11175 = vmatprep.subr.bf16.mxu1 %v11174_v45  ;;  %v15151_v25 = vld [vmem:[#allocation2_spill] sm:$0xff]  ;;  %v15161_v45 = vld [vmem:[#allocation40_spill] sm:$0xff] }
 0x285   :  { %10975 = vmatprep.subr.bf16.mxu0 %v10974_v42 }
 0x287   :  { %11177 = vmatpush3.bf16.msra.mxu1 %v11176_v59  ;;  %v15162_v59 = vld [vmem:[#allocation44_spill] sm:$0xff] }
 0x288   :  { %10977 = vmatpush3.bf16.msra.mxu0 %v10974_v42  ;;  %11179 = vmatprep.subr.bf16.mxu1 %v15149_v39  ;;  %v15160_v42 = vld [vmem:[#allocation9_spill] sm:$0xff] }
 0x289   :  { %10979 = vmatprep.subr.bf16.mxu0 %v10978_v55 }
 0x28a   :  { %4186 = vmatmul.mubr.f32.vlgmr.msra.gmra.mrb[24].mxu1 %v15150_v60 }
 0x28b   :  { %4192 = vmatprep.mubr.f32.mxu1 %v15151_v25  ;;  %11181 = vmatpush3.bf16.msra.mxu1 %v15152_v52 }
 0x28c   :  { %10981 = vmatpush3.bf16.msra.mxu0 %v10978_v55  ;;  %11183 = vmatprep.subr.bf16.mxu1 %v15153_v36  ;;  %v15163_v55 = vld [vmem:[#allocation45_spill] sm:$0xff] }
 0x28d   :  { %10983 = vmatprep.subr.bf16.mxu0 %v10982_v12 }
 0x28e   :  { %4195 = vmatmul.mubr.f32.gmra.mrb[26].mxu1 %v15154_v32 }
 0x28f   :  { %11185 = vmatpush3.bf16.msra.mxu1 %v15155_v21  ;;  %4299 = vmatprep.mubr.f32.mxu1 %v15156_v11  ;;  %v15166_v11 = vld [vmem:[#allocation57_spill] sm:$0xff] }
 0x290   :  { %10985 = vmatpush3.bf16.msra.mxu0 %v10982_v12  ;;  %11187 = vmatprep.subr.bf16.mxu1 %v15158_v57  ;;  %v15165_v12 = vld [vmem:[#allocation54_spill] sm:$0xff] }
 0x291   :  { %10987 = vmatprep.subr.bf16.mxu0 %v15157_v13 }
 0x293   :  { %9961 = vmatmul.mubr.f32.vlgmr.msra.gmra.mrb[18].mxu0 %v15159_v46  ;;  %11189 = vmatpush3.bf16.msra.mxu1 %v15161_v45  ;;  %v15167_v46 = vld [vmem:[#allocation60_spill] sm:$0xff]  ;;  %v15170_v45 = vld [vmem:[#allocation67_spill] sm:$0xff] }
 0x294   :  { %10989 = vmatpush3.bf16.msra.mxu0 %v15157_v13  ;;  %9995 = vmatprep.mubr.f32.mxu0 %v15160_v42  ;;  %v15169_v42 = vld [vmem:[#allocation64_spill] sm:$0xff]  ;;  %v15182_v13 = vand.u32 4294901760, %v15128_v61  ;;  %v15189_v61 = vand.u32 4294901760, %v15132_v51  ;;  %v15196_v51 = vand.u32 4294901760, %v15138_v31 }
 0x295   :  { %10991 = vmatprep.subr.bf16.mxu0 %v15162_v59  ;;  %11191 = vmatprep.subr.bf16.mxu1 %v15163_v55  ;;  %v15171_v55 = vld [vmem:[#allocation70_spill] sm:$0xff] }
 0x297   :  { %11193 = vmatpush3.bf16.msra.mxu1 %v15164_v9  ;;  %v15173_v9 = vld [vmem:[#allocation72_spill] sm:$0xff] }
 0x298   :  { %10993 = vmatpush3.bf16.msra.mxu0 %v15162_v59  ;;  %11195 = vmatprep.subr.bf16.mxu1 %v15166_v11  ;;  %v15172_v59 = vld [vmem:[#allocation71_spill] sm:$0xff]  ;;  %v15174_v11 = vld [vmem:[#allocation74_spill] sm:$0xff] }
 0x299   :  { %10995 = vmatprep.subr.bf16.mxu0 %v15165_v12 }
 0x29b   :  { %11197 = vmatpush3.bf16.msra.mxu1 %v15167_v46  ;;  %v15176_v46 = vand.u32 4294901760, %v15125_v4 }
 0x29c   :  { %10997 = vmatpush3.bf16.msra.mxu0 %v15165_v12  ;;  %11199 = vmatprep.subr.bf16.mxu1 %v15169_v42  ;;  %v15175_v12 = vld [vmem:[#allocation75_spill] sm:$0xff]  ;;  %v15177_v42 = vand.u32 4294901760, %v15126_v6  ;;  %v15184_v6 = vand.u32 4294901760, %v15150_v60 }
 0x29d   :  { %10999 = vmatprep.subr.bf16.mxu0 %v15168_v58 }
 0x29e   :  { %v11210_v57 = vpack.c.bf16 %v15177_v42, %v15176_v46  ;;  %v15185_v46 = vand.u32 4294901760, %v15151_v25 }
 0x29f   :  { %11201 = vmatpush3.bf16.msra.mxu1 %v15170_v45  ;;  %v15178_v45 = vld [vmem:[#allocation76_spill] sm:$0xff] }
 0x2a0   :  { %11001 = vmatpush3.bf16.msra.mxu0 %v15168_v58  ;;  %11203 = vmatprep.subr.bf16.mxu1 %v15172_v59  ;;  %v15179_v58 = vld [vmem:[#allocation79_spill] sm:$0xff]  ;;  %v15180_v59 = vand.u32 4294901760, %v13119_v27  ;;  %v15186_v27 = vand.u32 4294901760, %v15130_v30  ;;  %v15194_v30 = vld [vmem:[#allocation41_spill] sm:$0xff] }
 0x2a1   :  { %11003 = vmatprep.subr.bf16.mxu0 %v15171_v55 }
 0x2a3   :  { %11205 = vmatpush3.bf16.msra.mxu1 %v15173_v9 }
 0x2a4   :  { %11005 = vmatpush3.bf16.msra.mxu0 %v15171_v55  ;;  %11207 = vmatprep.subr.bf16.mxu1 %v15175_v12  ;;  %v15181_v55 = vand.u32 4294901760, %v15127_v18  ;;  %v15183_v12 = vand.u32 4294901760, %v15129_v49  ;;  %v15187_v18 = vand.u32 4294901760, %v15131_v24  ;;  %v15190_v49 = vand.u32 4294901760, %v15133_v8 }
 0x2a5   :  { %11007 = vmatprep.subr.bf16.mxu0 %v15174_v11  ;;  %v15195_v24 = vand.u32 4294901760, %v15137_v2  ;;  %v15197_v8 = vand.u32 4294901760, %v13502_v33  ;;  %v15203_v2 = vand.u32 4294901760, %v15144_v43  ;;  %v15204_v33 = vand.u32 4294901760, %v15145_v10 }
 0x2a6   :  { %v11212_v9 = vpack.c.bf16 %v15181_v55, %v15180_v59  ;;  %v11214_v4 = vpack.c.bf16 %v15183_v12, %v15182_v13  ;;  %v11216_v59 = vpack.c.bf16 %v15187_v18, %v15186_v27  ;;  %v11018_v60 = vpack.c.bf16 %v15190_v49, %v15189_v61 }
 0x2a7   :  { %11209 = vmatpush3.bf16.msra.mxu1 %v15178_v45  ;;  %v15191_v13 = vand.u32 4294901760, %v15134_v41  ;;  %v15192_v55 = vand.u32 4294901760, %v15135_v40  ;;  %v11220_v12 = vpack.c.bf16 %v15196_v51, %v15195_v24  ;;  %v15198_v41 = vand.u32 4294901760, %v15139_v15 }
 0x2a8   :  { %11009 = vmatpush3.bf16.msra.mxu0 %v15174_v11  ;;  %11211 = vmatprep.subr.bf16.mxu1 %v11210_v57  ;;  %v15188_v57 = vld [vmem:[#allocation13_spill] sm:$0xff]  ;;  %v15199_v40 = vand.u32 4294901760, %v15140_v23  ;;  %v11224_v31 = vpack.c.bf16 %v15204_v33, %v15203_v2  ;;  %v15205_v15 = vand.u32 4294901760, %v13583_v3  ;;  %v15206_v27 = vand.u32 4294901760, %v13588_v44  ;;  %v15241_v2 = vld [vmem:[#allocation64_spill] sm:$0xff] }
 0x2a9   :  { %11011 = vmatprep.subr.bf16.mxu0 %v15179_v58  ;;  %v11218_v25 = vpack.c.bf16 %v15192_v55, %v15191_v13  ;;  %v11022_v42 = vpack.c.bf16 %v15198_v41, %v15197_v8  ;;  %v15208_v18 = vand.u32 4294901760, %v15066_v50  ;;  %v15209_v61 = vand.u32 4294901760, %v15067_v28 }
 0x2aa   :  { %4303 = vmatmul.mubr.f32.vlgmr.msra.gmra.mrb[28].mxu1 %v15184_v6  ;;  %v15201_v6 = vld [vmem:[#allocation12_spill] sm:$0xff]  ;;  %v11026_v23 = vpack.c.bf16 %v15206_v27, %v15205_v15  ;;  %v15210_v43 = vand.u32 4294901760, %v15068_v38  ;;  %v15211_v49 = vand.u32 4294901760, %v13670_v29  ;;  %v15212_v3 = vand.u32 4294901760, %v13698_v34  ;;  %v15243_v15 = vld [vmem:[#allocation70_spill] sm:$0xff]  ;;  %v15244_v27 = vld [vmem:[#allocation71_spill] sm:$0xff] }
 0x2ab   :  { %4310 = vmatprep.mubr.f32.mxu1 %v15185_v46  ;;  %11213 = vmatpush3.bf16.msra.mxu1 %v11212_v9  ;;  %v15193_v9 = vand.u32 4294901760, %v15154_v32  ;;  %v15200_v32 = vand.u32 4294901760, %v15141_v17  ;;  %v15202_v46 = vld [vmem:[#allocation5_spill] sm:$0xff]  ;;  %v15207_v17 = vand.u32 4294901760, %v15062_v20  ;;  %v15214_v20 = vand.u32 4294901760, %v15080_v37 }
 0x2ac   :  { %11013 = vmatpush3.bf16.msra.mxu0 %v15179_v58  ;;  %11215 = vmatprep.subr.bf16.mxu1 %v11214_v4  ;;  %v11228_v10 = vpack.c.bf16 %v15210_v43, %v15209_v61  ;;  %v11030_v44 = vpack.c.bf16 %v15212_v3, %v15211_v49  ;;  %v15215_v13 = vand.u32 4294901760, %v15091_v7  ;;  %v15216_v28 = vand.u32 4294901760, %v15092_v47 }
 0x2ad   :  { %11015 = vmatprep.subr.bf16.mxu0 %v15188_v57  ;;  %v11222_v4 = vpack.c.bf16 %v15200_v32, %v15199_v40  ;;  %v15217_v55 = vand.u32 4294901760, %v13724_v62  ;;  %v15218_v29 = vand.u32 4294901760, %v13729_v16  ;;  %v15220_v37 = vand.u32 4294901760, %v13384_v22  ;;  %v15235_v40 = vld [vmem:[#allocation45_spill] sm:$0xff] }
 0x2ae   :  { %4314 = vmatmul.mubr.f32.gmra.mrb[30].mxu1 %v15193_v9  ;;  %v11232_v38 = vpack.c.bf16 %v15216_v28, %v15215_v13  ;;  %v15221_v7 = vand.u32 4294901760, %v13391_v48  ;;  %v15222_v47 = vand.u32 4294901760, %v15146_v1  ;;  %v15223_v62 = vand.u32 4294901760, %v15147_v0  ;;  %v15228_v0 = vld [vmem:[#allocation59_spill] sm:$0xff]  ;;  %v15238_v32 = vld [vmem:[#allocation57_spill] sm:$0xff] }
 0x2af   :  { %11217 = vmatpush3.bf16.msra.mxu1 %v11216_v59  ;;  %4480 = vmatprep.mubr.f32.mxu1 %v15194_v30  ;;  %v11226_v59 = vpack.c.bf16 %v15208_v18, %v15207_v17  ;;  %v11034_v34 = vpack.c.bf16 %v15218_v29, %v15217_v55  ;;  %v15224_v16 = vand.u32 4294901760, %v15148_v56  ;;  %v15226_v22 = vand.u32 4294901760, %v13427_v26  ;;  %v15230_v26 = vld [vmem:[#allocation36_spill] sm:$0xff]  ;;  %v15246_v18 = vld [vmem:[#allocation75_spill] sm:$0xff] }
 0x2b0   :  { %11017 = vmatpush3.bf16.msra.mxu0 %v15188_v57  ;;  %11219 = vmatprep.subr.bf16.mxu1 %v11218_v25  ;;  %v11236_v51 = vpack.c.bf16 %v15222_v47, %v15221_v7 }
 0x2b1   :  { %11019 = vmatprep.subr.bf16.mxu0 %v11018_v60 }
 0x2b3   :  { %9996 = vmatmul.mubr.f32.vlgmr.msra.gmra.mrb[18].mxu0 %v15201_v6  ;;  %11221 = vmatpush3.bf16.msra.mxu1 %v11220_v12  ;;  %v11038_v12 = vpack.c.bf16 %v15224_v16, %v15223_v62  ;;  %v15240_v6 = vld [vmem:[#allocation63_spill] sm:$0xff] }
 0x2b4   :  { %11021 = vmatpush3.bf16.msra.mxu0 %v11018_v60  ;;  %10030 = vmatprep.mubr.f32.mxu0 %v15202_v46  ;;  %v15213_v60 = vand.u32 4294901760, %v15079_v14  ;;  %v15219_v14 = vand.u32 4294901760, %v13382_v54  ;;  %v15225_v54 = vand.u32 4294901760, %v13420_v53  ;;  %v15229_v53 = vld [vmem:[#allocation61_spill] sm:$0xff] }
 0x2b5   :  { %11023 = vmatprep.subr.bf16.mxu0 %v11022_v42  ;;  %11223 = vmatprep.subr.bf16.mxu1 %v11222_v4  ;;  %v15239_v4 = vld [vmem:[#allocation60_spill] sm:$0xff] }
 0x2b6   :  { %v11230_v50 = vpack.c.bf16 %v15214_v20, %v15213_v60  ;;  %v11234_v9 = vpack.c.bf16 %v15220_v37, %v15219_v14  ;;  %v11238_v8 = vpack.c.bf16 %v15226_v22, %v15225_v54 }
 0x2b7   :  { %11225 = vmatpush3.bf16.msra.mxu1 %v11224_v31  ;;  %v15242_v31 = vld [vmem:[#allocation67_spill] sm:$0xff] }
 0x2b8   :  { %11025 = vmatpush3.bf16.msra.mxu0 %v11022_v42  ;;  %11227 = vmatprep.subr.bf16.mxu1 %v11226_v59  ;;  %v15227_v42 = vld [vmem:[#allocation58_spill] sm:$0xff] }
 0x2b9   :  { %11027 = vmatprep.subr.bf16.mxu0 %v11026_v23 }
 0x2bb   :  { %11229 = vmatpush3.bf16.msra.mxu1 %v11228_v10  ;;  %v15247_v10 = vmov 0.0|0.0  }
 0x2bc   :  { %11029 = vmatpush3.bf16.msra.mxu0 %v11026_v23  ;;  %v2595_v25 = vpop.f32.mrb[10].mxu1  ;;  %11231 = vmatprep.subr.bf16.mxu1 %v11230_v50  ;;  %v15245_v23 = vld [vmem:[#allocation72_spill] sm:$0xff] }
 0x2bd   :  { %11031 = vmatprep.subr.bf16.mxu0 %v11030_v44  ;;  %v9717_v24 = vpop.f32.mrb[11].mxu1 }
 0x2bf   :  { %11233 = vmatpush3.bf16.msra.mxu1 %v11232_v38 }
 0x2c0   :  { %11033 = vmatpush3.bf16.msra.mxu0 %v11030_v44  ;;  %11235 = vmatprep.subr.bf16.mxu1 %v11234_v9 }
 0x2c1   :  { %11035 = vmatprep.subr.bf16.mxu0 %v11034_v34 }
 0x2c3   :  { %11237 = vmatpush3.bf16.msra.mxu1 %v11236_v51 }
 0x2c4   :  { %11037 = vmatpush3.bf16.msra.mxu0 %v11034_v34  ;;  %v2444_v41 = vpop.f32.mrb[12].mxu0  ;;  %11239 = vmatprep.subr.bf16.mxu1 %v11238_v8 }
 0x2c5   :  { %11039 = vmatprep.subr.bf16.mxu0 %v11038_v12  ;;  %v2445_v48 = vadd.f32 %v2444_v41, %v13860_v19  ;;  %v9682_v1 = vpop.f32.mrb[13].mxu0  ;;  %v15231_v19 = vld [vmem:[#allocation38_spill] sm:$0xff] }
 0x2c7   :  { %11241 = vmatpush3.bf16.msra.mxu1 %v15227_v42  ;;  %v2596_v56 = vadd.f32 %v2595_v25, %v2445_v48 }
 0x2c8   :  { %11041 = vmatpush3.bf16.msra.mxu0 %v11038_v12  ;;  %11243 = vmatprep.subr.bf16.mxu1 %v15149_v39  ;;  %v15232_v39 = vld [vmem:[#allocation8_spill] sm:$0xff] }
 0x2c9   :  { %11043 = vmatprep.subr.bf16.mxu0 %v15228_v0 }
 0x2ca   :  { %4482 = vmatmul.mubr.f32.vlgmr.msra.gmra.mrb[32].mxu1 %v13552_v5 }
 0x2cb   :  { %4487 = vmatprep.mubr.f32.mxu1 %v13561_v63  ;;  %11245 = vmatpush3.bf16.msra.mxu1 %v15152_v52  ;;  %v15233_v52 = vld [vmem:[#allocation40_spill] sm:$0xff] }
 0x2cc   :  { %11045 = vmatpush3.bf16.msra.mxu0 %v15228_v0  ;;  %11247 = vmatprep.subr.bf16.mxu1 %v15153_v36  ;;  %v15234_v36 = vld [vmem:[#allocation44_spill] sm:$0xff] }
 0x2cd   :  { %11047 = vmatprep.subr.bf16.mxu0 %v15229_v53 }
 0x2ce   :  { %4489 = vmatmul.mubr.f32.gmra.mrb[34].mxu1 %v13600_v35 }
 0x2cf   :  { %11249 = vmatpush3.bf16.msra.mxu1 %v15155_v21  ;;  %4591 = vmatprep.mubr.f32.mxu1 %v15194_v30  ;;  %v15236_v21 = vld [vmem:[#allocation49_spill] sm:$0xff]  ;;  %v15237_v30 = vld [vmem:[#allocation54_spill] sm:$0xff] }
 0x2d0   :  { %11049 = vmatpush3.bf16.msra.mxu0 %v15229_v53  ;;  %11251 = vmatprep.subr.bf16.mxu1 %v15231_v19  ;;  %v8700_v19 = vld [vmem:[%s14607_s8] ss:$0 sm:$0xff] }
 0x2d1   :  { %11051 = vmatprep.subr.bf16.mxu0 %v15230_v26 }
 0x2d3   :  { %10031 = vmatmul.mubr.f32.vlgmr.msra.gmra.mrb[18].mxu0 %v15232_v39  ;;  %11253 = vmatpush3.bf16.msra.mxu1 %v15233_v52 }
 0x2d4   :  { %11053 = vmatpush3.bf16.msra.mxu0 %v15230_v26  ;;  %10065 = vmatprep.mubr.f32.mxu0 %v15202_v46 }
 0x2d5   :  { %11055 = vmatprep.subr.bf16.mxu0 %v15234_v36  ;;  %11255 = vmatprep.subr.bf16.mxu1 %v15235_v40 }
 0x2d7   :  { %11257 = vmatpush3.bf16.msra.mxu1 %v15236_v21 }
 0x2d8   :  { %11057 = vmatpush3.bf16.msra.mxu0 %v15234_v36  ;;  %11259 = vmatprep.subr.bf16.mxu1 %v15238_v32 }
 0x2d9   :  { %11059 = vmatprep.subr.bf16.mxu0 %v15237_v30 }
 0x2db   :  { %11261 = vmatpush3.bf16.msra.mxu1 %v15239_v4 }
 0x2dc   :  { %11061 = vmatpush3.bf16.msra.mxu0 %v15237_v30  ;;  %v2788_v46 = vpop.f32.mrb[12].mxu1  ;;  %11263 = vmatprep.subr.bf16.mxu1 %v15241_v2 }
 0x2dd   :  { %11063 = vmatprep.subr.bf16.mxu0 %v15240_v6  ;;  %v9787_v33 = vpop.f32.mrb[13].mxu1 }
 0x2df   :  { %11265 = vmatpush3.bf16.msra.mxu1 %v15242_v31 }
 0x2e0   :  { %11065 = vmatpush3.bf16.msra.mxu0 %v15240_v6  ;;  %11267 = vmatprep.subr.bf16.mxu1 %v15244_v27 }
 0x2e1   :  { %11067 = vmatprep.subr.bf16.mxu0 %v15243_v15 }
 0x2e3   :  { %11269 = vmatpush3.bf16.msra.mxu1 %v15245_v23 }
 0x2e4   :  { %11069 = vmatpush3.bf16.msra.mxu0 %v15243_v15  ;;  %v2699_v17 = vpop.f32.mrb[14].mxu0  ;;  %11271 = vmatprep.subr.bf16.mxu1 %v15246_v18 }
 0x2e5   :  { %11071 = vmatprep.subr.bf16.mxu0 %v15174_v11  ;;  %v2700_v59 = vadd.f32 %v2699_v17, %v2596_v56  ;;  %v9752_v61 = vpop.f32.mrb[15].mxu0  ;;  %v8701_v17 = vld [vmem:[%s14607_s8 + $0x1] ss:$0 sm:$0xff] }
 0x2e7   :  { %11273 = vmatpush3.bf16.msra.mxu1 %v15178_v45  ;;  %v2789_v43 = vadd.f32 %v2788_v46, %v2700_v59 }
 0x2e8   :  { %11073 = vmatpush3.bf16.msra.mxu0 %v15174_v11  ;;  %11274 = vmatprep.subr.bf16.mxu1 %v15247_v10  ;;  %v15248_v11 = vmov 0.0  }
 0x2e9   :  { %11075 = vmatprep.subr.bf16.mxu0 %v15179_v58 }
 0x2ea   :  { %4593 = vmatmul.mubr.f32.vlgmr.msra.gmra.mrb[36].mxu1 %v13552_v5 }
 0x2eb   :  { %4598 = vmatprep.mubr.f32.mxu1 %v13561_v63 }
 0x2ec   :  { %11077 = vmatpush3.bf16.msra.mxu0 %v15179_v58 }
 0x2ed   :  { %11079 = vmatprep.subr.bf16.mxu0 %v15188_v57 }
 0x2ee   :  { %4600 = vmatmul.mubr.f32.gmra.mrb[38].mxu1 %v13600_v35 }
 0x2ef   :  { %10072 = vmatprep.mubr.msk.f32.mxu1 %vm11689_vm0, %v15248_v11 }
 0x2f0   :  { %11081 = vmatpush3.bf16.msra.mxu0 %v15188_v57 }
 0x2f1   :  { %11277 = vmatprep.subr.bf16.mxu0 %v15247_v10 }
 0x2f3   :  { %10066 = vmatmul.mubr.f32.vlgmr.msra.gmra.mrb[18].mxu0 %v15232_v39 }
 0x2f4   :  { %10079 = vmatprep.mubr.msk.f32.mxu0 %vm11689_vm0, %v15248_v11 }
 0x2fc   :  { %v2994_v5 = vpop.f32.mrb[14].mxu1 }
 0x2fd   :  { %v9857_v58 = vpop.f32.mrb[15].mxu1 }
 0x304   :  { %v2907_v45 = vpop.f32.mrb[16].mxu0 }
 0x305   :  { %v2908_v63 = vadd.f32 %v2907_v45, %v2789_v43  ;;  %v9822_v49 = vpop.f32.mrb[17].mxu0 }
 0x307   :  { %v2995_v3 = vadd.f32 %v2994_v5, %v2908_v63 }
 0x309   :  { %v3002_v40 = vadd.f32 %v8700_v19, %v2995_v3 }
 0x30b   :  { %v14111_v46 = vmax.f32 %v3002_v40, 0.0 }
 0x30d   :  { %v14114_v27 = vand.u32 4294901760, %v14111_v46 }
 0x30f   :  { %v5179_v43 = vsub.f32 %v14111_v46, %v14114_v27 }
 0x311   :  { %v5180_v3 = vand.u32 4294901760, %v5179_v43 }
 0x31d   :  { %v9176_v44 = vpop.f32.mrb[16].mxu1 }
 0x31e   :  { %v9177_v35 = vpop.f32.mrb[17].mxu1 }
 0x31f   :  { %v9178_v60 = vadd.f32 %v9177_v35, %v9176_v44 }
 0x323   :  { %v9179_v57 = vpop.f32.mrb[18].mxu1 }
 0x324   :  { %v9180_v20 = vpop.f32.mrb[19].mxu1 }
 0x325   :  { %v9181_v50 = vadd.f32 %v9180_v20, %v9179_v57  ;;  %v5181_v20 = vsub.f32 %v5179_v43, %v5180_v3 }
 0x33d   :  { %v9214_v13 = vpop.f32.mrb[20].mxu1 }
 0x33e   :  { %v9215_v28 = vpop.f32.mrb[21].mxu1 }
 0x33f   :  { %v9216_v38 = vadd.f32 %v9215_v28, %v9214_v13 }
 0x341   :  { %v9217_v55 = vpop.f32.mrb[22].mxu1 }
 0x342   :  { %v9218_v29 = vpop.f32.mrb[23].mxu1 }
 0x343   :  { %v9219_v34 = vadd.f32 %v9218_v29, %v9217_v55 }
 0x35d   :  { %v9252_v25 = vpop.f32.mrb[24].mxu1 }
 0x35e   :  { %v9253_v14 = vpop.f32.mrb[25].mxu1 }
 0x35f   :  { %v9254_v37 = vadd.f32 %v9253_v14, %v9252_v25  ;;  %v5182_v25 = vand.u32 4294901760, %v5181_v20 }
 0x361   :  { %v9255_v9 = vpop.f32.mrb[26].mxu1 }
 0x362   :  { %v9256_v24 = vpop.f32.mrb[27].mxu1 }
 0x363   :  { %v9257_v7 = vadd.f32 %v9256_v24, %v9255_v9 }
 0x37d   :  { %v9290_v47 = vpop.f32.mrb[28].mxu1 }
 0x37e   :  { %v9291_v51 = vpop.f32.mrb[29].mxu1 }
 0x37f   :  { %v9292_v62 = vadd.f32 %v9291_v51, %v9290_v47  ;;  %v15252_v47 = vld [vmem:[#allocation18_spill] sm:$0xff]  ;;  %v15253_v51 = vld [vmem:[#allocation3_spill] sm:$0xff] }
 0x381   :  { %v9293_v16 = vpop.f32.mrb[30].mxu1 }
 0x382   :  { %v9294_v12 = vpop.f32.mrb[31].mxu1 }
 0x383   :  { %v9295_v54 = vadd.f32 %v9294_v12, %v9293_v16  ;;  %v15255_v16 = vld [vmem:[#allocation20_spill] sm:$0xff] }
 0x384   :  { %v15256_v12 = vld [vmem:[#allocation4_spill] sm:$0xff] }
 0x39d   :  { %v9328_v22 = vpop.f32.mrb[32].mxu1 }
 0x39e   :  { %v9329_v8 = vpop.f32.mrb[33].mxu1 }
 0x39f   :  { %v9330_v41 = vadd.f32 %v9329_v8, %v9328_v22  ;;  %v15258_v22 = vld [vmem:[#allocation22_spill] sm:$0xff] }
 0x3a0   :  { %v4618_v8 = vld [vmem:[%s14604_s6 + $0x1a0] sm:$0xff] }
 0x3a1   :  { %v9331_v48 = vpop.f32.mrb[34].mxu1 }
 0x3a2   :  { %v9332_v1 = vpop.f32.mrb[35].mxu1 }
 0x3a3   :  { %v9333_v42 = vadd.f32 %v9332_v1, %v9331_v48  ;;  %v15259_v48 = vld [vmem:[#allocation6_spill] sm:$0xff]  ;;  %v5585_v1 = vand.u32 4294901760, %v4618_v8 }
 0x3a5   :  { %v14173_v19 = vsub.f32 %v4618_v8, %v5585_v1 }
 0x3bd   :  { %v9366_v0 = vpop.f32.mrb[36].mxu1 }
 0x3be   :  { %v9367_v56 = vpop.f32.mrb[37].mxu1 }
 0x3bf   :  { %v9368_v53 = vadd.f32 %v9367_v56, %v9366_v0  ;;  %v4620_v0 = vld [vmem:[%s14604_s6 + $0x1b0] sm:$0xff]  ;;  %v4621_v56 = vld [vmem:[%s14604_s6 + $0x1b8] sm:$0xff] }
 0x3c1   :  { %v9369_v26 = vpop.f32.mrb[38].mxu1 }
 0x3c2   :  { %v9370_v39 = vpop.f32.mrb[39].mxu1 }
 0x3c3   :  { %v9371_v52 = vadd.f32 %v9370_v39, %v9369_v26  ;;  %v15260_v26 = vld [vmem:[#allocation23_spill] sm:$0xff] }
 0x3c6   :  { %v10067_v36 = vpop.f32.mrb[18].mxu0 }
 0x3c7   :  { %v3811_v21 = vadd.f32 %v10067_v36, %v9181_v50  ;;  %v3677_v30 = vpop.f32.mrb[19].mxu0  ;;  %v5594_v36 = vand.u32 4294901760, %v4621_v56 }
 0x3c8   :  { %v3796_v32 = vadd.f32 %v9178_v60, %v3677_v30  ;;  %v5666_v30 = vand.u32 4294901760, %v14173_v19 }
 0x3c9   :  { %v4050_v4 = vadd.f32 %v9219_v34, %v3811_v21  ;;  %v15249_v34 = vld [vmem:[#allocation11_spill] sm:$0xff] }
 0x3ca   :  { %v4043_v6 = vadd.f32 %v9216_v38, %v3796_v32 }
 0x3cb   :  { %v4197_v2 = vadd.f32 %v9257_v7, %v4050_v4  ;;  %v15251_v7 = vld [vmem:[#allocation27_spill] sm:$0xff]  ;;  %v14189_v4 = vsub.f32 %v4621_v56, %v5594_v36 }
 0x3cc   :  { %v4188_v33 = vadd.f32 %v9254_v37, %v4043_v6  ;;  %v15250_v37 = vld [vmem:[#allocation25_spill] sm:$0xff] }
 0x3cd   :  { %v4316_v31 = vadd.f32 %v9295_v54, %v4197_v2  ;;  %v15257_v54 = vld [vmem:[#allocation21_spill] sm:$0xff]  ;;  %v14203_v2 = vld [vmem:[%s14604_s6 + $0x188] sm:$0xff] }
 0x3ce   :  { %v4305_v15 = vadd.f32 %v9292_v62, %v4188_v33  ;;  %v15254_v62 = vld [vmem:[#allocation19_spill] sm:$0xff]  ;;  %v5667_v33 = vsub.f32 %v14173_v19, %v5666_v30 }
 0x3cf   :  { %v4491_v23 = vadd.f32 %v9333_v42, %v4316_v31 }
 0x3d0   :  { %v4484_v18 = vadd.f32 %v9330_v41, %v4305_v15  ;;  %v4619_v41 = vld [vmem:[%s14604_s6 + $0x1a8] sm:$0xff] }
 0x3d1   :  { %v4602_v59 = vadd.f32 %v9371_v52, %v4491_v23  ;;  %v5588_v42 = vand.u32 4294901760, %v4619_v41  ;;  %v5591_v52 = vand.u32 4294901760, %v4620_v0 }
 0x3d2   :  { %v4595_v61 = vadd.f32 %v9368_v53, %v4484_v18  ;;  %v5582_v53 = vsel %vm5580_vm12, %v14111_v46, 0  ;;  %v14198_v46 = vld [vmem:[%s14604_s6 + $0x180] sm:$0xff] }
 0x3d3   :  { %v4610_v5 = vadd.f32 %v8701_v17, %v4602_v59  ;;  %v14175_v39 = vsub.f32 %v4619_v41, %v5588_v42  ;;  %v14178_v40 = vand.u32 4294901760, %v5582_v53  ;;  %v14182_v21 = vsub.f32 %v4620_v0, %v5591_v52 }
 0x3d4   :  { %v4609_v58 = vadd.f32 %v8701_v17, %v4595_v61  ;;  %v11293_v23 = vpack.c.bf16 %v5588_v42, %v5585_v1  ;;  %v5687_v17 = vand.u32 4294901760, %v14189_v4  ;;  %v6073_v18 = vand.u32 4294901760, %v14198_v46 }
 0x3d5   :  { %v14121_v45 = vmax.f32 %v4610_v5, 0.0  ;;  %v5673_v32 = vand.u32 4294901760, %v14175_v39  ;;  %v14192_v6 = vsub.f32 %v5582_v53, %v14178_v40  ;;  %v5680_v15 = vand.u32 4294901760, %v14182_v21 }
 0x3d6   :  { %v14123_v63 = vmax.f32 %v4609_v58, 0.0  ;;  %v6076_v59 = vand.u32 4294901760, %v14203_v2  ;;  %v5668_v5 = vand.u32 4294901760, %v5667_v33 }
 0x3d7   :  { %v4636_v49 = vand.u32 4294901760, %v14121_v45  ;;  %v5674_v31 = vsub.f32 %v14175_v39, %v5673_v32  ;;  %v5655_v61 = vand.u32 4294901760, %v14192_v6 }
 0x3d8   :  { %v4633_v44 = vand.u32 4294901760, %v14123_v63 }
 0x3d9   :  { %v4718_v35 = vsub.f32 %v14121_v45, %v4636_v49  ;;  %v5675_v58 = vand.u32 4294901760, %v5674_v31 }
 0x3da   :  { %v14128_v60 = vpack.c.bf16 %v4636_v49, %v4633_v44  ;;  %v4711_v57 = vsub.f32 %v14123_v63, %v4633_v44  ;;  %v5688_v49 = vsub.f32 %v14189_v4, %v5687_v17  ;;  %v14237_v44 = vsub.f32 %v14203_v2, %v6076_v59 }
 0x3db   :  { %v4719_v50 = vand.u32 4294901760, %v4718_v35 }
 0x3dc   :  { %11276 = vmatpush3.bf16.msra.mxu1 %v14128_v60  ;;  %v4712_v13 = vand.u32 4294901760, %v4711_v57  ;;  %v11281_v28 = vpack.c.bf16 %v4718_v35, %v4711_v57  ;;  %v5689_v20 = vand.u32 4294901760, %v5688_v49 }
 0x3dd   :  { %10110 = vmatprep.subr.mxu1 %v14114_v27  ;;  %v4720_v38 = vsub.f32 %v4718_v35, %v4719_v50  ;;  %v5656_v35 = vsub.f32 %v14192_v6, %v5655_v61 }
 0x3de   :  { %v4713_v55 = vsub.f32 %v4711_v57, %v4712_v13  ;;  %v11287_v29 = vpack.c.bf16 %v4719_v50, %v4712_v13  ;;  %v6161_v13 = vand.u32 4294901760, %v14237_v44 }
 0x3df   :  { %10073 = vmatmul.mubr.f32.vlgmr.msra.gmra.mrb[40].mxu1 %v15249_v34  ;;  %v4721_v14 = vand.u32 4294901760, %v4720_v38  ;;  %v11305_v34 = vpack.c.bf16 %v14175_v39, %v14173_v19 }
 0x3e0   :  { %10111 = vmatpush3.msra.mxu1 %v14114_v27  ;;  %10112 = vmatprep.mubr.f32.mxu1 %v15250_v37  ;;  %v4714_v9 = vand.u32 4294901760, %v4713_v55  ;;  %v11308_v37 = vpack.c.bf16 %v14189_v4, %v14182_v21 }
 0x3e1   :  { %10115 = vmatprep.subr.mxu1 %v5182_v25 }
 0x3e2   :  { %v11278_v24 = vpack.c.bf16 %v4721_v14, %v4714_v9 }
 0x3e3   :  { %10113 = vmatmul.mubr.f32.vlgmr.msra.gmra.mrb[42].mxu1 %v15251_v7  ;;  %v11320_v7 = vpack.c.bf16 %v5687_v17, %v5680_v15 }
 0x3e4   :  { %10116 = vmatpush3.msra.mxu1 %v5182_v25  ;;  %11279 = vmatpush3.bf16.msra.mxu0 %v11278_v24  ;;  %v11317_v24 = vpack.c.bf16 %v5673_v32, %v5666_v30 }
 0x3e5   :  { %10120 = vmatprep.subr.mxu1 %v5179_v43  ;;  %11280 = vmatprep.subr.bf16.mxu0 %v15247_v10 }
 0x3e6   :  { %10117 = vmatprep.mubr.f32.mxu1 %v15252_v47 }
 0x3e7   :  { %10080 = vmatmul.mubr.f32.vlgmr.msra.gmra.mrb[20].mxu0 %v15253_v51 }
 0x3e8   :  { %11282 = vmatpush3.bf16.msra.mxu0 %v11281_v28  ;;  %10086 = vmatprep.mubr.msk.f32.mxu0 %vm11689_vm0, %v15248_v11  ;;  %v5657_v28 = vand.u32 4294901760, %v5656_v35  ;;  %v4628_v35 = vld [vmem:[%s14606_s7 + $0x1b0] sm:$0xff] }
 0x3e9   :  { %11283 = vmatprep.subr.bf16.mxu0 %v15247_v10 }
 0x3eb   :  { %10118 = vmatmul.mubr.f32.vlgmr.msra.gmra.mrb[42].mxu1 %v15254_v62 }
 0x3ec   :  { %10121 = vmatpush3.msra.mxu1 %v5179_v43  ;;  %10122 = vmatprep.mubr.f32.mxu1 %v15255_v16  ;;  %v11296_v43 = vpack.c.bf16 %v5594_v36, %v5591_v52 }
 0x3ed   :  { %10125 = vmatprep.subr.mxu1 %v14114_v27 }
 0x3ef   :  { %10087 = vmatmul.mubr.f32.vlgmr.msra.gmra.mrb[20].mxu0 %v15256_v12 }
 0x3f0   :  { %11285 = vmatpush3.bf16.msra.mxu0 %v14128_v60  ;;  %10093 = vmatprep.mubr.msk.f32.mxu0 %vm11689_vm0, %v15248_v11 }
 0x3f1   :  { %11286 = vmatprep.subr.bf16.mxu0 %v15247_v10 }
 0x3f3   :  { %10123 = vmatmul.mubr.f32.vlgmr.msra.gmra.mrb[42].mxu1 %v15257_v54 }
 0x3f4   :  { %10126 = vmatpush3.msra.mxu1 %v14114_v27  ;;  %10127 = vmatprep.mubr.f32.mxu1 %v15258_v22 }
 0x3f5   :  { %10130 = vmatprep.subr.mxu1 %v5180_v3 }
 0x3f7   :  { %10094 = vmatmul.mubr.f32.vlgmr.msra.gmra.mrb[20].mxu0 %v15259_v48 }
 0x3f8   :  { %11288 = vmatpush3.bf16.msra.mxu0 %v11287_v29  ;;  %10100 = vmatprep.mubr.msk.f32.mxu0 %vm11689_vm0, %v15248_v11  ;;  %v6162_v29 = vsub.f32 %v14237_v44, %v6161_v13 }
 0x3f9   :  { %11289 = vmatprep.subr.bf16.mxu0 %v15247_v10 }
 0x3fa   :  { %v6163_v14 = vand.u32 4294901760, %v6162_v29 }
 0x3fb   :  { %10128 = vmatmul.mubr.f32.vlgmr.msra.gmra.mrb[42].mxu1 %v15260_v26 }
 0x3fc   :  { %10131 = vmatpush3.msra.mxu1 %v5180_v3  ;;  %10132 = vmatprep.mubr.f32.mxu1 %v15252_v47  ;;  %v14232_v3 = vsub.f32 %v14198_v46, %v6073_v18 }
 0x3fd   :  { %10135 = vmatprep.subr.mxu1 %v14114_v27 }
 0x3fe   :  { %v6154_v50 = vand.u32 4294901760, %v14232_v3 }
 0x3ff   :  { %10101 = vmatmul.mubr.f32.vlgmr.msra.gmra.mrb[20].mxu0 %v15253_v51 }
 0x400   :  { %11291 = vmatpush3.bf16.msra.mxu0 %v14128_v60  ;;  %10107 = vmatprep.mubr.msk.f32.mxu0 %vm11689_vm0, %v15248_v11  ;;  %v11299_v60 = vpack.c.bf16 %v5675_v58, %v5668_v5  ;;  %v6155_v55 = vsub.f32 %v14232_v3, %v6154_v50 }
 0x401   :  { %11292 = vmatprep.subr.bf16.mxu0 %v15247_v10 }
 0x402   :  { %v6156_v25 = vand.u32 4294901760, %v6155_v55 }
 0x403   :  { %10133 = vmatmul.mubr.f32.vlgmr.msra.gmra.mrb[42].mxu1 %v15254_v62 }
 0x404   :  { %10136 = vmatpush3.msra.mxu1 %v14114_v27  ;;  %10137 = vmatprep.mubr.f32.mxu1 %v15252_v47  ;;  %v5681_v27 = vsub.f32 %v14182_v21, %v5680_v15  ;;  %v11335_v9 = vpack.c.bf16 %v6163_v14, %v6156_v25  ;;  %v4616_v47 = vld [vmem:[%s14604_s6 + $0x190] sm:$0xff]  ;;  %v4626_v15 = vld [vmem:[%s14606_s7 + $0x1a0] sm:$0xff]  ;;  %v11353_v25 = vpack.c.bf16 %v6161_v13, %v6154_v50 }
 0x405   :  { %11310 = vmatprep.subr.bf16.mxu1 %v15247_v10  ;;  %v6079_v16 = vand.u32 4294901760, %v4616_v47  ;;  %v6569_v5 = vand.u32 4294901760, %v4626_v15 }
 0x406   :  { %v5682_v57 = vand.u32 4294901760, %v5681_v27 }
 0x407   :  { %10108 = vmatmul.mubr.f32.vlgmr.msra.gmra.mrb[20].mxu0 %v15253_v51  ;;  %v4617_v51 = vld [vmem:[%s14604_s6 + $0x198] sm:$0xff]  ;;  %v14302_v54 = vsub.f32 %v4616_v47, %v6079_v16 }
 0x408   :  { %11294 = vmatpush3.bf16.msra.mxu0 %v11293_v23  ;;  %10148 = vmatprep.mubr.msk.f32.mxu0 %vm11689_vm0, %v15248_v11  ;;  %v11302_v38 = vpack.c.bf16 %v5689_v20, %v5682_v57  ;;  %v6082_v12 = vand.u32 4294901760, %v4617_v51  ;;  %v6575_v20 = vand.u32 4294901760, %v4628_v35 }
 0x409   :  { %11295 = vmatprep.subr.bf16.mxu0 %v15247_v10  ;;  %v6168_v8 = vand.u32 4294901760, %v14302_v54 }
 0x40a   :  { %v14304_v22 = vsub.f32 %v4617_v51, %v6082_v12  ;;  %v11332_v42 = vpack.c.bf16 %v6082_v12, %v6079_v16 }
 0x40b   :  { %10138 = vmatmul.mubr.f32.vlgmr.msra.gmra.mrb[42].mxu1 %v15254_v62  ;;  %v11329_v62 = vpack.c.bf16 %v6076_v59, %v6073_v18  ;;  %v6169_v48 = vsub.f32 %v14302_v54, %v6168_v8  ;;  %v6563_v18 = vsel %vm5580_vm12, %v14123_v63, 0  ;;  %v11341_v59 = vpack.c.bf16 %v14237_v44, %v14232_v3  ;;  %v4629_v63 = vld [vmem:[%s14606_s7 + $0x1b8] sm:$0xff] }
 0x40c   :  { %11297 = vmatpush3.bf16.msra.mxu0 %v11296_v43  ;;  %11312 = vmatpush3.bf16.msra.mxu1 %v11293_v23  ;;  %v6175_v41 = vand.u32 4294901760, %v14304_v22  ;;  %v11344_v26 = vpack.c.bf16 %v14304_v22, %v14302_v54  ;;  %v14340_v49 = vand.u32 4294901760, %v6563_v18 }
 0x40d   :  { %11298 = vmatprep.subr.bf16.mxu0 %v15247_v10  ;;  %11313 = vmatprep.subr.bf16.mxu1 %v15247_v10  ;;  %v6170_v0 = vand.u32 4294901760, %v6169_v48 }
 0x40e   :  { %10181 = vmatprep.mubr.msk.f32.mxu1 %vm11689_vm0, %v15248_v11  ;;  %v6176_v1 = vsub.f32 %v14304_v22, %v6175_v41  ;;  %v14315_v19 = vpack.c.bf16 %v6175_v41, %v6168_v8 }
 0x40f   :  { %10149 = vmatmul.mubr.f32.vlgmr.msra.gmra.mrb[22].mxu0 %v5657_v28  ;;  %v6578_v28 = vand.u32 4294901760, %v4629_v63 }
 0x410   :  { %11300 = vmatpush3.bf16.msra.mxu0 %v11299_v60  ;;  %11315 = vmatpush3.bf16.msra.mxu1 %v11296_v43  ;;  %v6177_v56 = vand.u32 4294901760, %v6176_v1  ;;  %v6566_v60 = vsel %vm5580_vm12, %v14121_v45, 0  ;;  %v14361_v45 = vsub.f32 %v6563_v18, %v14340_v49  ;;  %v4623_v18 = vld [vmem:[%s14606_s7 + $0x188] sm:$0xff] }
 0x411   :  { %11301 = vmatprep.subr.bf16.mxu0 %v15247_v10  ;;  %11322 = vmatprep.subr.bf16.mxu1 %v15247_v10  ;;  %v14367_v14 = vand.u32 4294901760, %v6566_v60  ;;  %v14374_v47 = vsub.f32 %v4629_v63, %v6578_v28  ;;  %v14399_v1 = vpack.c.bf16 %v6578_v28, %v6575_v20 }
 0x412   :  { %10159 = vmatprep.mubr.msk.f32.mxu0 %vm11689_vm0, %v15248_v11  ;;  %v11338_v53 = vpack.c.bf16 %v6177_v56, %v6170_v0  ;;  %v6639_v3 = vand.u32 4294901760, %v14361_v45 }
 0x413   :  { %10182 = vmatmul.mubr.f32.vlgmr.msra.gmra.mrb[44].mxu1 %v5655_v61  ;;  %v14384_v50 = vsub.f32 %v6566_v60, %v14367_v14  ;;  %v6681_v54 = vand.u32 4294901760, %v14374_v47 }
 0x414   :  { %11303 = vmatpush3.bf16.msra.mxu0 %v11302_v38  ;;  %11324 = vmatpush3.bf16.msra.mxu1 %v11293_v23  ;;  %v4627_v23 = vld [vmem:[%s14606_s7 + $0x1a8] sm:$0xff]  ;;  %v14352_v38 = vsub.f32 %v4626_v15, %v6569_v5  ;;  %v6640_v41 = vsub.f32 %v14361_v45, %v6639_v3 }
 0x415   :  { %11304 = vmatprep.subr.bf16.mxu0 %v15247_v10  ;;  %11325 = vmatprep.subr.bf16.mxu1 %v15247_v10  ;;  %v6572_v58 = vand.u32 4294901760, %v4627_v23 }
 0x416   :  { %10203 = vmatprep.mubr.msk.f32.mxu1 %vm11689_vm0, %v15248_v11 }
 0x417   :  { %10160 = vmatmul.mubr.f32.vlgmr.msra.gmra.mrb[24].mxu0 %v14178_v40  ;;  %v14354_v55 = vsub.f32 %v4627_v23, %v6572_v58  ;;  %v14381_v44 = vpack.c.bf16 %v6572_v58, %v6569_v5  ;;  %v7106_v5 = vand.u32 4294901760, %v4623_v18  ;;  %v4624_v58 = vld [vmem:[%s14606_s7 + $0x190] sm:$0xff] }
 0x418   :  { %11306 = vmatpush3.bf16.msra.mxu0 %v11305_v34  ;;  %11327 = vmatpush3.bf16.msra.mxu1 %v11296_v43 }
 0x419   :  { %11307 = vmatprep.subr.bf16.mxu0 %v15247_v10  ;;  %10170 = vmatprep.mubr.msk.f32.mxu0 %vm11689_vm0, %v15248_v11 }
 0x41a   :  { %11334 = vmatprep.subr.bf16.mxu1 %v15247_v10 }
 0x41b   :  { %10204 = vmatmul.mubr.f32.vlgmr.msra.gmra.mrb[46].mxu1 %v14178_v40 }
 0x41c   :  { %11309 = vmatpush3.bf16.msra.mxu0 %v11308_v37  ;;  %11336 = vmatpush3.bf16.msra.mxu1 %v11335_v9  ;;  %v6660_v9 = vand.u32 4294901760, %v14352_v38 }
 0x41d   :  { %11316 = vmatprep.subr.bf16.mxu0 %v15247_v10  ;;  %11337 = vmatprep.subr.bf16.mxu1 %v15247_v10 }
 0x41e   :  { %10225 = vmatprep.mubr.msk.f32.mxu1 %vm11689_vm0, %v15248_v11 }
 0x41f   :  { %10171 = vmatmul.mubr.f32.vlgmr.msra.gmra.mrb[26].mxu0 %v14192_v6 }
 0x420   :  { %11318 = vmatpush3.bf16.msra.mxu0 %v11317_v24  ;;  %10192 = vmatprep.mubr.msk.f32.mxu0 %vm11689_vm0, %v15248_v11  ;;  %v6667_v24 = vand.u32 4294901760, %v14354_v55 }
 0x421   :  { %11319 = vmatprep.subr.bf16.mxu0 %v15247_v10  ;;  %11339 = vmatpush3.bf16.msra.mxu1 %v11338_v53 }
 0x422   :  { %11346 = vmatprep.subr.bf16.mxu1 %v15247_v10  ;;  %v6668_v16 = vsub.f32 %v14354_v55, %v6667_v24  ;;  %v11396_v23 = vpack.c.bf16 %v6667_v24, %v6660_v9 }
 0x424   :  { %11321 = vmatpush3.bf16.msra.mxu0 %v11320_v7  ;;  %v14372_v7 = vsub.f32 %v4628_v35, %v6575_v20  ;;  %v6669_v56 = vand.u32 4294901760, %v6668_v16  ;;  %v4625_v35 = vld [vmem:[%s14606_s7 + $0x198] sm:$0xff] }
 0x425   :  { %11328 = vmatprep.subr.bf16.mxu0 %v15247_v10  ;;  %v7112_v63 = vand.u32 4294901760, %v4625_v35 }
 0x426   :  { %v6674_v12 = vand.u32 4294901760, %v14372_v7  ;;  %v11384_v15 = vpack.c.bf16 %v14374_v47, %v14372_v7 }
 0x427   :  { %10193 = vmatmul.mubr.f32.vlgmr.msra.gmra.mrb[28].mxu0 %v14178_v40 }
 0x428   :  { %10214 = vmatprep.mubr.msk.f32.mxu0 %vm11689_vm0, %v15248_v11  ;;  %11330 = vmatpush3.bf16.msra.mxu0 %v11329_v62  ;;  %v6675_v53 = vsub.f32 %v14372_v7, %v6674_v12 }
 0x429   :  { %11331 = vmatprep.subr.bf16.mxu0 %v15247_v10 }
 0x42c   :  { %11333 = vmatpush3.bf16.msra.mxu0 %v11332_v42 }
 0x42d   :  { %11340 = vmatprep.subr.bf16.mxu0 %v15247_v10 }
 0x4b2   :  { %v4705_v39 = vpop.f32.mrb[40].mxu1 }
 0x4b3   :  { %v10074_v52 = vpop.f32.mrb[41].mxu1 }
 0x4da   :  { %v5087_v36 = vpop.f32.mrb[20].mxu0 }
 0x4db   :  { %v11548_v40 = vadd.f32 %v5087_v36, %v4705_v39  ;;  %v10109_v21 = vpop.f32.mrb[21].mxu0  ;;  %v6641_v39 = vand.u32 4294901760, %v6640_v41 }
 0x4dd   :  { %v6070_v30 = vsel %vm5580_vm12, %v11548_v40, 0  ;;  %v6676_v40 = vand.u32 4294901760, %v6675_v53  ;;  %v7637_v53 = vld [vmem:[%s14604_s6 + $0x1c8] sm:$0xff] }
 0x4de   :  { %v14318_v32 = vand.u32 4294901760, %v6070_v30  ;;  %v14320_v4 = vpop.f32.mrb[42].mxu1 }
 0x4df   :  { %v14322_v6 = vpop.f32.mrb[43].mxu1  ;;  %v7100_v20 = vsel %vm5580_vm12, %v14320_v4, 0 }
 0x4e0   :  { %v6142_v46 = vsub.f32 %v6070_v30, %v14318_v32  ;;  %10226 = vmatmul.mubr.f32.vlgmr.msra.gmra.mrb[48].mxu1 %v14318_v32 }
 0x4e1   :  { %11348 = vmatpush3.bf16.msra.mxu1 %v11329_v62  ;;  %10247 = vmatprep.mubr.msk.f32.mxu1 %vm11689_vm0, %v15248_v11 }
 0x4e2   :  { %v5659_v2 = vpop.f32.mrb[22].mxu0  ;;  %11349 = vmatprep.subr.bf16.mxu1 %v15247_v10  ;;  %v6143_v33 = vand.u32 4294901760, %v6142_v46 }
 0x4e3   :  { %v10150_v31 = vpop.f32.mrb[23].mxu0 }
 0x4e4   :  { %v6144_v17 = vsub.f32 %v6142_v46, %v6143_v33  ;;  %v11380_v31 = vpack.c.bf16 %v14354_v55, %v14352_v38  ;;  %v14450_v55 = vand.u32 4294901760, %v7100_v20 }
 0x4e5   :  { %11351 = vmatpush3.bf16.msra.mxu1 %v11332_v42 }
 0x4e6   :  { %v5907_v61 = vpop.f32.mrb[44].mxu1  ;;  %11358 = vmatprep.subr.bf16.mxu1 %v15247_v10  ;;  %v6145_v43 = vand.u32 4294901760, %v6144_v17  ;;  %v4622_v17 = vld [vmem:[%s14606_s7 + $0x180] sm:$0xff] }
 0x4e7   :  { %v10183_v27 = vpop.f32.mrb[45].mxu1 }
 0x4e8   :  { %10248 = vmatmul.mubr.f32.vlgmr.msra.gmra.mrb[50].mxu1 %v6143_v33  ;;  %10215 = vmatmul.mubr.f32.vlgmr.msra.gmra.mrb[30].mxu0 %v6145_v43  ;;  %v7103_v43 = vand.u32 4294901760, %v4622_v17 }
 0x4e9   :  { %11342 = vmatpush3.bf16.msra.mxu0 %v11341_v59  ;;  %11360 = vmatpush3.bf16.msra.mxu1 %v11329_v62  ;;  %v6661_v62 = vsub.f32 %v14352_v38, %v6660_v9  ;;  %v7097_v59 = vsel %vm5580_vm12, %v14322_v6, 0  ;;  %v7109_v6 = vand.u32 4294901760, %v4624_v58  ;;  %v7182_v9 = vsub.f32 %v7100_v20, %v14450_v55 }
 0x4ea   :  { %v5750_v57 = vpop.f32.mrb[24].mxu0  ;;  %11343 = vmatprep.subr.bf16.mxu0 %v15247_v10  ;;  %11361 = vmatprep.subr.bf16.mxu1 %v15247_v10  ;;  %v14439_v27 = vand.u32 4294901760, %v7097_v59  ;;  %v14445_v60 = vsub.f32 %v4622_v17, %v7103_v43  ;;  %v11412_v4 = vpack.c.bf16 %v7106_v5, %v7103_v43 }
 0x4eb   :  { %v5751_v29 = vadd.f32 %v5750_v57, %v5659_v2  ;;  %v10161_v34 = vpop.f32.mrb[25].mxu0  ;;  %10236 = vmatprep.mubr.msk.f32.mxu0 %vm11689_vm0, %v15248_v11  ;;  %10269 = vmatprep.mubr.msk.f32.mxu1 %vm11689_vm0, %v15248_v11  ;;  %v6662_v0 = vand.u32 4294901760, %v6661_v62  ;;  %v7200_v57 = vsub.f32 %v4623_v18, %v7106_v5  ;;  %v7207_v38 = vsub.f32 %v4624_v58, %v7109_v6 }
 0x4ec   :  { %v7172_v28 = vsub.f32 %v7097_v59, %v14439_v27 }
 0x4ed   :  { %11345 = vmatpush3.bf16.msra.mxu0 %v11344_v26  ;;  %11363 = vmatpush3.bf16.msra.mxu1 %v11332_v42  ;;  %v6649_v42 = vand.u32 4294901760, %v14384_v50  ;;  %v6682_v26 = vsub.f32 %v14374_v47, %v6681_v54  ;;  %v11372_v36 = vpack.c.bf16 %v6669_v56, %v6662_v0  ;;  %v7201_v34 = vand.u32 4294901760, %v7200_v57  ;;  %v7636_v56 = vld [vmem:[%s14604_s6 + $0x1c0] sm:$0xff] }
 0x4ee   :  { %v6065_v37 = vpop.f32.mrb[46].mxu1  ;;  %11352 = vmatprep.subr.bf16.mxu0 %v15247_v10  ;;  %11460 = vmatprep.subr.bf16.mxu1 %v15247_v10 }
 0x4ef   :  { %v10205_v51 = vpop.f32.mrb[47].mxu1  ;;  %v6650_v52 = vsub.f32 %v14384_v50, %v6649_v42  ;;  %v6683_v21 = vand.u32 4294901760, %v6682_v26  ;;  %v7202_v7 = vsub.f32 %v7200_v57, %v7201_v34  ;;  %v7638_v26 = vld [vmem:[%s14604_s6 + $0x1d0] sm:$0xff] }
 0x4f0   :  { %10237 = vmatmul.mubr.f32.vlgmr.msra.gmra.mrb[32].mxu0 %v6142_v46  ;;  %10270 = vmatmul.mubr.f32.vlgmr.msra.gmra.mrb[52].mxu1 %v14318_v32 }
 0x4f1   :  { %11354 = vmatpush3.bf16.msra.mxu0 %v11353_v25  ;;  %10258 = vmatprep.mubr.msk.f32.mxu0 %vm11689_vm0, %v15248_v11  ;;  %v6651_v33 = vand.u32 4294901760, %v6650_v52  ;;  %v7173_v25 = vand.u32 4294901760, %v7172_v28  ;;  %v7203_v62 = vand.u32 4294901760, %v7202_v7  ;;  %v7639_v52 = vld [vmem:[%s14604_s6 + $0x1d8] sm:$0xff] }
 0x4f2   :  { %v5830_v13 = vpop.f32.mrb[26].mxu0  ;;  %11355 = vmatprep.subr.bf16.mxu0 %v15247_v10  ;;  %10412 = vmatprep.mubr.msk.f32.mxu1 %vm11689_vm0, %v15248_v11 }
 0x4f3   :  { %v5831_v22 = vadd.f32 %v5830_v13, %v5751_v29  ;;  %v10172_v8 = vpop.f32.mrb[27].mxu0  ;;  %v7194_v29 = vand.u32 4294901760, %v14445_v60  ;;  %v7174_v51 = vsub.f32 %v7172_v28, %v7173_v25  ;;  %v7183_v13 = vand.u32 4294901760, %v7182_v9 }
 0x4f5   :  { %11357 = vmatpush3.bf16.msra.mxu0 %v14315_v19  ;;  %v5908_v48 = vadd.f32 %v5907_v61, %v5831_v22  ;;  %v11400_v61 = vpack.c.bf16 %v6681_v54, %v6674_v12  ;;  %v7195_v24 = vsub.f32 %v14445_v60, %v7194_v29  ;;  %v7175_v16 = vand.u32 4294901760, %v7174_v51 }
 0x4f6   :  { %11365 = vmatprep.subr.bf16.mxu0 %v14381_v44  ;;  %v7184_v12 = vsub.f32 %v7182_v9, %v7183_v13 }
 0x4f8   :  { %10259 = vmatmul.mubr.f32.vlgmr.msra.gmra.mrb[34].mxu0 %v14318_v32  ;;  %v11376_v32 = vpack.c.bf16 %v6683_v21, %v6676_v40  ;;  %v7185_v41 = vand.u32 4294901760, %v7184_v12  ;;  %v7663_v40 = vand.u32 4294901760, %v7639_v52 }
 0x4f9   :  { %11367 = vmatpush3.bf16.msra.mxu0 %v14381_v44  ;;  %10280 = vmatprep.mubr.f32.mxu0 %v6641_v39  ;;  %v7654_v39 = vand.u32 4294901760, %v7636_v56 }
 0x4fa   :  { %v5990_v19 = vpop.f32.mrb[28].mxu0  ;;  %11369 = vmatprep.subr.bf16.mxu0 %v14399_v1 }
 0x4fb   :  { %v5991_v30 = vadd.f32 %v5990_v19, %v5908_v48  ;;  %v10194_v46 = vpop.f32.mrb[29].mxu0  ;;  %v7657_v19 = vand.u32 4294901760, %v7637_v53 }
 0x4fd   :  { %11371 = vmatpush3.bf16.msra.mxu0 %v14399_v1  ;;  %v14410_v2 = vadd.f32 %v6065_v37, %v5991_v30  ;;  %v7208_v37 = vand.u32 4294901760, %v7207_v38  ;;  %v14481_v21 = vpack.c.bf16 %v7657_v19, %v7654_v39  ;;  %v14483_v30 = vsub.f32 %v7636_v56, %v7654_v39 }
 0x4fe   :  { %11373 = vmatprep.subr.bf16.mxu0 %v11372_v36  ;;  %v14485_v46 = vsub.f32 %v7637_v53, %v7657_v19 }
 0x4ff   :  { %11462 = vmatpush3.bf16.msra.mxu1 %v14481_v21 }
 0x500   :  { %10281 = vmatmul.mubr.f32.vlgmr.msra.gmra.mrb[36].mxu0 %v6651_v33  ;;  %11463 = vmatprep.subr.bf16.mxu1 %v15247_v10 }
 0x501   :  { %11375 = vmatpush3.bf16.msra.mxu0 %v11372_v36  ;;  %10291 = vmatprep.mubr.f32.mxu0 %v14340_v49  ;;  %v7660_v36 = vand.u32 4294901760, %v7638_v26 }
 0x502   :  { %11377 = vmatprep.subr.bf16.mxu0 %v11376_v32 }
 0x503   :  { %v14487_v33 = vsub.f32 %v7638_v26, %v7660_v36 }
 0x505   :  { %11379 = vmatpush3.bf16.msra.mxu0 %v11376_v32  ;;  %v14489_v32 = vsub.f32 %v7639_v52, %v7663_v40  ;;  %v7749_v59 = vand.u32 4294901760, %v14487_v33  ;;  %v7642_v52 = vld [vmem:[%s14606_s7 + $0x1d0] sm:$0xff] }
 0x506   :  { %11381 = vmatprep.subr.bf16.mxu0 %v11380_v31 }
 0x507   :  { %v7750_v58 = vsub.f32 %v14487_v33, %v7749_v59  ;;  %v11476_v20 = vpack.c.bf16 %v14489_v32, %v14487_v33 }
 0x508   :  { %10292 = vmatmul.mubr.f32.vlgmr.msra.gmra.mrb[36].mxu0 %v14367_v14 }
 0x509   :  { %11383 = vmatpush3.bf16.msra.mxu0 %v11380_v31  ;;  %10302 = vmatprep.mubr.f32.mxu0 %v14361_v45  ;;  %v7214_v45 = vsub.f32 %v4625_v35, %v7112_v63  ;;  %v14492_v31 = vpack.c.bf16 %v7663_v40, %v7660_v36  ;;  %v7643_v36 = vld [vmem:[%s14606_s7 + $0x1d8] sm:$0xff]  ;;  %v8157_v40 = vand.u32 4294901760, %v7642_v52 }
 0x50a   :  { %11385 = vmatprep.subr.bf16.mxu0 %v11384_v15 }
 0x50b   :  { %v7215_v47 = vand.u32 4294901760, %v7214_v45  ;;  %11465 = vmatpush3.bf16.msra.mxu1 %v14492_v31 }
 0x50c   :  { %11466 = vmatprep.subr.bf16.mxu1 %v15247_v10 }
 0x50d   :  { %11387 = vmatpush3.bf16.msra.mxu0 %v11384_v15  ;;  %v11448_v0 = vpack.c.bf16 %v7215_v47, %v7208_v37  ;;  %v7735_v15 = vand.u32 4294901760, %v14483_v30 }
 0x50e   :  { %11389 = vmatprep.subr.bf16.mxu0 %v14381_v44 }
 0x50f   :  { %v7736_v17 = vsub.f32 %v14483_v30, %v7735_v15 }
 0x510   :  { %10303 = vmatmul.mubr.f32.vlgmr.msra.gmra.mrb[36].mxu0 %v14384_v50  ;;  %v7209_v50 = vsub.f32 %v7207_v38, %v7208_v37 }
 0x511   :  { %11391 = vmatpush3.bf16.msra.mxu0 %v14381_v44  ;;  %10313 = vmatprep.mubr.f32.mxu0 %v6639_v3  ;;  %v11416_v3 = vpack.c.bf16 %v7112_v63, %v7109_v6  ;;  %v7737_v43 = vand.u32 4294901760, %v7736_v17  ;;  %v7751_v6 = vand.u32 4294901760, %v7750_v58 }
 0x512   :  { %11393 = vmatprep.subr.bf16.mxu0 %v14399_v1  ;;  %v7210_v22 = vand.u32 4294901760, %v7209_v50 }
 0x515   :  { %11395 = vmatpush3.bf16.msra.mxu0 %v14399_v1 }
 0x516   :  { %11397 = vmatprep.subr.bf16.mxu0 %v11396_v23 }
 0x518   :  { %10314 = vmatmul.mubr.f32.vlgmr.msra.gmra.mrb[36].mxu0 %v6649_v42  ;;  %v11444_v42 = vpack.c.bf16 %v7201_v34, %v7194_v29 }
 0x519   :  { %11399 = vmatpush3.bf16.msra.mxu0 %v11396_v23  ;;  %10324 = vmatprep.mubr.f32.mxu0 %v14340_v49  ;;  %v7742_v23 = vand.u32 4294901760, %v14485_v46 }
 0x51a   :  { %11401 = vmatprep.subr.bf16.mxu0 %v11400_v61 }
 0x51b   :  { %v7743_v18 = vsub.f32 %v14485_v46, %v7742_v23 }
 0x51d   :  { %11403 = vmatpush3.bf16.msra.mxu0 %v11400_v61  ;;  %v7756_v61 = vand.u32 4294901760, %v14489_v32  ;;  %v7744_v5 = vand.u32 4294901760, %v7743_v18 }
 0x51e   :  { %11405 = vmatprep.subr.bf16.mxu0 %v14381_v44 }
 0x51f   :  { %v11467_v35 = vpack.c.bf16 %v7744_v5, %v7737_v43 }
 0x520   :  { %10325 = vmatmul.mubr.f32.vlgmr.msra.gmra.mrb[36].mxu0 %v14367_v14 }
 0x521   :  { %11407 = vmatpush3.bf16.msra.mxu0 %v14381_v44  ;;  %10335 = vmatprep.mubr.f32.mxu0 %v14340_v49  ;;  %v7196_v44 = vand.u32 4294901760, %v7195_v24  ;;  %v7216_v49 = vsub.f32 %v7214_v45, %v7215_v47 }
 0x522   :  { %11409 = vmatprep.subr.bf16.mxu0 %v14399_v1 }
 0x523   :  { %v11420_v54 = vpack.c.bf16 %v7203_v62, %v7196_v44  ;;  %v7217_v8 = vand.u32 4294901760, %v7216_v49  ;;  %v7641_v44 = vld [vmem:[%s14606_s7 + $0x1c8] sm:$0xff] }
 0x524   :  { %v8154_v49 = vand.u32 4294901760, %v7641_v44 }
 0x525   :  { %11411 = vmatpush3.bf16.msra.mxu0 %v14399_v1  ;;  %v11424_v48 = vpack.c.bf16 %v7217_v8, %v7210_v22  ;;  %v11428_v1 = vpack.c.bf16 %v7200_v57, %v14445_v60  ;;  %v11473_v57 = vpack.c.bf16 %v14485_v46, %v14483_v30  ;;  %v8160_v46 = vand.u32 4294901760, %v7643_v36 }
 0x526   :  { %11413 = vmatprep.subr.bf16.mxu0 %v11412_v4  ;;  %v14521_v8 = vsub.f32 %v7641_v44, %v8154_v49  ;;  %v8705_v44 = vld [vmem:[%s14607_s8 + $0x5] ss:$0 sm:$0xff] }
 0x527   :  { %v8262_v17 = vsub.f32 %v7643_v36, %v8160_v46 }
 0x528   :  { %10336 = vmatmul.mubr.f32.vlgmr.msra.gmra.mrb[36].mxu0 %v14367_v14  ;;  %v11432_v14 = vpack.c.bf16 %v7214_v45, %v7207_v38  ;;  %v11488_v38 = vpack.c.bf16 %v7756_v61, %v7749_v59 }
 0x529   :  { %11415 = vmatpush3.bf16.msra.mxu0 %v11412_v4  ;;  %10346 = vmatprep.mubr.f32.mxu0 %v7175_v16  ;;  %v8263_v58 = vand.u32 4294901760, %v8262_v17 }
 0x52a   :  { %11417 = vmatprep.subr.bf16.mxu0 %v11416_v3 }
 0x52d   :  { %11419 = vmatpush3.bf16.msra.mxu0 %v11416_v3 }
 0x52e   :  { %11421 = vmatprep.subr.bf16.mxu0 %v11420_v54 }
 0x530   :  { %10347 = vmatmul.mubr.f32.vlgmr.msra.gmra.mrb[36].mxu0 %v7185_v41 }
 0x531   :  { %11423 = vmatpush3.bf16.msra.mxu0 %v11420_v54  ;;  %10357 = vmatprep.mubr.f32.mxu0 %v14439_v27  ;;  %v8702_v54 = vld [vmem:[%s14607_s8 + $0x2] ss:$0 sm:$0xff] }
 0x532   :  { %11425 = vmatprep.subr.bf16.mxu0 %v11424_v48 }
 0x535   :  { %11427 = vmatpush3.bf16.msra.mxu0 %v11424_v48 }
 0x536   :  { %11429 = vmatprep.subr.bf16.mxu0 %v11428_v1 }
 0x538   :  { %10358 = vmatmul.mubr.f32.vlgmr.msra.gmra.mrb[36].mxu0 %v14450_v55 }
 0x539   :  { %11431 = vmatpush3.bf16.msra.mxu0 %v11428_v1  ;;  %10368 = vmatprep.mubr.f32.mxu0 %v7172_v28  ;;  %v11485_v28 = vpack.c.bf16 %v7742_v23, %v7735_v15  ;;  %v14562_v15 = vpack.c.bf16 %v8160_v46, %v8157_v40 }
 0x53a   :  { %11433 = vmatprep.subr.bf16.mxu0 %v11432_v14 }
 0x53d   :  { %11435 = vmatpush3.bf16.msra.mxu0 %v11432_v14  ;;  %v8249_v14 = vand.u32 4294901760, %v14521_v8 }
 0x53e   :  { %11437 = vmatprep.subr.bf16.mxu0 %v11412_v4 }
 0x540   :  { %10369 = vmatmul.mubr.f32.vlgmr.msra.gmra.mrb[36].mxu0 %v7182_v9 }
 0x541   :  { %11439 = vmatpush3.bf16.msra.mxu0 %v11412_v4  ;;  %10379 = vmatprep.mubr.f32.mxu0 %v7173_v25 }
 0x542   :  { %11441 = vmatprep.subr.bf16.mxu0 %v11416_v3 }
 0x545   :  { %11443 = vmatpush3.bf16.msra.mxu0 %v11416_v3 }
 0x546   :  { %11445 = vmatprep.subr.bf16.mxu0 %v11444_v42 }
 0x548   :  { %10380 = vmatmul.mubr.f32.vlgmr.msra.gmra.mrb[36].mxu0 %v7183_v13  ;;  %v7640_v13 = vld [vmem:[%s14606_s7 + $0x1c0] sm:$0xff] }
 0x549   :  { %11447 = vmatpush3.bf16.msra.mxu0 %v11444_v42  ;;  %10390 = vmatprep.mubr.f32.mxu0 %v14439_v27  ;;  %v8151_v62 = vand.u32 4294901760, %v7640_v13 }
 0x54a   :  { %11449 = vmatprep.subr.bf16.mxu0 %v11448_v0 }
 0x54b   :  { %v14519_v22 = vsub.f32 %v7640_v13, %v8151_v62  ;;  %v14556_v30 = vpack.c.bf16 %v8154_v49, %v8151_v62 }
 0x54d   :  { %11451 = vmatpush3.bf16.msra.mxu0 %v11448_v0  ;;  %v8242_v1 = vand.u32 4294901760, %v14519_v22 }
 0x54e   :  { %11453 = vmatprep.subr.bf16.mxu0 %v11412_v4 }
 0x54f   :  { %v14526_v56 = vpack.c.bf16 %v8249_v14, %v8242_v1  ;;  %v8243_v33 = vsub.f32 %v14519_v22, %v8242_v1 }
 0x550   :  { %10391 = vmatmul.mubr.f32.vlgmr.msra.gmra.mrb[36].mxu0 %v14450_v55 }
 0x551   :  { %11455 = vmatpush3.bf16.msra.mxu0 %v11412_v4  ;;  %10401 = vmatprep.mubr.f32.mxu0 %v14439_v27  ;;  %v7757_v27 = vsub.f32 %v14489_v32, %v7756_v61  ;;  %v8250_v32 = vsub.f32 %v14521_v8, %v8249_v14 }
 0x552   :  { %11457 = vmatprep.subr.bf16.mxu0 %v11416_v3 }
 0x553   :  { %v7758_v63 = vand.u32 4294901760, %v7757_v27  ;;  %v8251_v23 = vand.u32 4294901760, %v8250_v32 }
 0x555   :  { %11459 = vmatpush3.bf16.msra.mxu0 %v11416_v3  ;;  %v11470_v60 = vpack.c.bf16 %v7758_v63, %v7751_v6 }
 0x558   :  { %10402 = vmatmul.mubr.f32.vlgmr.msra.gmra.mrb[36].mxu0 %v14450_v55 }
 0x5b3   :  { %v6238_v55 = vpop.f32.mrb[48].mxu1 }
 0x5b4   :  { %v10227_v29 = vpop.f32.mrb[49].mxu1 }
 0x5bb   :  { %v6395_v34 = vpop.f32.mrb[50].mxu1  ;;  %v6147_v45 = vpop.f32.mrb[30].mxu0 }
 0x5bc   :  { %v6148_v25 = vadd.f32 %v6147_v45, %v14410_v2  ;;  %v10249_v4 = vpop.f32.mrb[51].mxu1  ;;  %v10216_v37 = vpop.f32.mrb[31].mxu0 }
 0x5be   :  { %v6239_v9 = vadd.f32 %v6238_v55, %v6148_v25 }
 0x5c3   :  { %v6318_v24 = vpop.f32.mrb[32].mxu0  ;;  %v6553_v7 = vpop.f32.mrb[52].mxu1 }
 0x5c4   :  { %v6319_v47 = vadd.f32 %v6318_v24, %v6239_v9  ;;  %v10238_v51 = vpop.f32.mrb[33].mxu0  ;;  %v10271_v3 = vpop.f32.mrb[53].mxu1  ;;  %v11512_v24 = vpack.c.bf16 %v14521_v8, %v14519_v22 }
 0x5c5   :  { %v8704_v51 = vld [vmem:[%s14607_s8 + $0x4] ss:$0 sm:$0xff] }
 0x5c6   :  { %v6396_v50 = vadd.f32 %v6395_v34, %v6319_v47 }
 0x5cb   :  { %v6478_v2 = vpop.f32.mrb[34].mxu0 }
 0x5cc   :  { %v6479_v16 = vadd.f32 %v6478_v2, %v6396_v50  ;;  %v10260_v12 = vpop.f32.mrb[35].mxu0 }
 0x5ce   :  { %v6554_v41 = vadd.f32 %v6553_v7, %v6479_v16 }
 0x5d0   :  { %v6561_v48 = vadd.f32 %v8702_v54, %v6554_v41 }
 0x5d2   :  { %v7651_v42 = vsel %vm5580_vm12, %v6561_v48, 0 }
 0x5d3   :  { %v7722_v0 = vand.u32 4294901760, %v7651_v42 }
 0x5d5   :  { %v7723_v53 = vsub.f32 %v7651_v42, %v7722_v0 }
 0x5d7   :  { %v7724_v26 = vand.u32 4294901760, %v7723_v53 }
 0x5d9   :  { %v7725_v39 = vsub.f32 %v7723_v53, %v7724_v26 }
 0x5db   :  { %v7726_v19 = vand.u32 4294901760, %v7725_v39 }
 0x5dd   :  { %10413 = vmatmul.mubr.f32.vlgmr.msra.gmra.mrb[54].mxu1 %v7726_v19 }
 0x5de   :  { %11468 = vmatpush3.bf16.msra.mxu1 %v11467_v35  ;;  %10423 = vmatprep.mubr.msk.f32.mxu1 %vm11689_vm0, %v15248_v11 }
 0x5df   :  { %11469 = vmatprep.subr.bf16.mxu1 %v15247_v10 }
 0x5e2   :  { %11471 = vmatpush3.bf16.msra.mxu1 %v11470_v60 }
 0x5e3   :  { %11472 = vmatprep.subr.bf16.mxu1 %v15247_v10 }
 0x5e5   :  { %10424 = vmatmul.mubr.f32.vlgmr.msra.gmra.mrb[54].mxu1 %v7722_v0 }
 0x5e6   :  { %11474 = vmatpush3.bf16.msra.mxu1 %v11473_v57  ;;  %10434 = vmatprep.mubr.msk.f32.mxu1 %vm11689_vm0, %v15248_v11 }
 0x5e7   :  { %11475 = vmatprep.subr.bf16.mxu1 %v15247_v10 }
 0x5ea   :  { %11477 = vmatpush3.bf16.msra.mxu1 %v11476_v20  ;;  %v8264_v20 = vsub.f32 %v8262_v17, %v8263_v58 }
 0x5eb   :  { %11478 = vmatprep.subr.bf16.mxu1 %v15247_v10 }
 0x5ec   :  { %v8265_v45 = vand.u32 4294901760, %v8264_v20 }
 0x5ed   :  { %10435 = vmatmul.mubr.f32.vlgmr.msra.gmra.mrb[54].mxu1 %v7723_v53 }
 0x5ee   :  { %11480 = vmatpush3.bf16.msra.mxu1 %v14481_v21  ;;  %10445 = vmatprep.mubr.msk.f32.mxu1 %vm11689_vm0, %v15248_v11 }
 0x5ef   :  { %11481 = vmatprep.subr.bf16.mxu1 %v15247_v10 }
 0x5f2   :  { %11483 = vmatpush3.bf16.msra.mxu1 %v14492_v31 }
 0x5f3   :  { %11484 = vmatprep.subr.bf16.mxu1 %v15247_v10 }
 0x5f5   :  { %10446 = vmatmul.mubr.f32.vlgmr.msra.gmra.mrb[54].mxu1 %v7724_v26 }
 0x5f6   :  { %11486 = vmatpush3.bf16.msra.mxu1 %v11485_v28  ;;  %10456 = vmatprep.mubr.msk.f32.mxu1 %vm11689_vm0, %v15248_v11 }
 0x5f7   :  { %11487 = vmatprep.subr.bf16.mxu1 %v15247_v10 }
 0x5fa   :  { %11489 = vmatpush3.bf16.msra.mxu1 %v11488_v38 }
 0x5fb   :  { %11490 = vmatprep.subr.bf16.mxu1 %v15247_v10 }
 0x5fd   :  { %10457 = vmatmul.mubr.f32.vlgmr.msra.gmra.mrb[54].mxu1 %v7722_v0 }
 0x5fe   :  { %11492 = vmatpush3.bf16.msra.mxu1 %v14481_v21  ;;  %10467 = vmatprep.mubr.msk.f32.mxu1 %vm11689_vm0, %v15248_v11  ;;  %v8244_v21 = vand.u32 4294901760, %v8243_v33  ;;  %v8703_v11 = vld [vmem:[%s14607_s8 + $0x3] ss:$0 sm:$0xff]  ;;  %vm8138_vm0 = vcmask 31744  }
 0x5ff   :  { %11493 = vmatprep.subr.bf16.mxu1 %v15247_v10 }
 0x600   :  { %v11504_v10 = vpack.c.bf16 %v8251_v23, %v8244_v21 }
 0x602   :  { %11495 = vmatpush3.bf16.msra.mxu1 %v14492_v31  ;;  %v8255_v31 = vsub.f32 %v7642_v52, %v8157_v40 }
 0x603   :  { %11497 = vmatprep.subr.bf16.mxu1 %v14556_v30 }
 0x604   :  { %v8256_v5 = vand.u32 4294901760, %v8255_v31  ;;  %v11516_v7 = vpack.c.bf16 %v8262_v17, %v8255_v31 }
 0x605   :  { %10468 = vmatmul.mubr.f32.vlgmr.msra.gmra.mrb[54].mxu1 %v7722_v0 }
 0x606   :  { %11499 = vmatpush3.bf16.msra.mxu1 %v14556_v30  ;;  %v8257_v57 = vsub.f32 %v8255_v31, %v8256_v5  ;;  %v11532_v47 = vpack.c.bf16 %v8263_v58, %v8256_v5 }
 0x607   :  { %11501 = vmatprep.subr.bf16.mxu1 %v14562_v15 }
 0x608   :  { %v8258_v34 = vand.u32 4294901760, %v8257_v57 }
 0x60a   :  { %11503 = vmatpush3.bf16.msra.mxu1 %v14562_v15  ;;  %v11508_v9 = vpack.c.bf16 %v8265_v45, %v8258_v34 }
 0x60b   :  { %11505 = vmatprep.subr.bf16.mxu1 %v11504_v10 }
 0x62b   :  { %v10403_v18 = vpop.f32.mrb[36].mxu0 }
 0x62c   :  { %v7635_v59 = vadd.f32 %v10403_v18, %v8703_v11  ;;  %v7620_v61 = vpop.f32.mrb[37].mxu0 }
 0x62d   :  { %v7634_v43 = vadd.f32 %v8703_v11, %v7620_v61 }
 0x62e   :  { %v8148_v27 = vsel %vm5580_vm12, %v7635_v59, 0 }
 0x62f   :  { %v8229_v35 = vand.u32 4294901760, %v8148_v27  ;;  %v8145_v6 = vsel %vm5580_vm12, %v7634_v43, 0 }
 0x630   :  { %v8219_v63 = vand.u32 4294901760, %v8145_v6 }
 0x631   :  { %v8230_v60 = vsub.f32 %v8148_v27, %v8229_v35 }
 0x632   :  { %v8220_v28 = vsub.f32 %v8145_v6, %v8219_v63 }
 0x633   :  { %v8231_v38 = vand.u32 4294901760, %v8230_v60 }
 0x634   :  { %v8221_v55 = vand.u32 4294901760, %v8220_v28 }
 0x635   :  { %v8232_v29 = vsub.f32 %v8230_v60, %v8231_v38 }
 0x636   :  { %v8222_v25 = vsub.f32 %v8220_v28, %v8221_v55 }
 0x637   :  { %v8233_v37 = vand.u32 4294901760, %v8232_v29 }
 0x638   :  { %v8223_v4 = vand.u32 4294901760, %v8222_v25 }
 0x63a   :  { %10478 = vmatprep.mubr.f32.mxu1 %v8223_v4 }
 0x63b   :  { %10479 = vmatmul.mubr.f32.vlgmr.msra.gmra.mrb[56].mxu1 %v8233_v37 }
 0x63c   :  { %11507 = vmatpush3.bf16.msra.mxu1 %v11504_v10  ;;  %10489 = vmatprep.mubr.f32.mxu1 %v8219_v63 }
 0x63d   :  { %11509 = vmatprep.subr.bf16.mxu1 %v11508_v9 }
 0x640   :  { %11511 = vmatpush3.bf16.msra.mxu1 %v11508_v9 }
 0x641   :  { %11513 = vmatprep.subr.bf16.mxu1 %v11512_v24 }
 0x643   :  { %10490 = vmatmul.mubr.f32.vlgmr.msra.gmra.mrb[56].mxu1 %v8229_v35 }
 0x644   :  { %11515 = vmatpush3.bf16.msra.mxu1 %v11512_v24  ;;  %10500 = vmatprep.mubr.f32.mxu1 %v8220_v28 }
 0x645   :  { %11517 = vmatprep.subr.bf16.mxu1 %v11516_v7 }
 0x648   :  { %11519 = vmatpush3.bf16.msra.mxu1 %v11516_v7 }
 0x649   :  { %11521 = vmatprep.subr.bf16.mxu1 %v14556_v30 }
 0x64b   :  { %10501 = vmatmul.mubr.f32.vlgmr.msra.gmra.mrb[56].mxu1 %v8230_v60 }
 0x64c   :  { %11523 = vmatpush3.bf16.msra.mxu1 %v14556_v30  ;;  %10511 = vmatprep.mubr.f32.mxu1 %v8221_v55 }
 0x64d   :  { %11525 = vmatprep.subr.bf16.mxu1 %v14562_v15 }
 0x650   :  { %11527 = vmatpush3.bf16.msra.mxu1 %v14562_v15 }
 0x651   :  { %11529 = vmatprep.subr.bf16.mxu1 %v14526_v56 }
 0x653   :  { %10512 = vmatmul.mubr.f32.vlgmr.msra.gmra.mrb[56].mxu1 %v8231_v38 }
 0x654   :  { %11531 = vmatpush3.bf16.msra.mxu1 %v14526_v56  ;;  %10522 = vmatprep.mubr.f32.mxu1 %v8219_v63 }
 0x655   :  { %11533 = vmatprep.subr.bf16.mxu1 %v11532_v47 }
 0x658   :  { %11535 = vmatpush3.bf16.msra.mxu1 %v11532_v47 }
 0x659   :  { %11537 = vmatprep.subr.bf16.mxu1 %v14556_v30 }
 0x65b   :  { %10523 = vmatmul.mubr.f32.vlgmr.msra.gmra.mrb[56].mxu1 %v8229_v35 }
 0x65c   :  { %11539 = vmatpush3.bf16.msra.mxu1 %v14556_v30  ;;  %10533 = vmatprep.mubr.f32.mxu1 %v8219_v63 }
 0x65d   :  { %11541 = vmatprep.subr.bf16.mxu1 %v14562_v15 }
 0x660   :  { %11543 = vmatpush3.bf16.msra.mxu1 %v14562_v15 }
 0x663   :  { %10534 = vmatmul.mubr.f32.vlgmr.msra.gmra.mrb[56].mxu1 %v8229_v35 }
 0x6d8   :  { %v8134_v3 = vpop.f32.mrb[54].mxu1 }
 0x6d9   :  { %v11549_v50 = vadd.f32 %v8704_v51, %v8134_v3  ;;  %v10469_v13 = vpop.f32.mrb[55].mxu1 }
 0x6db   :  { %8139 = vst.msk [vmem:[%s14608_s9] sm:$0xff] %vm8138_vm0, %v11549_v50 }
 0x736   :  { %v10535_v62 = vpop.f32.mrb[56].mxu1 }
 0x737   :  { %v11550_v49 = vadd.f32 %v10535_v62, %v8705_v44  ;;  %v8668_v2 = vpop.f32.mrb[57].mxu1 }
 0x738   :  { %v11551_v16 = vadd.f32 %v8705_v44, %v8668_v2 }
 0x739   :  { %8679 = vst.msk [vmem:[%s14609_s10 + $0x8] sm:$0xff] %vm8138_vm0, %v11550_v49 }
 0x73a   :  { %8678 = vst.msk [vmem:[%s14609_s10] sm:$0xff] %vm8138_vm0, %v11551_v16 }

</bundles_post_ra>
